<compile_context>
chip_gen: v7x
topology: tpu7x:2x2x1
jax: 0.10.0
libtpu: 0.0.40
codegen_flags: <defaults>
</compile_context>

<pallas_src>
import numpy as np
import jax
import jax.numpy as jnp
from jax import lax
from jax.experimental import pallas as pl
from jax.experimental.pallas import tpu as pltpu

EPS = 1e-5


# --------------------------- bilinear (align_corners=True) ---------------------------

def _bilinear_matrix(n_in, n_out):
    """(n_out, n_in) interpolation matrix for 1-D bilinear resize, align_corners=True."""
    A = np.zeros((n_out, n_in), np.float32)
    if n_in == 1:
        A[:, 0] = 1.0
        return A
    scale = (n_in - 1) / (n_out - 1) if n_out > 1 else 0.0
    for i in range(n_out):
        s = i * scale
        i0 = min(int(np.floor(s)), n_in - 2)
        f = s - i0
        A[i, i0] += 1.0 - f
        A[i, i0 + 1] += f
    return A


# ------------------------------- fused UpBlock kernel --------------------------------

def _make_upblock_kernel(B, c_down, c_cat, c_mid, wp, lo, wtot, ioff, buf):
    halo = wp + 1
    pstart = ioff - halo                              # plane column of padded pixel (0,0)
    offs = [pstart + dy * wp + dx for dy in range(3) for dx in range(3)]
    zright = ((ioff + lo) // 128) * 128               # aligned start of right halo zeroing

    def conv3x3(plane_ref, w_ref):
        # full im2col over all B samples at once: 9 shifted lane windows stacked along
        # the contraction axis, ONE deep-K bf16 MXU dot (f32 accumulation).
        x = plane_ref[...]                                                   # (C, B*buf) bf16
        cols = jnp.concatenate([x[:, o:o + wtot] for o in offs], axis=0)     # (9C, Wtot) bf16
        return jnp.dot(w_ref[...], cols, preferred_element_type=jnp.float32)  # (Co, Wtot) f32

    def kernel(down_ref, mp_ref, skip_ref, mask_ref,
               w1_ref, t1_ref, w2_ref, t2_ref, o_ref, plane1, plane2):
        # 0) zero (aligned, full-vreg stores) the halo lanes the 3x3 taps will read;
        #    the interior lanes they overlap are rewritten below, so order matters only
        #    within this step.  Done every step -> correct under any core sharding.
        for b in range(B):
            base = b * buf
            plane1[:, base:base + ioff] = jnp.zeros((c_cat, ioff), jnp.bfloat16)
            plane1[:, base + zright:base + buf] = jnp.zeros((c_cat, buf - zright), jnp.bfloat16)
            plane2[:, base:base + ioff] = jnp.zeros((c_mid, ioff), jnp.bfloat16)
            plane2[:, base + zright:base + buf] = jnp.zeros((c_mid, buf - zright), jnp.bfloat16)

        # 1) bilinear x2 upsample of all B samples as one matmul against the interior
        #    interpolation matrix; channel-concat with skip straight into the bf16
        #    padded plane (interior stores are 128-lane aligned).
        up = jnp.dot(down_ref[...], mp_ref[...],
                     preferred_element_type=jnp.float32)                      # (B*Cd, Lo) f32
        for b in range(B):
            s = b * buf + ioff
            plane1[0:c_down, s:s + lo] = up[b * c_down:(b + 1) * c_down, :].astype(jnp.bfloat16)
            plane1[c_down:c_cat, s:s + lo] = skip_ref[b]                      # torch.cat(dim=1)

        # 2) conv1 (3x3, pad 1) + folded BN(+bias) + ReLU.  The mask zeroes the junk
        #    width-pad lanes and the inter-sample gap lanes, so the single aligned wide
        #    store below directly forms conv2's zero-padded plane interior.
        y1 = conv3x3(plane1, w1_ref)
        y1 = jnp.maximum(y1 + t1_ref[...], 0.0) * mask_ref[...]
        plane2[:, ioff:ioff + wtot] = y1.astype(jnp.bfloat16)

        # 3) conv2 (3x3, pad 1) + folded BN(+bias) + ReLU -> per-sample output tiles
        #    (lane-aligned value slices: per-sample stride `buf` is a multiple of 128).
        y2 = conv3x3(plane2, w2_ref)
        y2 = jnp.maximum(y2 + t2_ref[...], 0.0)
        for b in range(B):
            o_ref[b] = y2[:, b * buf:b * buf + lo]

    return kernel


def upblock_forward(down, skip, convs, *, block_batch=2):
    """down: (N, Cd, Hd, Wd); skip: (N, Cs, H, W); returns (N, Cout, H, W)."""
    N, Cd, Hd, Wd = down.shape
    Ns, Cs, H, W = skip.shape
    assert Ns == N
    Cin = Cd + Cs
    C1 = convs[0]["wcat"].shape[0]
    Cout = convs[1]["wcat"].shape[0]
    assert convs[0]["wcat"].shape[1] == 9 * Cin and convs[1]["wcat"].shape[1] == 9 * C1
    for c in (Cd, Cs, C1, Cout):
        assert c % 8 == 0, "channel counts must be multiples of 8 (sublane aligned)"

    # samples per grid step: amortize per-step overhead, but keep >=2 grid steps when
    # possible so both v7x TensorCores get work (v5e/v6e are single-core: no effect).
    B = block_batch if (block_batch >= 1 and N % block_batch == 0) else 1
    if N >= 2 and N // B < 2:
        B = max(d for d in range(1, N) if N % d == 0 and N // d >= 2)
    steps = N // B

    Wp = W + 2
    Lo = H * Wp                                   # flattened interior (incl. 2 junk cols/row)
    halo = Wp + 1                                 # padded-plane offset of interior pixel (0,0)
    ioff = ((halo + 127) // 128) * 128            # interior start lane (aligned stores)
    buf = ((ioff + Lo + halo + 127) // 128) * 128  # per-sample lane stride in the plane
    wtot = (B - 1) * buf + Lo                     # lane width of the batched conv window

    # ---- host-side constants (shape-only; folded at trace time) ----
    A_h = _bilinear_matrix(Hd, H)
    A_w = _bilinear_matrix(Wd, W)
    T = np.einsum("hi,wj->ijhw", A_h, A_w).reshape(Hd * Wd, H, W)
    Mp = np.pad(T, ((0, 0), (0, 0), (0, Wp - W))).reshape(Hd * Wd, Lo)   # interior only
    mrow = (np.arange(Lo) % Wp < W).astype(np.float32)
    mask = np.zeros((1, wtot), np.float32)
    for b in range(B):
        mask[0, b * buf:b * buf + Lo] = mrow       # 0 at width-pad cols and inter-sample gaps

    # ---- the only host-side glue: flatten down, ONE width-pad of skip (to bf16) ----
    down_flat = down.reshape(N * Cd, Hd * Wd)
    skip_lo = jnp.pad(skip, ((0, 0), (0, 0), (0, 0), (0, Wp - W))
                      ).reshape(N, Cs, Lo).astype(jnp.bfloat16)

    # ---- explicit VMEM budget: double-buffered blocks + scratch + big intermediates ----
    vmem_need = (
        2 * (B * Cd * Hd * Wd * 4 + Hd * Wd * Lo * 4 + B * Cs * Lo * 2 + wtot * 4
             + C1 * 9 * Cin * 2 + C1 * 4 + Cout * 9 * C1 * 2 + Cout * 4
             + B * Cout * Lo * 4)
        + (Cin + C1) * B * buf * 2
        + 9 * Cin * wtot * 2 + 9 * C1 * wtot * 2 + 2 * (C1 + Cout) * wtot * 4
        + B * Cd * Lo * 4)
    vmem_limit = min(64 << 20, max(16 << 20, 2 * vmem_need))   # <= 64 MiB (v7x per-TC)

    out = pl.pallas_call(
        _make_upblock_kernel(B, Cd, Cin, C1, Wp, Lo, wtot, ioff, buf),
        out_shape=jax.ShapeDtypeStruct((N, Cout, Lo), jnp.float32),
        grid=(steps,),
        in_specs=[
            pl.BlockSpec((B * Cd, Hd * Wd), lambda n: (n, 0)),
            pl.BlockSpec((Hd * Wd, Lo), lambda n: (0, 0)),
            pl.BlockSpec((B, Cs, Lo), lambda n: (n, 0, 0)),
            pl.BlockSpec((1, wtot), lambda n: (0, 0)),
            pl.BlockSpec((C1, 9 * Cin), lambda n: (0, 0)),
            pl.BlockSpec((C1, 1), lambda n: (0, 0)),
            pl.BlockSpec((Cout, 9 * C1), lambda n: (0, 0)),
            pl.BlockSpec((Cout, 1), lambda n: (0, 0)),
        ],
        out_specs=pl.BlockSpec((B, Cout, Lo), lambda n: (n, 0, 0)),
        scratch_shapes=[pltpu.VMEM((Cin, B * buf), jnp.bfloat16),
                        pltpu.VMEM((C1, B * buf), jnp.bfloat16)],
        compiler_params=pltpu.CompilerParams(
            dimension_semantics=("parallel",), vmem_limit_bytes=vmem_limit),
    )(down_flat, jnp.asarray(Mp), skip_lo, jnp.asarray(mask),
      convs[0]["wcat"], convs[0]["shift"], convs[1]["wcat"], convs[1]["shift"])

    # TODO(synk): consumers that can read the (H, Wp)-strided layout should skip this
    # final strip (it is one extra full-output HBM copy).
    return out.reshape(N, Cout, H, Wp)[:, :, :, :W]


# --------------------------------- params & reference --------------------------------

def init_params(key, in_channels, out_channels):
    convs = []
    cin = in_channels
    for co in (out_channels, out_channels):
        key, kw, kb, kg, kbt, km, kv = jax.random.split(key, 7)
        w = jax.random.normal(kw, (co, cin, 3, 3), jnp.float32) * jnp.sqrt(2.0 / (9 * cin))
        b = 0.01 * jax.random.normal(kb, (co,), jnp.float32)
        gamma = 1.0 + 0.1 * jax.random.normal(kg, (co,), jnp.float32)
        beta = 0.1 * jax.random.normal(kbt, (co,), jnp.float32)
        mean = 0.1 * jax.random.normal(km, (co,), jnp.float32)
        var = 1.0 + 0.1 * jax.random.uniform(kv, (co,), jnp.float32)
        s = gamma / jnp.sqrt(var + EPS)                       # inference-mode BN fold
        # BN scale folded into the bf16 im2col weight: ReLU(s*(Wx)+t) == ReLU((sW)x+t);
        # wcat[co, (ky*3+kx)*cin + ci] = s[co] * w[co, ci, ky, kx].  Shift stays f32.
        w_s = w * s[:, None, None, None]
        convs.append(dict(
            w=w,                                              # OIHW f32 (reference)
            scale=s.reshape(co, 1),                           # f32 (reference)
            wcat=jnp.transpose(w_s, (0, 2, 3, 1)).reshape(co, 9 * cin).astype(jnp.bfloat16),
            shift=((b - mean) * s + beta).reshape(co, 1),
        ))
        cin = co
    return convs


def upblock_reference(down, skip, convs):
    N, Cd, Hd, Wd = down.shape
    H, W = skip.shape[2], skip.shape[3]
    A_h = jnp.asarray(_bilinear_matrix(Hd, H))
    A_w = jnp.asarray(_bilinear_matrix(Wd, W))
    up = jnp.einsum("Hh,nchw,Ww->ncHW", A_h, down, A_w,
                    precision=lax.Precision.HIGHEST)          # bilinear, align_corners=True
    x = jnp.concatenate([up, skip], axis=1)
    for layer in convs:
        y = lax.conv_general_dilated(
            x, layer["w"], (1, 1), ((1, 1), (1, 1)),
            dimension_numbers=("NCHW", "OIHW", "NCHW"),
            precision=lax.Precision.HIGHEST)
        s = layer["scale"][:, 0]
        t = layer["shift"][:, 0]
        x = jnp.maximum(y * s[None, :, None, None] + t[None, :, None, None], 0.0)
    return x


if __name__ == "__main__":
    key = jax.random.PRNGKey(0)
    kd, ks, kp = jax.random.split(key, 3)

    # UpBlock(in_channels=32, out_channels=16, up_sample_mode='bilinear')
    in_channels, out_channels = 32, 16
    N, Hd, Wd = 4, 8, 8                                       # skip is 2x the down spatial size
    down = jax.random.normal(kd, (N, in_channels - out_channels, Hd, Wd), jnp.float32)
    skip = jax.random.normal(ks, (N, out_channels, 2 * Hd, 2 * Wd), jnp.float32)
    convs = init_params(kp, in_channels, out_channels)

    out = jax.block_until_ready(jax.jit(upblock_forward)(down, skip, convs))
    assert out.shape == (N, out_channels, 2 * Hd, 2 * Wd) and out.dtype == jnp.float32

    ref = jax.block_until_ready(upblock_reference(down, skip, convs))
    if not bool(jnp.allclose(out, ref, rtol=2e-2, atol=4e-2)):  # bf16 MXU operands/planes
        err = float(jnp.max(jnp.abs(out - ref)))
        raise AssertionError(f"Pallas/reference mismatch: max abs err {err}")
    print("KERNEL_OK")
</pallas_src>

<mosaic_0001>
module attributes {stable_mosaic.version = 11 : i64} {
  func.func @kernel(%arg0: i32, %arg1: memref<32x64xf32, #tpu.memory_space<vmem>>, %arg2: memref<64x288xf32, #tpu.memory_space<vmem>>, %arg3: memref<2x16x288xbf16, #tpu.memory_space<vmem>>, %arg4: memref<1x800xf32, #tpu.memory_space<vmem>>, %arg5: memref<16x288xbf16, #tpu.memory_space<vmem>>, %arg6: memref<16x1xf32, #tpu.memory_space<vmem>>, %arg7: memref<16x144xbf16, #tpu.memory_space<vmem>>, %arg8: memref<16x1xf32, #tpu.memory_space<vmem>>, %arg9: memref<2x16x288xf32, #tpu.memory_space<vmem>>, %arg10: memref<32x1024xbf16, #tpu.memory_space<vmem>>, %arg11: memref<16x1024xbf16, #tpu.memory_space<vmem>>) attributes {dimension_semantics = [#tpu.dimension_semantics<parallel>], iteration_bounds = array<i64: 2>, scalar_prefetch = 0 : i64, scratch_operands = 2 : i64, tpu.core_type = #tpu.core_type<tc>, window_params = [{transform_indices = @transform_0, window_bounds = array<i64: 32, 64>}, {pipeline_mode = #tpu.pipeline_mode<synchronous>, transform_indices = @transform_1, window_bounds = array<i64: 64, 288>}, {transform_indices = @transform_2, window_bounds = array<i64: 2, 16, 288>}, {pipeline_mode = #tpu.pipeline_mode<synchronous>, transform_indices = @transform_3, window_bounds = array<i64: 1, 800>}, {pipeline_mode = #tpu.pipeline_mode<synchronous>, transform_indices = @transform_4, window_bounds = array<i64: 16, 288>}, {pipeline_mode = #tpu.pipeline_mode<synchronous>, transform_indices = @transform_5, window_bounds = array<i64: 16, 1>}, {pipeline_mode = #tpu.pipeline_mode<synchronous>, transform_indices = @transform_6, window_bounds = array<i64: 16, 144>}, {pipeline_mode = #tpu.pipeline_mode<synchronous>, transform_indices = @transform_7, window_bounds = array<i64: 16, 1>}, {transform_indices = @transform_8, window_bounds = array<i64: 2, 16, 288>}]} {
    %cst = arith.constant 0.000000e+00 : bf16
    %0 = vector.broadcast %cst : bf16 to vector<32x128xbf16>
    %c0 = arith.constant 0 : index
    %c0_0 = arith.constant 0 : index
    %1 = vector.load %arg10[%c0, %c0_0] : memref<32x1024xbf16, #tpu.memory_space<vmem>>, vector<32x128xbf16>
    tpu.vector_store %arg10[%c0, %c0_0], %0 {strides = array<i32>} : memref<32x1024xbf16, #tpu.memory_space<vmem>>, vector<32x128xbf16>,
    %cst_1 = arith.constant 0.000000e+00 : bf16
    %2 = vector.broadcast %cst_1 : bf16 to vector<32x128xbf16>
    %c0_2 = arith.constant 0 : index
    %c384 = arith.constant 384 : index
    %3 = vector.load %arg10[%c0_2, %c384] : memref<32x1024xbf16, #tpu.memory_space<vmem>>, vector<32x128xbf16>
    tpu.vector_store %arg10[%c0_2, %c384], %2 {strides = array<i32>} : memref<32x1024xbf16, #tpu.memory_space<vmem>>, vector<32x128xbf16>,
    %cst_3 = arith.constant 0.000000e+00 : bf16
    %4 = vector.broadcast %cst_3 : bf16 to vector<16x128xbf16>
    %c0_4 = arith.constant 0 : index
    %c0_5 = arith.constant 0 : index
    %5 = vector.load %arg11[%c0_4, %c0_5] : memref<16x1024xbf16, #tpu.memory_space<vmem>>, vector<16x128xbf16>
    tpu.vector_store %arg11[%c0_4, %c0_5], %4 {strides = array<i32>} : memref<16x1024xbf16, #tpu.memory_space<vmem>>, vector<16x128xbf16>,
    %cst_6 = arith.constant 0.000000e+00 : bf16
    %6 = vector.broadcast %cst_6 : bf16 to vector<16x128xbf16>
    %c0_7 = arith.constant 0 : index
    %c384_8 = arith.constant 384 : index
    %7 = vector.load %arg11[%c0_7, %c384_8] : memref<16x1024xbf16, #tpu.memory_space<vmem>>, vector<16x128xbf16>
    tpu.vector_store %arg11[%c0_7, %c384_8], %6 {strides = array<i32>} : memref<16x1024xbf16, #tpu.memory_space<vmem>>, vector<16x128xbf16>,
    %cst_9 = arith.constant 0.000000e+00 : bf16
    %8 = vector.broadcast %cst_9 : bf16 to vector<32x128xbf16>
    %c0_10 = arith.constant 0 : index
    %c512 = arith.constant 512 : index
    %9 = vector.load %arg10[%c0_10, %c512] : memref<32x1024xbf16, #tpu.memory_space<vmem>>, vector<32x128xbf16>
    tpu.vector_store %arg10[%c0_10, %c512], %8 {strides = array<i32>} : memref<32x1024xbf16, #tpu.memory_space<vmem>>, vector<32x128xbf16>,
    %cst_11 = arith.constant 0.000000e+00 : bf16
    %10 = vector.broadcast %cst_11 : bf16 to vector<32x128xbf16>
    %c0_12 = arith.constant 0 : index
    %c896 = arith.constant 896 : index
    %11 = vector.load %arg10[%c0_12, %c896] : memref<32x1024xbf16, #tpu.memory_space<vmem>>, vector<32x128xbf16>
    tpu.vector_store %arg10[%c0_12, %c896], %10 {strides = array<i32>} : memref<32x1024xbf16, #tpu.memory_space<vmem>>, vector<32x128xbf16>,
    %cst_13 = arith.constant 0.000000e+00 : bf16
    %12 = vector.broadcast %cst_13 : bf16 to vector<16x128xbf16>
    %c0_14 = arith.constant 0 : index
    %c512_15 = arith.constant 512 : index
    %13 = vector.load %arg11[%c0_14, %c512_15] : memref<16x1024xbf16, #tpu.memory_space<vmem>>, vector<16x128xbf16>
    tpu.vector_store %arg11[%c0_14, %c512_15], %12 {strides = array<i32>} : memref<16x1024xbf16, #tpu.memory_space<vmem>>, vector<16x128xbf16>,
    %cst_16 = arith.constant 0.000000e+00 : bf16
    %14 = vector.broadcast %cst_16 : bf16 to vector<16x128xbf16>
    %c0_17 = arith.constant 0 : index
    %c896_18 = arith.constant 896 : index
    %15 = vector.load %arg11[%c0_17, %c896_18] : memref<16x1024xbf16, #tpu.memory_space<vmem>>, vector<16x128xbf16>
    tpu.vector_store %arg11[%c0_17, %c896_18], %14 {strides = array<i32>} : memref<16x1024xbf16, #tpu.memory_space<vmem>>, vector<16x128xbf16>,
    %c0_19 = arith.constant 0 : index
    %c0_20 = arith.constant 0 : index
    %16 = vector.load %arg1[%c0_19, %c0_20] : memref<32x64xf32, #tpu.memory_space<vmem>>, vector<32x64xf32>
    %c0_21 = arith.constant 0 : index
    %c0_22 = arith.constant 0 : index
    %17 = vector.load %arg2[%c0_21, %c0_22] : memref<64x288xf32, #tpu.memory_space<vmem>>, vector<64x288xf32>
    %cst_23 = arith.constant dense<0.000000e+00> : vector<32x288xf32>
    %18 = tpu.matmul %16, %17, %cst_23 {dimension_numbers = #tpu.dot_dimension_numbers<[1], [0], [0], [1], [0, 0, 1, 1], [], []>} : vector<32x64xf32>, vector<64x288xf32>, vector<32x288xf32> -> vector<32x288xf32>
    %19 = vector.extract_strided_slice %18 {offsets = [0, 0], sizes = [16, 288], strides = [1, 1]} : vector<32x288xf32> to vector<16x288xf32>
    %20 = arith.truncf %19 : vector<16x288xf32> to vector<16x288xbf16>
    %c0_24 = arith.constant 0 : index
    %c128 = arith.constant 128 : index
    %21 = vector.load %arg10[%c0_24, %c128] : memref<32x1024xbf16, #tpu.memory_space<vmem>>, vector<16x288xbf16>
    tpu.vector_store %arg10[%c0_24, %c128], %20 {strides = array<i32>} : memref<32x1024xbf16, #tpu.memory_space<vmem>>, vector<16x288xbf16>,
    %c0_25 = arith.constant 0 : index
    %c0_26 = arith.constant 0 : index
    %c0_27 = arith.constant 0 : index
    %22 = vector.load %arg3[%c0_25, %c0_26, %c0_27] : memref<2x16x288xbf16, #tpu.memory_space<vmem>>, vector<1x16x288xbf16>
    %23 = vector.shape_cast %22 : vector<1x16x288xbf16> to vector<16x288xbf16>
    %c16 = arith.constant 16 : index
    %c128_28 = arith.constant 128 : index
    %24 = vector.load %arg10[%c16, %c128_28] : memref<32x1024xbf16, #tpu.memory_space<vmem>>, vector<16x288xbf16>
    tpu.vector_store %arg10[%c16, %c128_28], %23 {strides = array<i32>} : memref<32x1024xbf16, #tpu.memory_space<vmem>>, vector<16x288xbf16>,
    %25 = vector.extract_strided_slice %18 {offsets = [16, 0], sizes = [16, 288], strides = [1, 1]} : vector<32x288xf32> to vector<16x288xf32>
    %26 = arith.truncf %25 : vector<16x288xf32> to vector<16x288xbf16>
    %c0_29 = arith.constant 0 : index
    %c640 = arith.constant 640 : index
    %27 = vector.load %arg10[%c0_29, %c640] : memref<32x1024xbf16, #tpu.memory_space<vmem>>, vector<16x288xbf16>
    tpu.vector_store %arg10[%c0_29, %c640], %26 {strides = array<i32>} : memref<32x1024xbf16, #tpu.memory_space<vmem>>, vector<16x288xbf16>,
    %c1 = arith.constant 1 : index
    %c0_30 = arith.constant 0 : index
    %c0_31 = arith.constant 0 : index
    %28 = vector.load %arg3[%c1, %c0_30, %c0_31] : memref<2x16x288xbf16, #tpu.memory_space<vmem>>, vector<1x16x288xbf16>
    %29 = vector.shape_cast %28 : vector<1x16x288xbf16> to vector<16x288xbf16>
    %c16_32 = arith.constant 16 : index
    %c640_33 = arith.constant 640 : index
    %30 = vector.load %arg10[%c16_32, %c640_33] : memref<32x1024xbf16, #tpu.memory_space<vmem>>, vector<16x288xbf16>
    tpu.vector_store %arg10[%c16_32, %c640_33], %29 {strides = array<i32>} : memref<32x1024xbf16, #tpu.memory_space<vmem>>, vector<16x288xbf16>,
    %c0_34 = arith.constant 0 : index
    %c0_35 = arith.constant 0 : index
    %31 = vector.load %arg10[%c0_34, %c0_35] : memref<32x1024xbf16, #tpu.memory_space<vmem>>, vector<32x1024xbf16>
    %32 = vector.extract_strided_slice %31 {offsets = [0, 109], sizes = [32, 800], strides = [1, 1]} : vector<32x1024xbf16> to vector<32x800xbf16>
    %33 = vector.extract_strided_slice %31 {offsets = [0, 110], sizes = [32, 800], strides = [1, 1]} : vector<32x1024xbf16> to vector<32x800xbf16>
    %34 = vector.extract_strided_slice %31 {offsets = [0, 111], sizes = [32, 800], strides = [1, 1]} : vector<32x1024xbf16> to vector<32x800xbf16>
    %35 = vector.extract_strided_slice %31 {offsets = [0, 127], sizes = [32, 800], strides = [1, 1]} : vector<32x1024xbf16> to vector<32x800xbf16>
    %36 = vector.extract_strided_slice %31 {offsets = [0, 128], sizes = [32, 800], strides = [1, 1]} : vector<32x1024xbf16> to vector<32x800xbf16>
    %37 = vector.extract_strided_slice %31 {offsets = [0, 129], sizes = [32, 800], strides = [1, 1]} : vector<32x1024xbf16> to vector<32x800xbf16>
    %38 = vector.extract_strided_slice %31 {offsets = [0, 145], sizes = [32, 800], strides = [1, 1]} : vector<32x1024xbf16> to vector<32x800xbf16>
    %39 = vector.extract_strided_slice %31 {offsets = [0, 146], sizes = [32, 800], strides = [1, 1]} : vector<32x1024xbf16> to vector<32x800xbf16>
    %40 = vector.extract_strided_slice %31 {offsets = [0, 147], sizes = [32, 800], strides = [1, 1]} : vector<32x1024xbf16> to vector<32x800xbf16>
    %41 = tpu.concatenate %32, %33, %34, %35, %36, %37, %38, %39, %40 in 0 : vector<32x800xbf16>, vector<32x800xbf16>, vector<32x800xbf16>, vector<32x800xbf16>, vector<32x800xbf16>, vector<32x800xbf16>, vector<32x800xbf16>, vector<32x800xbf16>, vector<32x800xbf16> -> vector<288x800xbf16>
    %c0_36 = arith.constant 0 : index
    %c0_37 = arith.constant 0 : index
    %42 = vector.load %arg5[%c0_36, %c0_37] : memref<16x288xbf16, #tpu.memory_space<vmem>>, vector<16x288xbf16>
    %cst_38 = arith.constant dense<0.000000e+00> : vector<16x800xf32>
    %43 = tpu.matmul %42, %41, %cst_38 {dimension_numbers = #tpu.dot_dimension_numbers<[1], [0], [0], [1], [0, 0, 1, 1], [], []>} : vector<16x288xbf16>, vector<288x800xbf16>, vector<16x800xf32> -> vector<16x800xf32>
    %c0_39 = arith.constant 0 : index
    %c0_40 = arith.constant 0 : index
    %44 = vector.load %arg6[%c0_39, %c0_40] : memref<16x1xf32, #tpu.memory_space<vmem>>, vector<16x1xf32>
    %45 = vector.broadcast %44 : vector<16x1xf32> to vector<16x800xf32>
    %46 = arith.addf %43, %45 : vector<16x800xf32>
    %cst_41 = arith.constant 0.000000e+00 : f32
    %47 = vector.broadcast %cst_41 : f32 to vector<16x800xf32>
    %48 = arith.maximumf %46, %47 : vector<16x800xf32>
    %c0_42 = arith.constant 0 : index
    %c0_43 = arith.constant 0 : index
    %49 = vector.load %arg4[%c0_42, %c0_43] : memref<1x800xf32, #tpu.memory_space<vmem>>, vector<1x800xf32>
    %50 = vector.broadcast %49 : vector<1x800xf32> to vector<16x800xf32>
    %51 = arith.mulf %48, %50 : vector<16x800xf32>
    %52 = arith.truncf %51 : vector<16x800xf32> to vector<16x800xbf16>
    %c0_44 = arith.constant 0 : index
    %c128_45 = arith.constant 128 : index
    %53 = vector.load %arg11[%c0_44, %c128_45] : memref<16x1024xbf16, #tpu.memory_space<vmem>>, vector<16x800xbf16>
    tpu.vector_store %arg11[%c0_44, %c128_45], %52 {strides = array<i32>} : memref<16x1024xbf16, #tpu.memory_space<vmem>>, vector<16x800xbf16>,
    %c0_46 = arith.constant 0 : index
    %c0_47 = arith.constant 0 : index
    %54 = vector.load %arg11[%c0_46, %c0_47] : memref<16x1024xbf16, #tpu.memory_space<vmem>>, vector<16x1024xbf16>
    %55 = vector.extract_strided_slice %54 {offsets = [0, 109], sizes = [16, 800], strides = [1, 1]} : vector<16x1024xbf16> to vector<16x800xbf16>
    %56 = vector.extract_strided_slice %54 {offsets = [0, 110], sizes = [16, 800], strides = [1, 1]} : vector<16x1024xbf16> to vector<16x800xbf16>
    %57 = vector.extract_strided_slice %54 {offsets = [0, 111], sizes = [16, 800], strides = [1, 1]} : vector<16x1024xbf16> to vector<16x800xbf16>
    %58 = vector.extract_strided_slice %54 {offsets = [0, 127], sizes = [16, 800], strides = [1, 1]} : vector<16x1024xbf16> to vector<16x800xbf16>
    %59 = vector.extract_strided_slice %54 {offsets = [0, 128], sizes = [16, 800], strides = [1, 1]} : vector<16x1024xbf16> to vector<16x800xbf16>
    %60 = vector.extract_strided_slice %54 {offsets = [0, 129], sizes = [16, 800], strides = [1, 1]} : vector<16x1024xbf16> to vector<16x800xbf16>
    %61 = vector.extract_strided_slice %54 {offsets = [0, 145], sizes = [16, 800], strides = [1, 1]} : vector<16x1024xbf16> to vector<16x800xbf16>
    %62 = vector.extract_strided_slice %54 {offsets = [0, 146], sizes = [16, 800], strides = [1, 1]} : vector<16x1024xbf16> to vector<16x800xbf16>
    %63 = vector.extract_strided_slice %54 {offsets = [0, 147], sizes = [16, 800], strides = [1, 1]} : vector<16x1024xbf16> to vector<16x800xbf16>
    %64 = tpu.concatenate %55, %56, %57, %58, %59, %60, %61, %62, %63 in 0 : vector<16x800xbf16>, vector<16x800xbf16>, vector<16x800xbf16>, vector<16x800xbf16>, vector<16x800xbf16>, vector<16x800xbf16>, vector<16x800xbf16>, vector<16x800xbf16>, vector<16x800xbf16> -> vector<144x800xbf16>
    %c0_48 = arith.constant 0 : index
    %c0_49 = arith.constant 0 : index
    %65 = vector.load %arg7[%c0_48, %c0_49] : memref<16x144xbf16, #tpu.memory_space<vmem>>, vector<16x144xbf16>
    %cst_50 = arith.constant dense<0.000000e+00> : vector<16x800xf32>
    %66 = tpu.matmul %65, %64, %cst_50 {dimension_numbers = #tpu.dot_dimension_numbers<[1], [0], [0], [1], [0, 0, 1, 1], [], []>} : vector<16x144xbf16>, vector<144x800xbf16>, vector<16x800xf32> -> vector<16x800xf32>
    %c0_51 = arith.constant 0 : index
    %c0_52 = arith.constant 0 : index
    %67 = vector.load %arg8[%c0_51, %c0_52] : memref<16x1xf32, #tpu.memory_space<vmem>>, vector<16x1xf32>
    %68 = vector.broadcast %67 : vector<16x1xf32> to vector<16x800xf32>
    %69 = arith.addf %66, %68 : vector<16x800xf32>
    %cst_53 = arith.constant 0.000000e+00 : f32
    %70 = vector.broadcast %cst_53 : f32 to vector<16x800xf32>
    %71 = arith.maximumf %69, %70 : vector<16x800xf32>
    %72 = vector.extract_strided_slice %71 {offsets = [0, 0], sizes = [16, 288], strides = [1, 1]} : vector<16x800xf32> to vector<16x288xf32>
    %c0_54 = arith.constant 0 : index
    %c0_55 = arith.constant 0 : index
    %c0_56 = arith.constant 0 : index
    %73 = vector.load %arg9[%c0_54, %c0_55, %c0_56] : memref<2x16x288xf32, #tpu.memory_space<vmem>>, vector<1x16x288xf32>
    %74 = vector.shape_cast %73 : vector<1x16x288xf32> to vector<16x288xf32>
    %75 = vector.shape_cast %72 : vector<16x288xf32> to vector<1x16x288xf32>
    tpu.vector_store %arg9[%c0_54, %c0_55, %c0_56], %75 {strides = array<i32>} : memref<2x16x288xf32, #tpu.memory_space<vmem>>, vector<1x16x288xf32>,
    %76 = vector.extract_strided_slice %71 {offsets = [0, 512], sizes = [16, 288], strides = [1, 1]} : vector<16x800xf32> to vector<16x288xf32>
    %c1_57 = arith.constant 1 : index
    %c0_58 = arith.constant 0 : index
    %c0_59 = arith.constant 0 : index
    %77 = vector.load %arg9[%c1_57, %c0_58, %c0_59] : memref<2x16x288xf32, #tpu.memory_space<vmem>>, vector<1x16x288xf32>
    %78 = vector.shape_cast %77 : vector<1x16x288xf32> to vector<16x288xf32>
    %79 = vector.shape_cast %76 : vector<16x288xf32> to vector<1x16x288xf32>
    tpu.vector_store %arg9[%c1_57, %c0_58, %c0_59], %79 {strides = array<i32>} : memref<2x16x288xf32, #tpu.memory_space<vmem>>, vector<1x16x288xf32>,
    return
  }
  func.func @transform_0(%arg0: i32) -> (i32, i32) {
    %c0_i32 = arith.constant 0 : i32
    %c0_i32_0 = arith.constant 0 : i32
    return %arg0, %c0_i32 : i32, i32
  }
  func.func @transform_1(%arg0: i32) -> (i32, i32) {
    %c0_i32 = arith.constant 0 : i32
    %c0_i32_0 = arith.constant 0 : i32
    %c0_i32_1 = arith.constant 0 : i32
    return %c0_i32, %c0_i32_0 : i32, i32
  }
  func.func @transform_2(%arg0: i32) -> (i32, i32, i32) {
    %c0_i32 = arith.constant 0 : i32
    %c0_i32_0 = arith.constant 0 : i32
    %c0_i32_1 = arith.constant 0 : i32
    return %arg0, %c0_i32, %c0_i32_0 : i32, i32, i32
  }
  func.func @transform_3(%arg0: i32) -> (i32, i32) {
    %c0_i32 = arith.constant 0 : i32
    %c0_i32_0 = arith.constant 0 : i32
    %c0_i32_1 = arith.constant 0 : i32
    return %c0_i32, %c0_i32_0 : i32, i32
  }
  func.func @transform_4(%arg0: i32) -> (i32, i32) {
    %c0_i32 = arith.constant 0 : i32
    %c0_i32_0 = arith.constant 0 : i32
    %c0_i32_1 = arith.constant 0 : i32
    return %c0_i32, %c0_i32_0 : i32, i32
  }
  func.func @transform_5(%arg0: i32) -> (i32, i32) {
    %c0_i32 = arith.constant 0 : i32
    %c0_i32_0 = arith.constant 0 : i32
    %c0_i32_1 = arith.constant 0 : i32
    return %c0_i32, %c0_i32_0 : i32, i32
  }
  func.func @transform_6(%arg0: i32) -> (i32, i32) {
    %c0_i32 = arith.constant 0 : i32
    %c0_i32_0 = arith.constant 0 : i32
    %c0_i32_1 = arith.constant 0 : i32
    return %c0_i32, %c0_i32_0 : i32, i32
  }
  func.func @transform_7(%arg0: i32) -> (i32, i32) {
    %c0_i32 = arith.constant 0 : i32
    %c0_i32_0 = arith.constant 0 : i32
    %c0_i32_1 = arith.constant 0 : i32
    return %c0_i32, %c0_i32_0 : i32, i32
  }
  func.func @transform_8(%arg0: i32) -> (i32, i32, i32) {
    %c0_i32 = arith.constant 0 : i32
    %c0_i32_0 = arith.constant 0 : i32
    %c0_i32_1 = arith.constant 0 : i32
    return %arg0, %c0_i32, %c0_i32_0 : i32, i32, i32
  }
}

</mosaic_0001>

<bundles_post_ra>
// kernel: upblock_forward.1
= control target key start
LH: loop header
LB: loop body
LE: loop exit
PB: predicated region body
PF: predicated region fallthrough
CT: control target
= control target key end

     0   :  { %s3086_s27 = smov 0   ;;  %s5143_s0 = inlined_call_operand.vmem [shape: f32[64,64], index: 0, kind: input, shape index: {}]   ;;  %s5144_s1 = inlined_call_operand.vmem [shape: f32[64,288], index: 1, kind: input, shape index: {}]   ;;  %s5145_s2 = inlined_call_operand.vmem [shape: bf16[4,16,288], index: 2, kind: input, shape index: {}]   ;;  %s5146_s3 = inlined_call_operand.vmem [shape: f32[1,800], index: 3, kind: input, shape index: {}]   ;;  %s5147_s4 = inlined_call_operand.vmem [shape: bf16[16,288], index: 4, kind: input, shape index: {}]   ;;  %s5148_s5 = inlined_call_operand.vmem [shape: f32[16,1], index: 5, kind: input, shape index: {}]   ;;  %s5149_s6 = inlined_call_operand.vmem [shape: bf16[16,144], index: 6, kind: input, shape index: {}]   ;;  %s5150_s7 = inlined_call_operand.vmem [shape: f32[16,1], index: 7, kind: input, shape index: {}]   ;;  %s5151_s8 = inlined_call_operand.vmem [shape: f32[4,16,288], index: 8, kind: output, shape index: {}]  }
   0x1 LB: > { %s2741_s28 = sadd.s32 4294967295, %s3027_s27   ;;  %p2745_p0 = scmp.ge.s32.totalorder %s3027_s27, 1  ;;  %s3027_s27 = sphi %s3086_s27, %s18_s27  }
   0x2   : > { %p275_p1 = scmp.lt.s32.totalorder %s3027_s27, 3 }
   0x4   : > { %p276_p2 = pnand %p2745_p0, %p275_p1 }
   0x6   : > { %279 = sbr.rel (%p276_p2) target bundleno = 1520 (0x5f0), region = 52 }
   0xd   : > { %v354_v0 = vld [vmem:[%s5144_s1 + $0x8] sm:$0xff]  ;;  %v357_v1 = vld [vmem:[%s5144_s1 + $0x20] sm:$0xff]  ;;  %v356_v4 = vld [vmem:[%s5144_s1 + $0x18] sm:$0xff]  ;;  %v5154_v7 = vmov 0   ;;  %s2748_s19 = sshll.u32 %s2741_s28, 1  ;;  %s2746_s20 = sshll.u32 %s2741_s28, 2 }
   0xe   : > { %v353_v2 = vld [vmem:[%s5144_s1] sm:$0xff]  ;;  %v2858_v3 = vpack.c.bf16 %v357_v1, %v354_v0  ;;  %v360_v5 = vld [vmem:[%s5144_s1 + $0x38] sm:$0xff]  ;;  %v363_v6 = vld [vmem:[%s5144_s1 + $0x50] sm:$0xff]  ;;  %337 = vst [vmem:[#allocation2] sm:$0xff] %v5154_v7  ;;  %3002 = vset.pattern.permute.xlu0 %v5154_v7  ;;  %3001 = vset.pattern.permute.xlu1 %v5154_v7  ;;  %v5152_v13 = vmov 0.0   ;;  %p323_p3 = scmp.lt.s32.totalorder %s2748_s19, 3 }
   0xf   : > { %339 = vst [vmem:[#allocation2 + $0x18] sm:$0xff] %v5154_v7  ;;  %340 = vst [vmem:[#allocation2 + $0x58] sm:$0xff] %v5154_v7  ;;  %v2860_v8 = vpack.c.bf16 %v356_v4, %v353_v2  ;;  %v2862_v9 = vpack.c.bf16 %v363_v6, %v360_v5  ;;  %v359_v10 = vld [vmem:[%s5144_s1 + $0x30] sm:$0xff]  ;;  %v362_v11 = vld [vmem:[%s5144_s1 + $0x48] sm:$0xff]  ;;  %454 = vmatprep.mubr.f32.mxu1 %v5152_v13  ;;  %p317_p4 = scmp.lt.s32.totalorder %s2746_s20, 7  ;;  %s3031_s30 = smov 126  }
  0x10   : > { %345 = vst [vmem:[#allocation2 + $0x38] sm:$0xff] %v5154_v7  ;;  %346 = vst [vmem:[#allocation2 + $0x78] sm:$0xff] %v5154_v7  ;;  %v366_v12 = vld [vmem:[%s5144_s1 + $0x68] sm:$0xff]  ;;  %2859 = vmatprep.subr.bf16.mxu1 %v2858_v3  ;;  %v369_v14 = vld [vmem:[%s5144_s1 + $0x80] sm:$0xff]  ;;  %2942 = vrot.lane.b32.xlu0 %v5154_v7, %s3031_s30  ;;  %v2864_v15 = vpack.c.bf16 %v362_v11, %v359_v10  ;;  %s3032_s9 = smov 127   ;;  %s5263_s19 = smov (!%p323_p3, %s2748_s19), 3 }
  0x11   : > { %348 = vst [vmem:[#allocation3 + $0x38] sm:$0xff] %v5154_v7  ;;  %2861 = vmatpush1.bf16.msra.mxu1 %v2860_v8  ;;  %2937 = vrot.lane.b32.xlu1 %v5154_v7, %s3032_s9  ;;  %v2866_v16 = vpack.c.bf16 %v369_v14, %v366_v12  ;;  %v365_v17 = vld [vmem:[%s5144_s1 + $0x60] sm:$0xff]  ;;  %v368_v18 = vld [vmem:[%s5144_s1 + $0x78] sm:$0xff]  ;;  %s5265_s20 = smov (!%p317_p4, %s2746_s20), 7  ;;  %v375_v20 = vld [vmem:[%s5144_s1 + $0xb0] sm:$0xff]  ;;  %s2914_s18 = smul.u32 24, %s5263_s19 }
  0x12   : > { %2863 = vmatprep.subr.bf16.mxu1 %v2862_v9  ;;  %v372_v19 = vld [vmem:[%s5144_s1 + $0x98] sm:$0xff]  ;;  %v371_v21 = vld [vmem:[%s5144_s1 + $0x90] sm:$0xff]  ;;  %v374_v22 = vld [vmem:[%s5144_s1 + $0xa8] sm:$0xff]  ;;  %v2868_v23 = vpack.c.bf16 %v368_v18, %v365_v17  ;;  %vm569_vm0 = vcmask 261120   ;;  %s2747_s11 = sshll.u32 %s5265_s20, 3  ;;  %vm377_vm1 = vcmask 523264  }
  0x13   : > { %s327_s28 = scalar_lea.vmem %s5145_s2, %s2914_s18  ;;  %v355_v24 = vld [vmem:[%s5144_s1 + $0x10] sm:$0xff]  ;;  %v2870_v25 = vpack.c.bf16 %v375_v20, %v372_v19  ;;  %v358_v28 = vld [vmem:[%s5144_s1 + $0x28] sm:$0xff]  ;;  %v2872_v30 = vpack.c.bf16 %v374_v22, %v371_v21  ;;  %s3179_s16 = scalar_lea.vmem %s5143_s0, %s2747_s11  ;;  %v361_v33 = vld [vmem:[%s5144_s1 + $0x40] sm:$0xff]  ;;  %vm688_vm2 = vcmask 1039360   ;;  %vm735_vm3 = vcmask 1031168  }
  0x14   : > { %v3165_v26 = vld [vmem:[%s327_s28 + $0x4] ss:$12 sps:$4 sm:$0xff]   ;;  %v3167_v27 = vld [vmem:[%s327_s28] ss:$12 sps:$4 sm:$0xff]   ;;  %v3006_v29 = vld [vmem:[%s327_s28 + $0x8] ss:$12 sps:$4 sm:$0xff]   ;;  %v2874_v32 = vpack.c.bf16 %v358_v28, %v355_v24 }
  0x15   : > { %2865 = vmatpush1.bf16.msra.mxu1 %v2864_v15  ;;  %676 = vrot.lane.b32.xlu1 %v3165_v26, %s3032_s9  ;;  %593 = vst.msk [vmem:[#allocation2 + $0x58] sm:$0xff] %vm569_vm0, %v3006_v29  ;;  %v3007_v31 = vld [vmem:[%s327_s28 + $0x20] ss:$12 sps:$4 sm:$0xff]   ;;  %v364_v34 = vld [vmem:[%s5144_s1 + $0x58] sm:$0xff]  ;;  %v367_v39 = vld [vmem:[%s5144_s1 + $0x70] sm:$0xff]  ;;  %s3033_s11 = smov 110  }
  0x16   : > { %2867 = vmatprep.subr.bf16.mxu1 %v2866_v16  ;;  %674 = vrot.lane.b32.xlu0 %v3167_v27, %s3032_s9  ;;  %v3188_v35 = vld [vmem:[%s327_s28 + $0x18] ss:$12 sps:$4 sm:$0xff]   ;;  %v3190_v36 = vld [vmem:[%s327_s28 + $0x1c] ss:$12 sps:$4 sm:$0xff]   ;;  %623 = vst.msk [vmem:[#allocation2 + $0x78] sm:$0xff] %vm569_vm0, %v3007_v31  ;;  %v2878_v38 = vpack.c.bf16 %v364_v34, %v361_v33  ;;  %v351_v46 = vld [vmem:[%s3179_s16 + $0x10] sm:$0xff] }
  0x17   : > { %v349_v37 = vld [vmem:[%s3179_s16] sm:$0xff]  ;;  %v370_v40 = vld [vmem:[%s5144_s1 + $0x88] sm:$0xff]  ;;  %v376_v45 = vld [vmem:[%s5144_s1 + $0xb8] sm:$0xff]  ;;  %s3034_s12 = smov 109   ;;  %s3035_s13 = smov 108   ;;  %vm782_vm4 = vcmask 900096  }
  0x18   : > { %v350_v42 = vld [vmem:[%s3179_s16 + $0x8] sm:$0xff]  ;;  %v2882_v43 = vpack.c.bf16 %v370_v40, %v367_v39  ;;  %v373_v44 = vld [vmem:[%s5144_s1 + $0xa0] sm:$0xff]  ;;  %v352_v48 = vld [vmem:[%s3179_s16 + $0x18] sm:$0xff]  ;;  %s3036_s14 = smov 92   ;;  %s3037_s15 = smov 91   ;;  %vm825_vm5 = vcmask 891904  }
  0x19   : > { %2869 = vmatpush1.bf16.msra.mxu1 %v2868_v23  ;;  %721 = vrot.lane.b32.xlu1 %v3167_v27, %s3031_s30  ;;  %v2886_v47 = vpack.c.bf16 %v376_v45, %v373_v44  ;;  %s3038_s16 = smov 19   ;;  %s3039_s20 = smov 90   ;;  %vm866_vm6 = vcmask 883712   ;;  %vm907_vm7 = vcmask 752640   ;;  %vm948_vm8 = vcmask 744448  }
  0x1a   : > { %2871 = vmatprep.subr.bf16.mxu1 %v2870_v25  ;;  %vm989_vm9 = vcmask 736256   ;;  %vm1321_vm10 = vcmask 154624   ;;  %vm3040_vm11 = vmmov 0   ;;  %vm2474_vm12 = vcmask 130048  }
  0x1c   : > { %v3204_v41 = vld [vmem:[#allocation2 + $0x58] sm:$0xff] }
  0x1d   : > { %2873 = vmatpush1.bf16.msra.mxu1 %v2872_v30  ;;  %678 = vrot.lane.b32.xlu0 %v3204_v41, %s3032_s9  ;;  %v3268_v49 = vld [vmem:[#allocation2 + $0x78] sm:$0xff] }
  0x1e   : > { %2875 = vmatprep.subr.bf16.mxu1 %v2874_v32  ;;  %725 = vrot.lane.b32.xlu1 %v3204_v41, %s3031_s30 }
  0x20   : > { %2752 = vmatmul.mubr.msk.f32.vlgmr.msra.gmra.mrb[0].mxu1 %vm377_vm1, %v349_v37 }
  0x21   : > { %460 = vmatprep.mubr.f32.mxu1 %v5152_v13  ;;  %2877 = vmatpush3.bf16.msra.mxu1 %v2874_v32 }
  0x22   : > { %2879 = vmatprep.subr.bf16.mxu1 %v2878_v38  ;;  %723 = vrot.lane.b32.xlu0 %v3165_v26, %s3031_s30 }
  0x23   : > { %2947 = vrot.lane.b32.xlu1 %v5154_v7, %s3033_s11 }
  0x24   : > { %2753 = vmatmul.mubr.msk.f32.gmra.mrb[2].mxu1 %vm377_vm1, %v350_v42 }
  0x25   : > { %466 = vmatprep.mubr.f32.mxu1 %v5152_v13  ;;  %2881 = vmatpush3.bf16.msra.mxu1 %v2878_v38 }
  0x26   : > { %2883 = vmatprep.subr.bf16.mxu1 %v2882_v43  ;;  %768 = vrot.lane.b32.xlu0 %v3167_v27, %s3033_s11 }
  0x27   : > { %770 = vrot.lane.b32.xlu1 %v3165_v26, %s3033_s11 }
  0x28   : > { %2754 = vmatmul.mubr.msk.f32.gmra.mrb[4].mxu1 %vm377_vm1, %v351_v46 }
  0x29   : > { %472 = vmatprep.mubr.f32.mxu1 %v5152_v13  ;;  %2885 = vmatpush3.bf16.msra.mxu1 %v2882_v43 }
  0x2a   : > { %2887 = vmatprep.subr.bf16.mxu1 %v2886_v47  ;;  %772 = vrot.lane.b32.xlu0 %v3204_v41, %s3033_s11 }
  0x2b   : > { %813 = vrot.lane.b32.xlu1 %v3165_v26, %s3034_s12 }
  0x2c   : > { %2755 = vmatmul.mubr.msk.f32.gmra.mrb[6].mxu1 %vm377_vm1, %v352_v48 }
  0x2d   : > { %2889 = vmatpush3.bf16.msra.mxu1 %v2886_v47  ;;  %2844 = vmatprep.mubr.msk.f32.mxu1 %vm377_vm1, %v349_v37 }
  0x2e   : > { %811 = vrot.lane.b32.xlu0 %v3167_v27, %s3034_s12 }
  0x2f   : > { %854 = vrot.lane.b32.xlu1 %v3165_v26, %s3035_s13 }
  0x30   : > { %2845 = vmatmul.mubr.msk.f32.vlgmr.msra.gmra.mrb[8].mxu1 %vm377_vm1, %v350_v42 }
  0x31   : > { %2847 = vmatprep.mubr.msk.f32.mxu1 %vm377_vm1, %v351_v46 }
  0x32   : > { %815 = vrot.lane.b32.xlu0 %v3204_v41, %s3034_s12 }
  0x33   : > { %895 = vrot.lane.b32.xlu1 %v3165_v26, %s3036_s14 }
  0x34   : > { %2848 = vmatmul.mubr.msk.f32.gmra.mrb[10].mxu1 %vm377_vm1, %v352_v48 }
  0x36   : > { %852 = vrot.lane.b32.xlu0 %v3167_v27, %s3035_s13 }
  0x37   : > { %936 = vrot.lane.b32.xlu1 %v3165_v26, %s3037_s15 }
  0x3a   : > { %856 = vrot.lane.b32.xlu0 %v3204_v41, %s3035_s13 }
  0x3b   : > { %2952 = vrot.lane.b32.xlu1 %v5154_v7, %s3038_s16 }
  0x3e   : > { %893 = vrot.lane.b32.xlu0 %v3167_v27, %s3036_s14 }
  0x3f   : > { %1053 = vrot.lane.b32.xlu1 %v3165_v26, %s3038_s16 }
  0x42   : > { %897 = vrot.lane.b32.xlu0 %v3204_v41, %s3036_s14 }
  0x43   : > { %977 = vrot.lane.b32.xlu1 %v3165_v26, %s3039_s20 }
  0x46   : > { %934 = vrot.lane.b32.xlu0 %v3167_v27, %s3037_s15 }
  0x47   : > { %2957 = vrot.lane.b32.xlu1 %v5154_v7, %s3032_s9 }
  0x4a   : > { %938 = vrot.lane.b32.xlu0 %v3204_v41, %s3037_s15 }
  0x4b   : > { %686 = vrot.lane.b32.xlu1 %v3268_v49, %s3032_s9 }
  0x4e   : > { %1051 = vrot.lane.b32.xlu0 %v3167_v27, %s3038_s16 }
  0x4f   : > { %729 = vrot.lane.b32.xlu1 %v3188_v35, %s3031_s30 }
  0x52   : > { %975 = vrot.lane.b32.xlu0 %v3167_v27, %s3039_s20 }
  0x53   : > { %731 = vrot.lane.b32.xlu1 %v3190_v36, %s3031_s30 }
  0x56   : > { %979 = vrot.lane.b32.xlu0 %v3204_v41, %s3039_s20 }
  0x57   : > { %2967 = vrot.lane.b32.xlu1 %v5154_v7, %s3033_s11 }
  0x5a   : > { %682 = vrot.lane.b32.xlu0 %v3188_v35, %s3032_s9 }
  0x5b   : > { %780 = vrot.lane.b32.xlu1 %v3268_v49, %s3033_s11 }
  0x5e   : > { %684 = vrot.lane.b32.xlu0 %v3190_v36, %s3032_s9 }
  0x5f   : > { %819 = vrot.lane.b32.xlu1 %v3188_v35, %s3034_s12 }
  0x62   : > { %2962 = vrot.lane.b32.xlu0 %v5154_v7, %s3031_s30 }
  0x63   : > { %821 = vrot.lane.b32.xlu1 %v3190_v36, %s3034_s12 }
  0x66   : > { %733 = vrot.lane.b32.xlu0 %v3268_v49, %s3031_s30 }
  0x67   : > { %2977 = vrot.lane.b32.xlu1 %v5154_v7, %s3035_s13 }
  0x6a   : > { %776 = vrot.lane.b32.xlu0 %v3188_v35, %s3033_s11 }
  0x6e   : > { %778 = vrot.lane.b32.xlu0 %v3190_v36, %s3033_s11 }
  0x72   : > { %2972 = vrot.lane.b32.xlu0 %v5154_v7, %s3034_s12 }
  0x76   : > { %823 = vrot.lane.b32.xlu0 %v3268_v49, %s3034_s12 }
  0x82   : > { %v3310_v50 = vpop.permute.xlu0 %2942 }
  0x83   : > { %v3314_v53 = vpop.permute.xlu1 %2937  ;;  %v2945_v15 = vunpack.i.h.bf16 %v3310_v50 }
  0x84   : > { %v2940_v5 = vunpack.i.h.bf16 %v3314_v53 }
  0x87   : > { %v677_v55 = vpop.permute.xlu1 %676 }
  0x88   : > { %v675_v51 = vpop.permute.xlu0 %674 }
  0x89   : > { %v697_v9 = vsel %vm688_vm2, %v675_v51, %v677_v55  ;;  %v696_v12 = vsel %vm688_vm2, %v2940_v5, %v675_v51 }
  0x8b   : > { %v722_v58 = vpop.permute.xlu1 %721 }
  0x8c   : > { %v743_v19 = vsel %vm735_vm3, %v2945_v15, %v722_v58 }
  0x8f   : > { %v3312_v52 = vpop.permute.xlu0 %678 }
  0x90   : > { %v3319_v60 = vpop.permute.xlu1 %725  ;;  %v698_v1 = vsel %vm688_vm2, %v677_v55, %v3312_v52 }
  0x94   : > { %v724_v54 = vpop.permute.xlu0 %723 }
  0x95   : > { %v3323_v63 = vpop.permute.xlu1 %2947  ;;  %v745_v4 = vsel %vm735_vm3, %v724_v54, %v3319_v60  ;;  %v744_v17 = vsel %vm735_vm3, %v722_v58, %v724_v54 }
  0x96   : > { %v2950_v6 = vunpack.i.h.bf16 %v3323_v63 }
  0x98   : > { %v769_v56 = vpop.permute.xlu0 %768 }
  0x99   : > { %v771_v2 = vpop.permute.xlu1 %770  ;;  %v790_v11 = vsel %vm782_vm4, %v2950_v6, %v769_v56 }
  0x9a   : > { %v791_v8 = vsel %vm782_vm4, %v769_v56, %v771_v2 }
  0x9c   : > { %v3316_v57 = vpop.permute.xlu0 %772 }
  0x9d   : > { %v814_v10 = vpop.permute.xlu1 %813  ;;  %v792_v23 = vsel %vm782_vm4, %v771_v2, %v3316_v57 }
  0xa0   : > { %v812_v59 = vpop.permute.xlu0 %811 }
  0xa1   : > { %1177 = vrot.lane.b32.xlu1 %v812_v59, %s3038_s16  ;;  %v855_v14 = vpop.permute.xlu1 %854  ;;  %v832_v24 = vsel %vm825_vm5, %v812_v59, %v814_v10 }
  0xa4   : > { %v3321_v61 = vpop.permute.xlu0 %815 }
  0xa5   : > { %v833_v16 = vsel %vm825_vm5, %v814_v10, %v3321_v61  ;;  %v896_v20 = vpop.permute.xlu1 %895 }
  0xa8   : > { %v853_v62 = vpop.permute.xlu0 %852 }
  0xa9   : > { %1209 = vrot.lane.b32.xlu0 %v853_v62, %s3038_s16  ;;  %v873_v18 = vsel %vm866_vm6, %v853_v62, %v855_v14  ;;  %v937_v27 = vpop.permute.xlu1 %936 }
  0xac   : > { %v3326_v0 = vpop.permute.xlu0 %856 }
  0xad   : > { %1085 = vrot.lane.b32.xlu0 %v698_v1, %s3038_s16  ;;  %v874_v25 = vsel %vm866_vm6, %v855_v14, %v3326_v0  ;;  %v3379_v31 = vpop.permute.xlu1 %2952 }
  0xb0   : > { %v894_v3 = vpop.permute.xlu0 %893 }
  0xb1   : > { %1117 = vrot.lane.b32.xlu0 %v745_v4, %s3038_s16  ;;  %1241 = vrot.lane.b32.xlu1 %v894_v3, %s3038_s16  ;;  %v914_v28 = vsel %vm907_vm7, %v894_v3, %v896_v20  ;;  %v3390_v34 = vpop.permute.xlu1 %1053 }
  0xb4   : > { %v3353_v21 = vpop.permute.xlu0 %897 }
  0xb5   : > { %1147 = vrot.lane.b32.xlu0 %v791_v8, %s3038_s16  ;;  %1083 = vrot.lane.b32.xlu1 %v697_v9, %s3038_s16  ;;  %v915_v22 = vsel %vm907_vm7, %v896_v20, %v3353_v21  ;;  %v978_v38 = vpop.permute.xlu1 %977 }
  0xb8   : > { %v935_v26 = vpop.permute.xlu0 %934 }
  0xb9   : > { %1145 = vrot.lane.b32.xlu0 %v790_v11, %s3038_s16  ;;  %1081 = vrot.lane.b32.xlu1 %v696_v12, %s3038_s16  ;;  %v955_v29 = vsel %vm948_vm8, %v935_v26, %v937_v27  ;;  %v3411_v43 = vpop.permute.xlu1 %2957 }
  0xbc   : > { %v3377_v30 = vpop.permute.xlu0 %938 }
  0xbd   : > { %1181 = vrot.lane.b32.xlu0 %v833_v16, %s3038_s16  ;;  %1115 = vrot.lane.b32.xlu1 %v744_v17, %s3038_s16  ;;  %5185 = vst [vmem:[#allocation4_spill] sm:$0xff] %v3377_v30  ;;  %v956_v32 = vsel %vm948_vm8, %v937_v27, %v3377_v30  ;;  %v3418_v47 = vpop.permute.xlu1 %686 }
  0xbe   : > { %5187 = vst [vmem:[#allocation6_spill] sm:$0xff] %v3418_v47 }
  0xc0   : > { %v3386_v33 = vpop.permute.xlu0 %1051 }
  0xc1   : > { %1211 = vrot.lane.b32.xlu0 %v873_v18, %s3038_s16  ;;  %1113 = vrot.lane.b32.xlu1 %v743_v19, %s3038_s16  ;;  %v3424_v58 = vpop.permute.xlu1 %729 }
  0xc4   : > { %v976_v37 = vpop.permute.xlu0 %975 }
  0xc5   : > { %1149 = vrot.lane.b32.xlu1 %v792_v23, %s3038_s16  ;;  %1245 = vrot.lane.b32.xlu0 %v915_v22, %s3038_s16  ;;  %v996_v39 = vsel %vm989_vm9, %v976_v37, %v978_v38  ;;  %v3432_v4 = vpop.permute.xlu1 %731 }
  0xc8   : > { %v3401_v40 = vpop.permute.xlu0 %979 }
  0xc9   : > { %1179 = vrot.lane.b32.xlu1 %v832_v24, %s3038_s16  ;;  %860 = vrot.lane.b32.xlu0 %v3188_v35, %s3035_s13  ;;  %5186 = vst [vmem:[#allocation5_spill] sm:$0xff] %v3401_v40  ;;  %v997_v42 = vsel %vm989_vm9, %v978_v38, %v3401_v40  ;;  %v3442_v11 = vpop.permute.xlu1 %2967 }
  0xcc   : > { %v3413_v44 = vpop.permute.xlu0 %682 }
  0xcd   : > { %1213 = vrot.lane.b32.xlu1 %v874_v25, %s3038_s16  ;;  %862 = vrot.lane.b32.xlu0 %v3190_v36, %s3035_s13  ;;  %v3450_v17 = vpop.permute.xlu1 %780 }
  0xd0   : > { %v3420_v48 = vpop.permute.xlu0 %684 }
  0xd1   : > { %1243 = vrot.lane.b32.xlu1 %v914_v28, %s3038_s16  ;;  %2982 = vrot.lane.b32.xlu0 %v5154_v7, %s3036_s14  ;;  %v3458_v19 = vpop.permute.xlu1 %819 }
  0xd4   : > { %v3426_v62 = vpop.permute.xlu0 %2962 }
  0xd5   : > { %864 = vrot.lane.b32.xlu1 %v3268_v49, %s3035_s13  ;;  %1275 = vrot.lane.b32.xlu0 %v955_v29, %s3038_s16  ;;  %v3464_v22 = vpop.permute.xlu1 %821 }
  0xd8   : > { %v3438_v6 = vpop.permute.xlu0 %733 }
  0xd9   : > { %1273 = vrot.lane.b32.xlu0 %v935_v26, %s3038_s16  ;;  %1277 = vrot.lane.b32.xlu1 %v956_v32, %s3038_s16  ;;  %5188 = vst [vmem:[#allocation7_spill] sm:$0xff] %v3438_v6  ;;  %v3474_v24 = vpop.permute.xlu1 %2977 }
  0xdc   : > { %v3445_v15 = vpop.permute.xlu0 %776 }
  0xdd   : > { %903 = vrot.lane.b32.xlu0 %v3190_v36, %s3036_s14  ;;  %901 = vrot.lane.b32.xlu1 %v3188_v35, %s3036_s14 }
  0xe0   : > { %v3454_v18 = vpop.permute.xlu0 %778 }
  0xe1   : > { %2987 = vrot.lane.b32.xlu0 %v5154_v7, %s3037_s15  ;;  %905 = vrot.lane.b32.xlu1 %v3268_v49, %s3036_s14 }
  0xe4   : > { %v3460_v20 = vpop.permute.xlu0 %2972 }
  0xe5   : > { %1307 = vrot.lane.b32.xlu1 %v996_v39, %s3038_s16  ;;  %2992 = vrot.lane.b32.xlu0 %v5154_v7, %s3038_s16 }
  0xe8   : > { %v3466_v23 = vpop.permute.xlu0 %823 }
  0xe9   : > { %942 = vrot.lane.b32.xlu1 %v3188_v35, %s3037_s15  ;;  %1309 = vrot.lane.b32.xlu0 %v997_v42, %s3038_s16 }
  0xed   : > { %1055 = vrot.lane.b32.xlu1 %v3204_v41, %s3038_s16  ;;  %1305 = vrot.lane.b32.xlu0 %v976_v37, %s3038_s16 }
  0xf3   : > { %v456_v45 = vpop.f32.mrb[0].mxu1 }
  0xf4   : > { %v458_v46 = vpop.f32.mrb[1].mxu1 }
  0xf7   : > { %v462_v51 = vpop.f32.mrb[2].mxu1 }
  0xf8   : > { %v564_v54 = vpack.c.bf16 %v462_v51, %v456_v45  ;;  %v464_v55 = vpop.f32.mrb[3].mxu1 }
  0xf9   : > { %v565_v56 = vpack.c.bf16 %v464_v55, %v458_v46 }
  0xfa   : > { %705 = vrot.lane.b32.xlu1 %v564_v54, %s3031_s30  ;;  %658 = vrot.lane.b32.xlu0 %v564_v54, %s3032_s9 }
  0xfb   : > { %v468_v59 = vpop.f32.mrb[4].mxu1 }
  0xfc   : > { %v470_v41 = vpop.f32.mrb[5].mxu1 }
  0xfe   : > { %797 = vrot.lane.b32.xlu1 %v564_v54, %s3034_s12  ;;  %752 = vrot.lane.b32.xlu0 %v564_v54, %s3033_s11 }
  0xff   : > { %v474_v1 = vpop.f32.mrb[6].mxu1 }
 0x100   : > { %v3430_v2 = vpack.c.bf16 %v474_v1, %v468_v59  ;;  %v476_v3 = vpop.f32.mrb[7].mxu1 }
 0x101   : > { %v3434_v5 = vpack.c.bf16 %v476_v3, %v470_v41 }
 0x102   : > { %838 = vrot.lane.b32.xlu1 %v564_v54, %s3035_s13  ;;  %1035 = vrot.lane.b32.xlu0 %v564_v54, %s3038_s16 }
 0x103   : > { %v2846_v8 = vpop.f32.mrb[8].mxu1 }
 0x104   : > { %v545_v9 = vpop.f32.mrb[9].mxu1 }
 0x105   : > { %v566_v10 = vpack.c.bf16 %v2846_v8, %v545_v9 }
 0x106   : > { %879 = vrot.lane.b32.xlu1 %v564_v54, %s3036_s14  ;;  %961 = vrot.lane.b32.xlu0 %v564_v54, %s3039_s20 }
 0x107   : > { %570 = vst.msk [vmem:[#allocation2 + $0x18] sm:$0xff] %vm569_vm0, %v566_v10  ;;  %v2849_v12 = vpop.f32.mrb[10].mxu1 }
 0x108   : > { %v555_v14 = vpop.f32.mrb[11].mxu1 }
 0x109   : > { %v596_v16 = vpack.c.bf16 %v2849_v12, %v555_v14 }
 0x10a   : > { %920 = vrot.lane.b32.xlu1 %v564_v54, %s3037_s15  ;;  %660 = vrot.lane.b32.xlu0 %v565_v56, %s3032_s9 }
 0x10b   : > { %599 = vst.msk [vmem:[#allocation2 + $0x38] sm:$0xff] %vm569_vm0, %v596_v16 }
 0x10e   : > { %754 = vrot.lane.b32.xlu1 %v565_v56, %s3033_s11  ;;  %707 = vrot.lane.b32.xlu0 %v565_v56, %s3031_s30 }
 0x112   : > { %1037 = vrot.lane.b32.xlu1 %v565_v56, %s3038_s16  ;;  %799 = vrot.lane.b32.xlu0 %v565_v56, %s3034_s12  ;;  %v3546_v8 = vld [vmem:[#allocation2 + $0x38] sm:$0xff] }
 0x113   : > { %v3482_v26 = vpop.permute.xlu1 %1177  ;;  %5206 = vst [vmem:[#allocation25_spill] sm:$0xff] %v3546_v8 }
 0x114   : > { %5190 = vst [vmem:[#allocation9_spill] sm:$0xff] %v3482_v26  ;;  %v702_v26 = vsel %vm688_vm2, %v3420_v48, %v3418_v47 }
 0x116   : > { %963 = vrot.lane.b32.xlu1 %v565_v56, %s3039_s20  ;;  %840 = vrot.lane.b32.xlu0 %v565_v56, %s3035_s13 }
 0x11a   : > { %881 = vrot.lane.b32.xlu0 %v565_v56, %s3036_s14  ;;  %713 = vrot.lane.b32.xlu1 %v3430_v2, %s3031_s30 }
 0x11b   : > { %v3476_v25 = vpop.permute.xlu0 %1209 }
 0x11c   : > { %5189 = vst [vmem:[#allocation8_spill] sm:$0xff] %v3476_v25 }
 0x11e   : > { %922 = vrot.lane.b32.xlu0 %v565_v56, %s3037_s15  ;;  %805 = vrot.lane.b32.xlu1 %v3430_v2, %s3034_s12  ;;  %v627_v56 = vld [vmem:[#allocation2 + $0x18] sm:$0xff] }
 0x11f   : > { %v3484_v27 = vpop.permute.xlu0 %1085 }
 0x120   : > { %5191 = vst [vmem:[#allocation10_spill] sm:$0xff] %v3484_v27 }
 0x122   : > { %887 = vrot.lane.b32.xlu1 %v3430_v2, %s3036_s14  ;;  %666 = vrot.lane.b32.xlu0 %v3430_v2, %s3032_s9 }
 0x123   : > { %v3490_v28 = vpop.permute.xlu1 %1241  ;;  %v3492_v29 = vpop.permute.xlu0 %1117 }
 0x124   : > { %5192 = vst [vmem:[#allocation11_spill] sm:$0xff] %v3490_v28  ;;  %5193 = vst [vmem:[#allocation12_spill] sm:$0xff] %v3492_v29 }
 0x126   : > { %928 = vrot.lane.b32.xlu1 %v3430_v2, %s3037_s15  ;;  %760 = vrot.lane.b32.xlu0 %v3430_v2, %s3033_s11 }
 0x127   : > { %v3498_v32 = vpop.permute.xlu1 %1083  ;;  %v3500_v37 = vpop.permute.xlu0 %1147 }
 0x128   : > { %5194 = vst [vmem:[#allocation13_spill] sm:$0xff] %v3498_v32  ;;  %5195 = vst [vmem:[#allocation14_spill] sm:$0xff] %v3500_v37 }
 0x12a   : > { %1043 = vrot.lane.b32.xlu1 %v3430_v2, %s3038_s16  ;;  %846 = vrot.lane.b32.xlu0 %v3430_v2, %s3035_s13 }
 0x12b   : > { %v3506_v38 = vpop.permute.xlu1 %1081  ;;  %v3508_v39 = vpop.permute.xlu0 %1145 }
 0x12c   : > { %5196 = vst [vmem:[#allocation15_spill] sm:$0xff] %v3506_v38  ;;  %5197 = vst [vmem:[#allocation16_spill] sm:$0xff] %v3508_v39 }
 0x12e   : > { %715 = vrot.lane.b32.xlu1 %v3434_v5, %s3031_s30  ;;  %668 = vrot.lane.b32.xlu0 %v3434_v5, %s3032_s9 }
 0x12f   : > { %v3514_v42 = vpop.permute.xlu1 %1115  ;;  %v3516_v45 = vpop.permute.xlu0 %1181 }
 0x130   : > { %5198 = vst [vmem:[#allocation17_spill] sm:$0xff] %v3514_v42  ;;  %5199 = vst [vmem:[#allocation18_spill] sm:$0xff] %v3516_v45  ;;  %v2949_v42 = vunpack.i.l.bf16 %v3323_v63 }
 0x132   : > { %807 = vrot.lane.b32.xlu1 %v3434_v5, %s3034_s12  ;;  %762 = vrot.lane.b32.xlu0 %v3434_v5, %s3033_s11 }
 0x133   : > { %v3522_v46 = vpop.permute.xlu1 %1113  ;;  %v3524_v51 = vpop.permute.xlu0 %1211 }
 0x134   : > { %5200 = vst [vmem:[#allocation19_spill] sm:$0xff] %v3522_v46  ;;  %5201 = vst [vmem:[#allocation20_spill] sm:$0xff] %v3524_v51  ;;  %v2955_v46 = vunpack.i.h.bf16 %v3379_v31 }
 0x136   : > { %889 = vrot.lane.b32.xlu1 %v3434_v5, %s3036_s14  ;;  %848 = vrot.lane.b32.xlu0 %v3434_v5, %s3035_s13  ;;  %v1329_v63 = vsel %vm1321_vm10, %v2955_v46, %v3386_v33 }
 0x137   : > { %v3530_v54 = vpop.permute.xlu1 %1149  ;;  %v3532_v55 = vpop.permute.xlu0 %1245 }
 0x138   : > { %5202 = vst [vmem:[#allocation21_spill] sm:$0xff] %v3530_v54  ;;  %5203 = vst [vmem:[#allocation22_spill] sm:$0xff] %v3532_v55 }
 0x13a   : > { %930 = vrot.lane.b32.xlu1 %v3434_v5, %s3037_s15  ;;  %1045 = vrot.lane.b32.xlu0 %v3434_v5, %s3038_s16 }
 0x13b   : > { %v3536_v59 = vpop.permute.xlu1 %1179  ;;  %v3538_v41 = vpop.permute.xlu0 %860 }
 0x13c   : > { %5204 = vst [vmem:[#allocation23_spill] sm:$0xff] %v3536_v59 }
 0x13e   : > { %756 = vrot.lane.b32.xlu0 %v627_v56, %s3033_s11  ;;  %662 = vrot.lane.b32.xlu1 %v627_v56, %s3032_s9 }
 0x13f   : > { %v3542_v1 = vpop.permute.xlu1 %1213  ;;  %v3544_v3 = vpop.permute.xlu0 %862 }
 0x140   : > { %5205 = vst [vmem:[#allocation24_spill] sm:$0xff] %v3542_v1 }
 0x142   : > { %965 = vrot.lane.b32.xlu0 %v627_v56, %s3039_s20  ;;  %709 = vrot.lane.b32.xlu1 %v627_v56, %s3031_s30 }
 0x143   : > { %v3551_v9 = vpop.permute.xlu1 %1243  ;;  %v3553_v10 = vpop.permute.xlu0 %2982 }
 0x144   : > { %5207 = vst [vmem:[#allocation26_spill] sm:$0xff] %v3551_v9 }
 0x146   : > { %801 = vrot.lane.b32.xlu1 %v627_v56, %s3034_s12  ;;  %717 = vrot.lane.b32.xlu0 %v3546_v8, %s3031_s30 }
 0x147   : > { %v3558_v12 = vpop.permute.xlu1 %864  ;;  %v3560_v14 = vpop.permute.xlu0 %1275 }
 0x148   : > { %5208 = vst [vmem:[#allocation27_spill] sm:$0xff] %v3560_v14 }
 0x14a   : > { %842 = vrot.lane.b32.xlu1 %v627_v56, %s3035_s13  ;;  %809 = vrot.lane.b32.xlu0 %v3546_v8, %s3034_s12 }
 0x14b   : > { %v3565_v16 = vpop.permute.xlu1 %1277  ;;  %v3567_v13 = vpop.permute.xlu0 %1273 }
 0x14c   : > { %5209 = vst [vmem:[#allocation28_spill] sm:$0xff] %v3565_v16  ;;  %5210 = vst [vmem:[#allocation29_spill] sm:$0xff] %v3567_v13  ;;  %v5211_v13 = vmov 0  }
 0x14e   : > { %883 = vrot.lane.b32.xlu1 %v627_v56, %s3036_s14  ;;  %891 = vrot.lane.b32.xlu0 %v3546_v8, %s3036_s14 }
 0x14f   : > { %v3572_v7 = vpop.permute.xlu1 %901  ;;  %v3574_v28 = vpop.permute.xlu0 %903 }
 0x152   : > { %924 = vrot.lane.b32.xlu1 %v627_v56, %s3037_s15  ;;  %932 = vrot.lane.b32.xlu0 %v3546_v8, %s3037_s15 }
 0x153   : > { %v3579_v14 = vpop.permute.xlu1 %905  ;;  %v3581_v9 = vpop.permute.xlu0 %2987 }
 0x156   : > { %1039 = vrot.lane.b32.xlu1 %v627_v56, %s3038_s16  ;;  %944 = vrot.lane.b32.xlu0 %v3190_v36, %s3037_s15 }
 0x157   : > { %v3587_v16 = vpop.permute.xlu1 %1307  ;;  %v3589_v55 = vpop.permute.xlu0 %2992 }
 0x158   : > { %5212 = vst [vmem:[#allocation30_spill] sm:$0xff] %v3587_v16 }
 0x15a   : > { %2997 = vrot.lane.b32.xlu0 %v5211_v13, %s3039_s20  ;;  %670 = vrot.lane.b32.xlu1 %v3546_v8, %s3032_s9  ;;  %v2960_v13 = vunpack.i.h.bf16 %v3411_v43 }
 0x15b   : > { %v3595_v56 = vpop.permute.xlu1 %942  ;;  %v3597_v25 = vpop.permute.xlu0 %1309 }
 0x15c   : > { %5213 = vst [vmem:[#allocation31_spill] sm:$0xff] %v3595_v56  ;;  %5214 = vst [vmem:[#allocation32_spill] sm:$0xff] %v3597_v25  ;;  %v700_v16 = vsel %vm688_vm2, %v2960_v13, %v3413_v44 }
 0x15e   : > { %1059 = vrot.lane.b32.xlu0 %v3188_v35, %s3038_s16  ;;  %764 = vrot.lane.b32.xlu1 %v3546_v8, %s3033_s11 }
 0x15f   : > { %v3609_v51 = vpop.permute.xlu1 %1055  ;;  %v3611_v1 = vpop.permute.xlu0 %1305 }
 0x160   : > { %5215 = vst [vmem:[#allocation33_spill] sm:$0xff] %v3611_v1  ;;  %v699_v1 = vsel %vm688_vm2, %v3312_v52, %v2960_v13 }
 0x162   : > { %983 = vrot.lane.b32.xlu0 %v3188_v35, %s3039_s20  ;;  %850 = vrot.lane.b32.xlu1 %v3546_v8, %s3035_s13 }
 0x166   : > { %1089 = vrot.lane.b32.xlu0 %v700_v16, %s3038_s16  ;;  %946 = vrot.lane.b32.xlu1 %v3268_v49, %s3037_s15 }
 0x16a   : > { %973 = vrot.lane.b32.xlu0 %v3546_v8, %s3039_s20  ;;  %969 = vrot.lane.b32.xlu1 %v3430_v2, %s3039_s20 }
 0x16c   : > { %v706_v35 = vpop.permute.xlu1 %705  ;;  %v659_v25 = vpop.permute.xlu0 %658 }
 0x16e   : > { %1093 = vrot.lane.b32.xlu0 %v702_v26, %s3038_s16  ;;  %1061 = vrot.lane.b32.xlu1 %v3190_v36, %s3038_s16  ;;  %v701_v26 = vsel %vm688_vm2, %v3413_v44, %v3420_v48  ;;  %v2939_v44 = vunpack.i.l.bf16 %v3314_v53  ;;  %v2954_v48 = vunpack.i.l.bf16 %v3379_v31 }
 0x170   : > { %v798_v16 = vpop.permute.xlu1 %797  ;;  %v753_v59 = vpop.permute.xlu0 %752 }
 0x172   : > { %1161 = vrot.lane.b32.xlu0 %v798_v16, %s3038_s16  ;;  %1087 = vrot.lane.b32.xlu1 %v699_v1, %s3038_s16  ;;  %v2944_v1 = vunpack.i.l.bf16 %v3310_v50 }
 0x174   : > { %v839_v2 = vpop.permute.xlu1 %838  ;;  %v1036_v45 = vpop.permute.xlu0 %1035  ;;  %v736_v37 = vsel %vm735_vm3, %v2944_v1, %v706_v35 }
 0x175   : > { %v1322_v53 = vsel %vm1321_vm10, %v2954_v48, %v1036_v45 }
 0x176   : > { %971 = vrot.lane.b32.xlu1 %v3434_v5, %s3039_s20 }
 0x178   : > { %v880_v47 = vpop.permute.xlu1 %879  ;;  %v962_v39 = vpop.permute.xlu0 %961 }
 0x179   : > { %1225 = vrot.lane.b32.xlu0 %v880_v47, %s3038_s16 }
 0x17a   : > { %1091 = vrot.lane.b32.xlu1 %v701_v26, %s3038_s16 }
 0x17c   : > { %v921_v52 = vpop.permute.xlu1 %920  ;;  %v3634_v13 = vpop.permute.xlu0 %660 }
 0x17d   : > { %1289 = vrot.lane.b32.xlu0 %v962_v39, %s3038_s16 }
 0x17e   : > { %1193 = vrot.lane.b32.xlu1 %v839_v2, %s3038_s16 }
 0x180   : > { %v3639_v5 = vpop.permute.xlu1 %754  ;;  %v3641_v8 = vpop.permute.xlu0 %707 }
 0x181   : > { %1097 = vrot.lane.b32.xlu0 %v736_v37, %s3038_s16  ;;  %v737_v54 = vsel %vm735_vm3, %v706_v35, %v3641_v8  ;;  %v689_v37 = vsel %vm688_vm2, %v2939_v44, %v659_v25  ;;  %v1330_v35 = vsel %vm1321_vm10, %v3386_v33, %v3390_v34  ;;  %v783_v44 = vsel %vm782_vm4, %v2949_v42, %v753_v59 }
 0x182   : > { %1257 = vrot.lane.b32.xlu1 %v921_v52, %s3038_s16  ;;  %v784_v46 = vsel %vm782_vm4, %v753_v59, %v3639_v5  ;;  %v5171_v59 = vunpack.i.l.bf16 %v3411_v43 }
 0x184   : > { %v3648_v26 = vpop.permute.xlu1 %1037  ;;  %v3650_v50 = vpop.permute.xlu0 %799 }
 0x185   : > { %1099 = vrot.lane.b32.xlu0 %v737_v54, %s3038_s16  ;;  %v1323_v1 = vsel %vm1321_vm10, %v1036_v45, %v3648_v26  ;;  %v826_v31 = vsel %vm825_vm5, %v798_v16, %v3650_v50 }
 0x186   : > { %1577 = vmatprep.subr.bf16.mxu0 %v1323_v1  ;;  %1065 = vrot.lane.b32.xlu1 %v689_v37, %s3038_s16  ;;  %v690_v37 = vsel %vm688_vm2, %v659_v25, %v3634_v13 }
 0x187   : > { %1578 = vmatpush1.bf16.msra.mxu0 %v1322_v53 }
 0x188   : > { %1579 = vmatprep.subr.bf16.mxu0 %v1330_v35  ;;  %v3665_v54 = vpop.permute.xlu1 %963  ;;  %v3667_v29 = vpop.permute.xlu0 %840 }
 0x189   : > { %1163 = vrot.lane.b32.xlu0 %v826_v31, %s3038_s16  ;;  %v990_v33 = vsel %vm989_vm9, %v962_v39, %v3665_v54  ;;  %v867_v53 = vsel %vm866_vm6, %v839_v2, %v3667_v29 }
 0x18a   : > { %1129 = vrot.lane.b32.xlu1 %v783_v44, %s3038_s16 }
 0x18b   : > { %1580 = vmatpush1.bf16.msra.mxu0 %v1329_v63 }
 0x18c   : > { %v3676_v45 = vpop.permute.xlu0 %881  ;;  %v714_v48 = vpop.permute.xlu1 %713 }
 0x18d   : > { %v908_v1 = vsel %vm907_vm7, %v880_v47, %v3676_v45 }
 0x18e   : > { %1227 = vrot.lane.b32.xlu0 %v908_v1, %s3038_s16  ;;  %1067 = vrot.lane.b32.xlu1 %v690_v37, %s3038_s16 }
 0x190   : > { %v3684_v42 = vpop.permute.xlu0 %922  ;;  %v3686_v16 = vpop.permute.xlu1 %805 }
 0x191   : > { %v949_v39 = vsel %vm948_vm8, %v921_v52, %v3684_v42 }
 0x192   : > { %1291 = vrot.lane.b32.xlu0 %v990_v33, %s3038_s16  ;;  %1131 = vrot.lane.b32.xlu1 %v784_v46, %s3038_s16 }
 0x194   : > { %v3694_v47 = vpop.permute.xlu1 %887  ;;  %v667_v25 = vpop.permute.xlu0 %666 }
 0x195   : > { %v693_v2 = vsel %vm688_vm2, %v5171_v59, %v667_v25 }
 0x196   : > { %1195 = vrot.lane.b32.xlu1 %v867_v53, %s3038_s16 }
 0x198   : > { %v3699_v35 = vpop.permute.xlu1 %928  ;;  %v3701_v31 = vpop.permute.xlu0 %760 }
 0x199   : > { %5216 = vst [vmem:[#allocation34_spill] sm:$0xff] %v3699_v35 }
 0x19a   : > { %1259 = vrot.lane.b32.xlu1 %v949_v39, %s3038_s16 }
 0x19c   : > { %v3707_v44 = vpop.permute.xlu1 %1043  ;;  %v3709_v63 = vpop.permute.xlu0 %846 }
 0x19d   : > { %5217 = vst [vmem:[#allocation35_spill] sm:$0xff] %v3707_v44 }
 0x19e   : > { %1073 = vrot.lane.b32.xlu1 %v693_v2, %s3038_s16 }
 0x1a0   : > { %v3715_v1 = vpop.permute.xlu1 %715  ;;  %v3717_v37 = vpop.permute.xlu0 %668 }
 0x1a1   : > { %v694_v52 = vsel %vm688_vm2, %v667_v25, %v3717_v37 }
 0x1a2   : > { %1075 = vrot.lane.b32.xlu1 %v694_v52, %s3038_s16  ;;  %v5177_v52 = vunpack.i.l.bf16 %v3426_v62 }
 0x1a4   : > { %v3722_v33 = vpop.permute.xlu1 %807  ;;  %v3724_v46 = vpop.permute.xlu0 %762 }
 0x1a8   : > { %v3726_v53 = vpop.permute.xlu1 %889  ;;  %v3728_v39 = vpop.permute.xlu0 %848 }
 0x1ac   : > { %v3730_v59 = vpop.permute.xlu1 %930  ;;  %v3732_v2 = vpop.permute.xlu0 %1045 }
 0x1ad   : > { %5218 = vst [vmem:[#allocation36_spill] sm:$0xff] %v3730_v59  ;;  %5219 = vst [vmem:[#allocation37_spill] sm:$0xff] %v3732_v2  ;;  %v740_v2 = vsel %vm735_vm3, %v5177_v52, %v714_v48  ;;  %v2965_v52 = vunpack.i.h.bf16 %v3426_v62 }
 0x1b0   : > { %v3734_v44 = vpop.permute.xlu0 %756  ;;  %v3736_v40 = vpop.permute.xlu1 %662 }
 0x1b1   : > { %v691_v25 = vsel %vm688_vm2, %v3634_v13, %v3736_v40 }
 0x1b2   : > { %1069 = vrot.lane.b32.xlu0 %v691_v25, %s3038_s16 }
 0x1b4   : > { %v3743_v38 = vpop.permute.xlu0 %965  ;;  %v3745_v32 = vpop.permute.xlu1 %709 }
 0x1b5   : > { %v738_v27 = vsel %vm735_vm3, %v3641_v8, %v3745_v32  ;;  %v747_v8 = vsel %vm735_vm3, %v2965_v52, %v3424_v58 }
 0x1b6   : > { %1105 = vrot.lane.b32.xlu0 %v740_v2, %s3038_s16  ;;  %1101 = vrot.lane.b32.xlu1 %v738_v27, %s3038_s16  ;;  %v741_v27 = vsel %vm735_vm3, %v714_v48, %v3715_v1  ;;  %v746_v2 = vsel %vm735_vm3, %v3319_v60, %v2965_v52  ;;  %v2969_v60 = vunpack.i.l.bf16 %v3442_v11  ;;  %v5182_v52 = vunpack.i.l.bf16 %v3589_v55 }
 0x1b8   : > { %v3755_v13 = vpop.permute.xlu1 %801  ;;  %v3757_v25 = vpop.permute.xlu0 %717 }
 0x1ba   : > { %987 = vrot.lane.b32.xlu0 %v3268_v49, %s3039_s20  ;;  %985 = vrot.lane.b32.xlu1 %v3190_v36, %s3039_s20  ;;  %v785_v36 = vsel %vm782_vm4, %v3639_v5, %v3734_v44  ;;  %v2970_v5 = vunpack.i.h.bf16 %v3442_v11 }
 0x1bc   : > { %v3764_v56 = vpop.permute.xlu1 %842  ;;  %v3766_v30 = vpop.permute.xlu0 %809 }
 0x1be   : > { %1121 = vrot.lane.b32.xlu0 %v747_v8, %s3038_s16  ;;  %1107 = vrot.lane.b32.xlu1 %v741_v27, %s3038_s16  ;;  %v749_v8 = vsel %vm735_vm3, %v3432_v4, %v3438_v6  ;;  %v827_v27 = vsel %vm825_vm5, %v3650_v50, %v3755_v13  ;;  %v787_v50 = vsel %vm782_vm4, %v2969_v60, %v3701_v31 }
 0x1c0   : > { %v3774_v49 = vpop.permute.xlu1 %883  ;;  %v3781_v59 = vpop.permute.xlu0 %891 }
 0x1c2   : > { %1133 = vrot.lane.b32.xlu0 %v785_v36, %s3038_s16  ;;  %1119 = vrot.lane.b32.xlu1 %v746_v2, %s3038_s16 }
 0x1c4   : > { %v3785_v48 = vpop.permute.xlu1 %924  ;;  %v3798_v36 = vpop.permute.xlu0 %932 }
 0x1c5   : > { %5220 = vst [vmem:[#allocation38_spill] sm:$0xff] %v3798_v36 }
 0x1c6   : > { %1125 = vrot.lane.b32.xlu0 %v749_v8, %s3038_s16  ;;  %1165 = vrot.lane.b32.xlu1 %v827_v27, %s3038_s16  ;;  %v748_v27 = vsel %vm735_vm3, %v3424_v58, %v3432_v4  ;;  %v788_v58 = vsel %vm782_vm4, %v3701_v31, %v3724_v46  ;;  %v1331_v4 = vsel %vm1321_vm10, %v3390_v34, %v3609_v51 }
 0x1c7   : > { %v950_v34 = vsel %vm948_vm8, %v3684_v42, %v3785_v48  ;;  %v991_v42 = vsel %vm989_vm9, %v3665_v54, %v3743_v38 }
 0x1c8   : > { %v1040_v2 = vpop.permute.xlu1 %1039 }
 0x1c9   : > { %v1325_v6 = vsel %vm1321_vm10, %v1040_v2, %v5182_v52  ;;  %v1324_v8 = vsel %vm1321_vm10, %v3648_v26, %v1040_v2  ;;  %v5221_v52 = vunpack.i.h.bf16 %v3589_v55  ;;  %v3821_v26 = vpop.permute.xlu0 %944 }
 0x1ca   : > { %1663 = vmatprep.subr.bf16.mxu1 %v1325_v6  ;;  %1137 = vrot.lane.b32.xlu0 %v787_v50, %s3038_s16  ;;  %v794_v6 = vsel %vm782_vm4, %v2970_v5, %v3445_v15 }
 0x1cb   : > { %1123 = vrot.lane.b32.xlu1 %v748_v27, %s3038_s16  ;;  %1664 = vmatpush1.bf16.msra.mxu1 %v1324_v8  ;;  %v1332_v36 = vsel %vm1321_vm10, %v3609_v51, %v5221_v52  ;;  %v868_v52 = vsel %vm866_vm6, %v3667_v29, %v3764_v56  ;;  %v909_v29 = vsel %vm907_vm7, %v3676_v45, %v3774_v49 }
 0x1cc   : > { %1665 = vmatprep.subr.bf16.mxu1 %v1332_v36  ;;  %v3817_v35 = vpop.permute.xlu1 %670  ;;  %v793_v36 = vsel %vm782_vm4, %v3316_v57, %v2970_v5  ;;  %v5222_v57 = vunpack.i.l.bf16 %v3411_v43  ;;  %v5223_v43 = vunpack.i.l.bf16 %v3426_v62  ;;  %v786_v62 = vsel %vm782_vm4, %v3734_v44, %v2969_v60 }
 0x1cd   : > { %v3840_v31 = vpop.permute.xlu0 %2997  ;;  %v695_v8 = vsel %vm688_vm2, %v3717_v37, %v3817_v35  ;;  %v742_v37 = vsel %vm735_vm3, %v3715_v1, %v3757_v25  ;;  %v2974_v44 = vunpack.i.l.bf16 %v3460_v20  ;;  %v796_v60 = vsel %vm782_vm4, %v3454_v18, %v3450_v17 }
 0x1ce   : > { %1153 = vrot.lane.b32.xlu0 %v794_v6, %s3038_s16  ;;  %v692_v5 = vsel %vm688_vm2, %v3736_v40, %v5222_v57  ;;  %v3873_v40 = vld [vmem:[%s5147_s4 + $0x4] ss:$12 sps:$4 sm:$0xff]   ;;  %v739_v27 = vsel %vm735_vm3, %v3745_v32, %v5223_v43  ;;  %v831_v57 = vsel %vm825_vm5, %v3722_v33, %v3766_v30  ;;  %v837_v43 = vsel %vm825_vm5, %v3464_v22, %v3466_v23 }
 0x1cf   : > { %1139 = vrot.lane.b32.xlu1 %v788_v58, %s3038_s16  ;;  %1666 = vmatpush1.bf16.msra.mxu1 %v1331_v4 }
 0x1d0   : > { %v3831_v11 = vpop.permute.xlu1 %764  ;;  %1609 = vmatprep.mubr.bf16.mxu0 %v3873_v40  ;;  %1695 = vmatprep.mubr.bf16.mxu1 %v3873_v40 }
 0x1d1   : > { %v3858_v50 = vpop.permute.xlu0 %1059  ;;  %v789_v58 = vsel %vm782_vm4, %v3724_v46, %v3831_v11  ;;  %v828_v46 = vsel %vm825_vm5, %v3755_v13, %v2974_v44 }
 0x1d2   : > { %1197 = vrot.lane.b32.xlu0 %v868_v52, %s3038_s16  ;;  %v795_v52 = vsel %vm782_vm4, %v3445_v15, %v3454_v18  ;;  %v830_v18 = vsel %vm825_vm5, %v3686_v16, %v3722_v33  ;;  %v2979_v33 = vunpack.i.l.bf16 %v3474_v24 }
 0x1d3   : > { %1151 = vrot.lane.b32.xlu1 %v793_v36, %s3038_s16 }
 0x1d4   : > { %v3842_v2 = vpop.permute.xlu1 %850 }
 0x1d5   : > { %v3882_v54 = vpop.permute.xlu0 %983 }
 0x1d6   : > { %1261 = vrot.lane.b32.xlu0 %v950_v34, %s3038_s16  ;;  %v829_v34 = vsel %vm825_vm5, %v2974_v44, %v3686_v16 }
 0x1d7   : > { %1229 = vrot.lane.b32.xlu1 %v909_v29, %s3038_s16  ;;  %v2975_v29 = vunpack.i.h.bf16 %v3460_v20 }
 0x1d8   : > { %v3852_v51 = vpop.permute.xlu1 %946 }
 0x1d9   : > { %v3899_v4 = vpop.permute.xlu0 %1089  ;;  %v835_v16 = vsel %vm825_vm5, %v2975_v29, %v3458_v19 }
 0x1da   : > { %1071 = vrot.lane.b32.xlu0 %v692_v5, %s3038_s16 }
 0x1db   : > { %1293 = vrot.lane.b32.xlu1 %v991_v42, %s3038_s16  ;;  %v834_v42 = vsel %vm825_vm5, %v3321_v61, %v2975_v29 }
 0x1dc   : > { %v3865_v45 = vpop.permute.xlu1 %969 }
 0x1dd   : > { %v3916_v15 = vpop.permute.xlu0 %973 }
 0x1de   : > { %1077 = vrot.lane.b32.xlu0 %v695_v8, %s3038_s16  ;;  %v836_v8 = vsel %vm825_vm5, %v3458_v19, %v3464_v22  ;;  %v871_v22 = vsel %vm866_vm6, %v3709_v63, %v3728_v39 }
 0x1df   : > { %1103 = vrot.lane.b32.xlu1 %v739_v27, %s3038_s16 }
 0x1e0   : > { %v3884_v6 = vpop.permute.xlu1 %1061 }
 0x1e1   : > { %v3933_v5 = vpop.permute.xlu0 %1093 }
 0x1e2   : > { %1109 = vrot.lane.b32.xlu0 %v742_v37, %s3038_s16  ;;  %v869_v37 = vsel %vm866_vm6, %v3764_v56, %v2979_v33 }
 0x1e3   : > { %1135 = vrot.lane.b32.xlu1 %v786_v62, %s3038_s16  ;;  %v870_v62 = vsel %vm866_vm6, %v2979_v33, %v3709_v63  ;;  %v918_v33 = vsel %vm907_vm7, %v3572_v7, %v3574_v28 }
 0x1e4   : > { %v3894_v32 = vpop.permute.xlu1 %1087 }
 0x1e5   : > { %v3949_v61 = vpop.permute.xlu0 %1161 }
 0x1e6   : > { %1141 = vrot.lane.b32.xlu0 %v789_v58, %s3038_s16  ;;  %v2980_v58 = vunpack.i.h.bf16 %v3474_v24 }
 0x1e7   : > { %1155 = vrot.lane.b32.xlu1 %v795_v52, %s3038_s16  ;;  %v872_v52 = vsel %vm866_vm6, %v3728_v39, %v3842_v2  ;;  %v2984_v39 = vunpack.i.l.bf16 %v3553_v10 }
 0x1e8   : > { %v3907_v1 = vpop.permute.xlu1 %971  ;;  %v876_v24 = vsel %vm866_vm6, %v2980_v58, %v3538_v41 }
 0x1e9   : > { %v910_v29 = vsel %vm907_vm7, %v3774_v49, %v2984_v39 }
 0x1ea   : > { %1157 = vrot.lane.b32.xlu0 %v796_v60, %s3038_s16  ;;  %v875_v60 = vsel %vm866_vm6, %v3326_v0, %v2980_v58  ;;  %v878_v0 = vsel %vm866_vm6, %v3544_v3, %v3558_v12 }
 0x1eb   : > { %1167 = vrot.lane.b32.xlu1 %v828_v46, %s3038_s16  ;;  %v3960_v19 = vpop.permute.xlu0 %1225  ;;  %v877_v46 = vsel %vm866_vm6, %v3538_v41, %v3544_v3  ;;  %v913_v3 = vsel %vm907_vm7, %v3726_v53, %v3781_v59 }
 0x1ec   : > { %v3918_v36 = vpop.permute.xlu1 %1091 }
 0x1ee   : > { %1169 = vrot.lane.b32.xlu0 %v829_v34, %s3038_s16 }
 0x1ef   : > { %1171 = vrot.lane.b32.xlu1 %v830_v18, %s3038_s16  ;;  %v3975_v44 = vpop.permute.xlu0 %1289  ;;  %v911_v18 = vsel %vm907_vm7, %v2984_v39, %v3694_v47  ;;  %v5227_v39 = vld [vmem:[#allocation4_spill] sm:$0xff] }
 0x1f0   : > { %v3928_v13 = vpop.permute.xlu1 %1193 }
 0x1f2   : > { %1173 = vrot.lane.b32.xlu0 %v831_v57, %s3038_s16  ;;  %v2985_v57 = vunpack.i.h.bf16 %v3553_v10 }
 0x1f3   : > { %1183 = vrot.lane.b32.xlu1 %v834_v42, %s3038_s16  ;;  %v3989_v34 = vpop.permute.xlu0 %1097 }
 0x1f4   : > { %v3939_v20 = vpop.permute.xlu1 %1257 }
 0x1f6   : > { %1185 = vrot.lane.b32.xlu0 %v835_v16, %s3038_s16  ;;  %v912_v16 = vsel %vm907_vm7, %v3694_v47, %v3726_v53  ;;  %v917_v47 = vsel %vm907_vm7, %v2985_v57, %v3572_v7  ;;  %v2989_v53 = vunpack.i.l.bf16 %v3581_v9  ;;  %v5224_v7 = vld [vmem:[#allocation34_spill] sm:$0xff] }
 0x1f7   : > { %1187 = vrot.lane.b32.xlu1 %v836_v8, %s3038_s16  ;;  %v1100_v42 = vpop.permute.xlu0 %1099  ;;  %v916_v8 = vsel %vm907_vm7, %v3353_v21, %v2985_v57 }
 0x1f8   : > { %v3954_v27 = vpop.permute.xlu1 %1065  ;;  %v952_v58 = vsel %vm948_vm8, %v2989_v53, %v5224_v7 }
 0x1fa   : > { %1189 = vrot.lane.b32.xlu0 %v837_v43, %s3038_s16  ;;  %v919_v43 = vsel %vm907_vm7, %v3574_v28, %v3579_v14 }
 0x1fb   : > { %1199 = vrot.lane.b32.xlu1 %v869_v37, %s3038_s16  ;;  %v4017_v10 = vpop.permute.xlu0 %1163 }
 0x1fc   : > { %v3970_v56 = vpop.permute.xlu1 %1129 }
 0x1fe   : > { %1201 = vrot.lane.b32.xlu0 %v870_v62, %s3038_s16  ;;  %v951_v62 = vsel %vm948_vm8, %v3785_v48, %v2989_v53  ;;  %v5230_v53 = vld [vmem:[#allocation13_spill] sm:$0xff] }
 0x1ff   : > { %1203 = vrot.lane.b32.xlu1 %v871_v22, %s3038_s16  ;;  %v2990_v22 = vunpack.i.h.bf16 %v3581_v9 }
 0x200   : > { %v1068_v63 = vpop.permute.xlu1 %1067  ;;  %v4032_v37 = vpop.permute.xlu0 %1227 }
 0x202   : > { %1205 = vrot.lane.b32.xlu0 %v872_v52, %s3038_s16 }
 0x203   : > { %1215 = vrot.lane.b32.xlu1 %v875_v60, %s3038_s16  ;;  %v5225_v60 = vld [vmem:[#allocation36_spill] sm:$0xff] }
 0x204   : > { %v3998_v41 = vpop.permute.xlu1 %1131  ;;  %v953_v28 = vsel %vm948_vm8, %v5224_v7, %v5225_v60  ;;  %v4048_v48 = vpop.permute.xlu0 %1291 }
 0x206   : > { %1217 = vrot.lane.b32.xlu0 %v876_v24, %s3038_s16  ;;  %v5226_v24 = vld [vmem:[#allocation38_spill] sm:$0xff] }
 0x207   : > { %1219 = vrot.lane.b32.xlu1 %v877_v46, %s3038_s16  ;;  %v954_v46 = vsel %vm948_vm8, %v5225_v60, %v5226_v24 }
 0x208   : > { %v4011_v49 = vpop.permute.xlu1 %1195 }
 0x20a   : > { %1221 = vrot.lane.b32.xlu0 %v878_v0, %s3038_s16  ;;  %v957_v0 = vsel %vm948_vm8, %v5227_v39, %v2990_v22 }
 0x20b   : > { %1231 = vrot.lane.b32.xlu1 %v910_v29, %s3038_s16 }
 0x20c   : > { %v4027_v21 = vpop.permute.xlu1 %1259 }
 0x20e   : > { %1233 = vrot.lane.b32.xlu0 %v911_v18, %s3038_s16  ;;  %v5228_v18 = vld [vmem:[#allocation31_spill] sm:$0xff] }
 0x20f   : > { %1235 = vrot.lane.b32.xlu1 %v912_v16, %s3038_s16  ;;  %v958_v57 = vsel %vm948_vm8, %v2990_v22, %v5228_v18  ;;  %v3000_v22 = vunpack.i.h.bf16 %v3840_v31 }
 0x210   : > { %v4041_v52 = vpop.permute.xlu1 %1073 }
 0x212   : > { %1237 = vrot.lane.b32.xlu0 %v913_v3, %s3038_s16  ;;  %v2999_v3 = vunpack.i.l.bf16 %v3840_v31 }
 0x213   : > { %1247 = vrot.lane.b32.xlu1 %v916_v8, %s3038_s16  ;;  %v959_v8 = vsel %vm948_vm8, %v5228_v18, %v3821_v26  ;;  %v5233_v18 = vld [vmem:[#allocation12_spill] sm:$0xff] }
 0x214   : > { %v4057_v9 = vpop.permute.xlu1 %1075  ;;  %v993_v31 = vsel %vm989_vm9, %v2999_v3, %v3865_v45 }
 0x216   : > { %1249 = vrot.lane.b32.xlu0 %v917_v47, %s3038_s16  ;;  %v1336_v47 = vsel %vm1321_vm10, %v3954_v27, %v1068_v63  ;;  %v992_v27 = vsel %vm989_vm9, %v3743_v38, %v2999_v3  ;;  %v5232_v38 = vld [vmem:[#allocation5_spill] sm:$0xff]  ;;  %v999_v3 = vsel %vm989_vm9, %v3000_v22, %v3882_v54 }
 0x217   : > { %1251 = vrot.lane.b32.xlu1 %v918_v33, %s3038_s16  ;;  %v5229_v33 = vld [vmem:[#allocation10_spill] sm:$0xff]  ;;  %v998_v39 = vsel %vm989_vm9, %v5232_v38, %v3000_v22  ;;  %v995_v22 = vsel %vm989_vm9, %v3907_v1, %v3916_v15  ;;  %v5238_v38 = vld [vmem:[#allocation25_spill] sm:$0xff] }
 0x21a   : > { %1253 = vrot.lane.b32.xlu0 %v919_v43, %s3038_s16  ;;  %v1344_v43 = vsel %vm1321_vm10, %v5230_v53, %v5229_v33 }
 0x21b   : > { %1263 = vrot.lane.b32.xlu1 %v951_v62, %s3038_s16 }
 0x21e   : > { %1265 = vrot.lane.b32.xlu0 %v952_v58, %s3038_s16  ;;  %v960_v58 = vsel %vm948_vm8, %v3821_v26, %v3852_v51 }
 0x21f   : > { %1267 = vrot.lane.b32.xlu1 %v953_v28, %s3038_s16 }
 0x222   : > { %1269 = vrot.lane.b32.xlu0 %v954_v46, %s3038_s16 }
 0x223   : > { %1279 = vrot.lane.b32.xlu1 %v957_v0, %s3038_s16  ;;  %v1350_v0 = vsel %vm1321_vm10, %v3989_v34, %v1100_v42  ;;  %v994_v34 = vsel %vm989_vm9, %v3865_v45, %v3907_v1  ;;  %v1364_v45 = vsel %vm1321_vm10, %v3970_v56, %v3998_v41  ;;  %v5239_v56 = vld [vmem:[#allocation16_spill] sm:$0xff] }
 0x224   : > { %v4059_v29 = vpop.permute.xlu0 %1069 }
 0x225   : > { %v1337_v16 = vsel %vm1321_vm10, %v1068_v63, %v4059_v29  ;;  %v5231_v63 = vld [vmem:[#allocation15_spill] sm:$0xff] }
 0x226   : > { %1281 = vrot.lane.b32.xlu0 %v958_v57, %s3038_s16  ;;  %1581 = vmatprep.subr.bf16.mxu0 %v1337_v16  ;;  %v1343_v60 = vsel %vm1321_vm10, %v5231_v63, %v5230_v53  ;;  %v5234_v57 = vld [vmem:[#allocation17_spill] sm:$0xff] }
 0x227   : > { %1283 = vrot.lane.b32.xlu1 %v959_v8, %s3038_s16  ;;  %1582 = vmatpush1.bf16.msra.mxu0 %v1336_v47  ;;  %v1358_v16 = vsel %vm1321_vm10, %v5234_v57, %v5233_v18  ;;  %v5236_v63 = vld [vmem:[#allocation21_spill] sm:$0xff] }
 0x228   : > { %v4076_v62 = vpop.permute.xlu0 %1105  ;;  %1583 = vmatprep.subr.bf16.mxu0 %v1344_v43  ;;  %v4078_v7 = vpop.permute.xlu1 %1101 }
 0x229   : > { %v1351_v28 = vsel %vm1321_vm10, %v1100_v42, %v4078_v7  ;;  %v5235_v42 = vld [vmem:[#allocation19_spill] sm:$0xff] }
 0x22a   : > { %1285 = vrot.lane.b32.xlu0 %v960_v58, %s3038_s16  ;;  %v1357_v53 = vsel %vm1321_vm10, %v5235_v42, %v5234_v57 }
 0x22b   : > { %1295 = vrot.lane.b32.xlu1 %v992_v27, %s3038_s16  ;;  %1584 = vmatpush1.bf16.msra.mxu0 %v1343_v60  ;;  %v5237_v60 = vld [vmem:[#allocation14_spill] sm:$0xff] }
 0x22c   : > { %v4093_v46 = vpop.permute.xlu0 %987  ;;  %1585 = vmatprep.subr.bf16.mxu0 %v1351_v28  ;;  %v986_v26 = vpop.permute.xlu1 %985  ;;  %v1372_v28 = vsel %vm1321_vm10, %v5237_v60, %v5236_v63 }
 0x22e   : > { %1297 = vrot.lane.b32.xlu0 %v993_v31, %s3038_s16 }
 0x22f   : > { %1311 = vrot.lane.b32.xlu1 %v998_v39, %s3038_s16  ;;  %1586 = vmatpush1.bf16.msra.mxu0 %v1350_v0  ;;  %v1000_v39 = vsel %vm989_vm9, %v3882_v54, %v986_v26  ;;  %v1378_v54 = vsel %vm1321_vm10, %v3949_v61, %v4017_v10 }
 0x230   : > { %v4106_v8 = vpop.permute.xlu0 %1121  ;;  %1587 = vmatprep.subr.bf16.mxu0 %v1358_v16  ;;  %v4108_v47 = vpop.permute.xlu1 %1107  ;;  %v1001_v16 = vsel %vm989_vm9, %v986_v26, %v4093_v46  ;;  %v3018_v26 = vld [vmem:[#allocation2 + $0x78] sm:$0xff] }
 0x232   : > { %1313 = vrot.lane.b32.xlu0 %v999_v3, %s3038_s16  ;;  %v5240_v3 = vld [vmem:[#allocation18_spill] sm:$0xff] }
 0x233   : > { %1299 = vrot.lane.b32.xlu1 %v994_v34, %s3038_s16  ;;  %1588 = vmatpush1.bf16.msra.mxu0 %v1357_v53  ;;  %v5241_v34 = vld [vmem:[#allocation23_spill] sm:$0xff] }
 0x234   : > { %v4120_v43 = vpop.permute.xlu0 %1133  ;;  %v4122_v58 = vpop.permute.xlu1 %1119  ;;  %v1386_v42 = vsel %vm1321_vm10, %v5241_v34, %v5240_v3 }
 0x235   : > { %v1365_v27 = vsel %vm1321_vm10, %v3998_v41, %v4120_v43 }
 0x236   : > { %1301 = vrot.lane.b32.xlu0 %v995_v22, %s3038_s16  ;;  %1589 = vmatprep.subr.bf16.mxu0 %v1365_v27  ;;  %v5242_v27 = vld [vmem:[#allocation9_spill] sm:$0xff] }
 0x237   : > { %1175 = vrot.lane.b32.xlu1 %v3766_v30, %s3038_s16  ;;  %1590 = vmatpush1.bf16.msra.mxu0 %v1364_v45  ;;  %v1371_v30 = vsel %vm1321_vm10, %v5239_v56, %v5237_v60  ;;  %v1385_v61 = vsel %vm1321_vm10, %v5242_v27, %v5241_v34  ;;  %v1392_v60 = vsel %vm1321_vm10, %v3928_v13, %v4011_v49  ;;  %v5247_v34 = vld [vmem:[#allocation22_spill] sm:$0xff] }
 0x238   : > { %v4139_v1 = vpop.permute.xlu0 %1125  ;;  %1591 = vmatprep.subr.bf16.mxu0 %v1372_v28  ;;  %v4141_v31 = vpop.permute.xlu1 %1165  ;;  %v5244_v28 = vld [vmem:[#allocation20_spill] sm:$0xff] }
 0x239   : > { %v1379_v41 = vsel %vm1321_vm10, %v4017_v10, %v4141_v31 }
 0x23a   : > { %1047 = vrot.lane.b32.xlu0 %v5238_v38, %s3038_s16 }
 0x23b   : > { %1315 = vrot.lane.b32.xlu1 %v1000_v39, %s3038_s16  ;;  %1592 = vmatpush1.bf16.msra.mxu0 %v1371_v30  ;;  %v5246_v30 = vld [vmem:[#allocation8_spill] sm:$0xff] }
 0x23c   : > { %v4154_v0 = vpop.permute.xlu0 %1137  ;;  %1593 = vmatprep.subr.bf16.mxu0 %v1379_v41  ;;  %v1399_v13 = vsel %vm1321_vm10, %v5246_v30, %v5244_v28 }
 0x23d   : > { %v4156_v57 = vpop.permute.xlu1 %1123 }
 0x23e   : > { %1317 = vrot.lane.b32.xlu0 %v1001_v16, %s3038_s16 }
 0x23f   : > { %1191 = vrot.lane.b32.xlu1 %v3466_v23, %s3038_s16  ;;  %1594 = vmatpush1.bf16.msra.mxu0 %v1378_v54 }
 0x240   : > { %v4169_v53 = vpop.permute.xlu0 %1153  ;;  %1595 = vmatprep.subr.bf16.mxu0 %v1386_v42  ;;  %v5248_v42 = vld [vmem:[#allocation26_spill] sm:$0xff] }
 0x241   : > { %v4171_v22 = vpop.permute.xlu1 %1139 }
 0x242   : > { %1063 = vrot.lane.b32.xlu0 %v3018_v26, %s3038_s16  ;;  %v1414_v26 = vsel %vm1321_vm10, %v5248_v42, %v5247_v34 }
 0x243   : > { %1207 = vrot.lane.b32.xlu1 %v3842_v2, %s3038_s16  ;;  %1596 = vmatpush1.bf16.msra.mxu0 %v1385_v61  ;;  %v5243_v2 = vld [vmem:[#allocation24_spill] sm:$0xff]  ;;  %v1345_v61 = vsel %vm1321_vm10, %v5229_v33, %v3894_v32 }
 0x244   : > { %v4179_v23 = vpop.permute.xlu0 %1197  ;;  %v1400_v38 = vsel %vm1321_vm10, %v5244_v28, %v5243_v2  ;;  %v5251_v33 = vld [vmem:[#allocation28_spill] sm:$0xff] }
 0x245   : > { %v4181_v10 = vpop.permute.xlu1 %1151  ;;  %v1393_v45 = vsel %vm1321_vm10, %v4011_v49, %v4179_v23 }
 0x246   : > { %1079 = vrot.lane.b32.xlu0 %v3817_v35, %s3038_s16  ;;  %1597 = vmatprep.subr.bf16.mxu0 %v1393_v45  ;;  %v5245_v35 = vld [vmem:[#allocation6_spill] sm:$0xff] }
 0x247   : > { %1223 = vrot.lane.b32.xlu1 %v3558_v12, %s3038_s16  ;;  %1598 = vmatpush1.bf16.msra.mxu0 %v1392_v60 }
 0x248   : > { %v4196_v39 = vpop.permute.xlu0 %1261  ;;  %1599 = vmatprep.subr.bf16.mxu0 %v1400_v38 }
 0x249   : > { %v4198_v56 = vpop.permute.xlu1 %1229  ;;  %v1421_v45 = vsel %vm1321_vm10, %v4027_v21, %v4196_v39 }
 0x24a   : > { %1095 = vrot.lane.b32.xlu0 %v5245_v35, %s3038_s16  ;;  %v1407_v12 = vsel %vm1321_vm10, %v4032_v37, %v4198_v56  ;;  %v5252_v35 = vld [vmem:[#allocation27_spill] sm:$0xff] }
 0x24b   : > { %1239 = vrot.lane.b32.xlu1 %v3781_v59, %s3038_s16  ;;  %1600 = vmatpush1.bf16.msra.mxu0 %v1399_v13  ;;  %v1406_v59 = vsel %vm1321_vm10, %v3960_v19, %v4032_v37  ;;  %v5249_v19 = vld [vmem:[#allocation7_spill] sm:$0xff]  ;;  %v1428_v30 = vsel %vm1321_vm10, %v5252_v35, %v5251_v33 }
 0x24c   : > { %v1072_v49 = vpop.permute.xlu0 %1071  ;;  %1601 = vmatprep.subr.bf16.mxu0 %v1407_v12  ;;  %v1359_v12 = vsel %vm1321_vm10, %v5233_v18, %v4122_v58  ;;  %v1006_v18 = vld [vmem:[%s5148_s5] sm:$0xff] }
 0x24d   : > { %v4210_v41 = vpop.permute.xlu1 %1293  ;;  %v1339_v16 = vsel %vm1321_vm10, %v1072_v49, %v4041_v52  ;;  %v1338_v54 = vsel %vm1321_vm10, %v4059_v29, %v1072_v49 }
 0x24e   : > { %1667 = vmatprep.subr.bf16.mxu1 %v1339_v16  ;;  %1111 = vrot.lane.b32.xlu0 %v3757_v25, %s3038_s16  ;;  %v1346_v25 = vsel %vm1321_vm10, %v3894_v32, %v3899_v4  ;;  %v1420_v32 = vsel %vm1321_vm10, %v3939_v20, %v4027_v21 }
 0x24f   : > { %1255 = vrot.lane.b32.xlu1 %v3579_v14, %s3038_s16  ;;  %1602 = vmatpush1.bf16.msra.mxu0 %v1406_v59  ;;  %v5250_v14 = vld [vmem:[#allocation11_spill] sm:$0xff]  ;;  %v5254_v59 = vld [vmem:[#allocation32_spill] sm:$0xff] }
 0x250   : > { %1668 = vmatpush1.bf16.msra.mxu1 %v1338_v54  ;;  %v4226_v27 = vpop.permute.xlu0 %1077  ;;  %1603 = vmatprep.subr.bf16.mxu0 %v1414_v26  ;;  %v1413_v37 = vsel %vm1321_vm10, %v5250_v14, %v5248_v42  ;;  %v5255_v42 = vld [vmem:[#allocation30_spill] sm:$0xff]  ;;  %v1373_v14 = vsel %vm1321_vm10, %v5236_v63, %v4181_v10 }
 0x251   : > { %1669 = vmatprep.subr.bf16.mxu1 %v1346_v25  ;;  %v1104_v29 = vpop.permute.xlu1 %1103  ;;  %v1442_v26 = vsel %vm1321_vm10, %v5255_v42, %v5254_v59  ;;  %v4303_v25 = vld [vmem:[#allocation2] sm:$0xff]  ;;  %v4334_v63 = vld [vmem:[%s5147_s4 + $0x8] ss:$12 sps:$4 sm:$0xff]  }
 0x252   : > { %1127 = vrot.lane.b32.xlu0 %v5249_v19, %s3038_s16  ;;  %v1353_v28 = vsel %vm1321_vm10, %v1104_v29, %v4076_v62 }
 0x253   : > { %1271 = vrot.lane.b32.xlu1 %v5226_v24, %s3038_s16  ;;  %1604 = vmatpush1.bf16.msra.mxu0 %v1413_v37  ;;  %v1352_v24 = vsel %vm1321_vm10, %v4078_v7, %v1104_v29  ;;  %v4275_v7 = vld [vmem:[%s5147_s4] ss:$12 sps:$4 sm:$0xff]  }
 0x254   : > { %1670 = vmatpush1.bf16.msra.mxu1 %v1345_v61  ;;  %v4244_v60 = vpop.permute.xlu0 %1109  ;;  %1605 = vmatprep.subr.bf16.mxu0 %v1421_v45  ;;  %v5256_v29 = vld [vmem:[#allocation33_spill] sm:$0xff]  ;;  %v5258_v61 = vld [vmem:[#allocation35_spill] sm:$0xff] }
 0x255   : > { %1671 = vmatprep.subr.bf16.mxu1 %v1353_v28  ;;  %v1136_v38 = vpop.permute.xlu1 %1135  ;;  %v1441_v19 = vsel %vm1321_vm10, %v5256_v29, %v5255_v42  ;;  %v5257_v37 = vld [vmem:[#allocation37_spill] sm:$0xff]  ;;  %v1348_v42 = vsel %vm1321_vm10, %v3918_v36, %v3933_v5 }
 0x256   : > { %1143 = vrot.lane.b32.xlu0 %v3831_v11, %s3038_s16  ;;  %v1360_v11 = vsel %vm1321_vm10, %v4122_v58, %v4106_v8  ;;  %v1367_v16 = vsel %vm1321_vm10, %v1136_v38, %v4154_v0  ;;  %v1366_v58 = vsel %vm1321_vm10, %v4120_v43, %v1136_v38  ;;  %v1327_v45 = vsel %vm1321_vm10, %v5258_v61, %v5257_v37 }
 0x257   : > { %1287 = vrot.lane.b32.xlu1 %v3852_v51, %s3038_s16  ;;  %1606 = vmatpush1.bf16.msra.mxu0 %v1420_v32  ;;  %v5253_v51 = vld [vmem:[#allocation29_spill] sm:$0xff] }
 0x258   : > { %1672 = vmatpush1.bf16.msra.mxu1 %v1352_v24  ;;  %v4260_v13 = vpop.permute.xlu0 %1141  ;;  %1607 = vmatprep.subr.bf16.mxu0 %v1428_v30  ;;  %v1427_v21 = vsel %vm1321_vm10, %v5253_v51, %v5252_v35 }
 0x259   : > { %1673 = vmatprep.subr.bf16.mxu1 %v1360_v11  ;;  %v4265_v20 = vpop.permute.xlu1 %1155  ;;  %v5259_v11 = vunpack.i.l.bf16 %v3589_v55 }
 0x25a   : > { %1159 = vrot.lane.b32.xlu0 %v3450_v17, %s3038_s16  ;;  %v1435_v17 = vsel %vm1321_vm10, %v4048_v48, %v4210_v41 }
 0x25b   : > { %1303 = vrot.lane.b32.xlu1 %v3916_v15, %s3038_s16  ;;  %1608 = vmatpush1.bf16.msra.mxu0 %v1427_v21  ;;  %v1434_v15 = vsel %vm1321_vm10, %v3975_v44, %v4048_v48  ;;  %v1007_v44 = vld [vmem:[%s5148_s5 + $0x8] sm:$0xff]  ;;  %v1334_v21 = vsel %vm1321_vm10, %v3858_v50, %v3884_v6 }
 0x25c   : > { %1674 = vmatpush1.bf16.msra.mxu1 %v1359_v12  ;;  %v4285_v49 = vpop.permute.xlu0 %1157  ;;  %1620 = vmatprep.subr.bf16.mxu0 %v1435_v17 }
 0x25d   : > { %1675 = vmatprep.subr.bf16.mxu1 %v1367_v16  ;;  %v1168_v54 = vpop.permute.xlu1 %1167  ;;  %v5260_v16 = vunpack.i.h.bf16 %v3589_v55  ;;  %v1340_v55 = vsel %vm1321_vm10, %v4041_v52, %v4057_v9  ;;  %v1355_v52 = vsel %vm1321_vm10, %v4108_v47, %v4244_v60 }
 0x25e   : > { %1319 = vrot.lane.b32.xlu0 %v4093_v46, %s3038_s16  ;;  %1610 = vmatmul.mubr.bf16.vlgmr.msra.gmra.mrb[0].mxu0 %v4275_v7  ;;  %v1374_v46 = vsel %vm1321_vm10, %v4181_v10, %v4169_v53  ;;  %v1380_v10 = vsel %vm1321_vm10, %v4141_v31, %v1168_v54  ;;  %v1326_v31 = vsel %vm1321_vm10, %v5259_v11, %v5258_v61 }
 0x25f   : > { %1621 = vmatpush1.bf16.msra.mxu0 %v1434_v15  ;;  %1652 = vmatprep.mubr.bf16.mxu0 %v4303_v25  ;;  %v1375_v11 = vsel %vm1321_vm10, %v4169_v53, %v4265_v20 }
 0x260   : > { %1676 = vmatpush1.bf16.msra.mxu1 %v1366_v58  ;;  %v4309_v48 = vpop.permute.xlu0 %1169  ;;  %1622 = vmatprep.subr.bf16.mxu0 %v1442_v26 }
 0x261   : > { %1677 = vmatprep.subr.bf16.mxu1 %v1374_v46  ;;  %v4314_v43 = vpop.permute.xlu1 %1171  ;;  %1010 = vperm.xlu1 %3001, %v1006_v18   ;;  %v1381_v38 = vsel %vm1321_vm10, %v1168_v54, %v4309_v48  ;;  %v1333_v54 = vsel %vm1321_vm10, %v5260_v16, %v3858_v50  ;;  %v1347_v46 = vsel %vm1321_vm10, %v3899_v4, %v3918_v36 }
 0x262   : > { %1015 = vperm.xlu0 %3002, %v1007_v44   ;;  %v1362_v4 = vsel %vm1321_vm10, %v4156_v57, %v4139_v1 }
 0x263   : > { %1623 = vmatpush1.bf16.msra.mxu0 %v1441_v19  ;;  %v1354_v19 = vsel %vm1321_vm10, %v4076_v62, %v4108_v47  ;;  %v1369_v62 = vsel %vm1321_vm10, %v4171_v22, %v4260_v13 }
 0x264   : > { %1678 = vmatpush1.bf16.msra.mxu1 %v1373_v14  ;;  %v4325_v28 = vpop.permute.xlu0 %1173  ;;  %1749 = vmatprep.subr.bf16.mxu0 %v1327_v45  ;;  %v1361_v45 = vsel %vm1321_vm10, %v4106_v8, %v4156_v57  ;;  %v1376_v8 = vsel %vm1321_vm10, %v4265_v20, %v4285_v49 }
 0x265   : > { %1679 = vmatprep.subr.bf16.mxu1 %v1381_v38  ;;  %v1184_v32 = vpop.permute.xlu1 %1183  ;;  %2012 = vrot.lane.b32.xlu1 %v4303_v25, %s3032_s9 }
 0x266   : > { %v1387_v51 = vsel %vm1321_vm10, %v5240_v3, %v1184_v32  ;;  %v1341_v3 = vsel %vm1321_vm10, %v4057_v9, %v4226_v27 }
 0x268   : > { %1680 = vmatpush1.bf16.msra.mxu1 %v1380_v10  ;;  %v4338_v24 = vpop.permute.xlu0 %1185 }
 0x269   : > { %v4340_v35 = vpop.permute.xlu1 %1187  ;;  %v1388_v30 = vsel %vm1321_vm10, %v1184_v32, %v4338_v24  ;;  %2035 = vrot.lane.b32.xlu1 %v4303_v25, %s3031_s30  ;;  %v1368_v32 = vsel %vm1321_vm10, %v4154_v0, %v4171_v22  ;;  %v1383_v0 = vsel %vm1321_vm10, %v4314_v43, %v4325_v28 }
 0x26a   : > { %2773 = vmatmul.mubr.msk.bf16.vlgmr.msra.gmra.mrb[0].mxu0 %vm569_vm0, %v4334_v63  ;;  %1681 = vmatprep.subr.bf16.mxu1 %v1388_v30  ;;  %v1389_v16 = vsel %vm1321_vm10, %v4338_v24, %v4340_v35 }
 0x26b   : > { %1750 = vmatpush1.bf16.msra.mxu0 %v1326_v31  ;;  %1781 = vmatprep.mubr.bf16.mxu0 %v3873_v40 }
 0x26c   : > { %1682 = vmatpush1.bf16.msra.mxu1 %v1387_v51  ;;  %1751 = vmatprep.subr.bf16.mxu0 %v1334_v21  ;;  %v4358_v12 = vpop.permute.xlu0 %1189  ;;  %v1382_v51 = vsel %vm1321_vm10, %v4309_v48, %v4314_v43 }
 0x26d   : > { %v1200_v17 = vpop.permute.xlu1 %1199  ;;  %2058 = vrot.lane.b32.xlu1 %v4303_v25, %s3033_s11  ;;  %v1390_v53 = vsel %vm1321_vm10, %v4340_v35, %v4358_v12 }
 0x26e   : > { %v1394_v50 = vsel %vm1321_vm10, %v4179_v23, %v1200_v17 }
 0x26f   : > { %1752 = vmatpush1.bf16.msra.mxu0 %v1333_v54 }
 0x270   : > { %1753 = vmatprep.subr.bf16.mxu0 %v1341_v3  ;;  %v4369_v15 = vpop.permute.xlu0 %1201 }
 0x271   : > { %v4371_v18 = vpop.permute.xlu1 %1203  ;;  %v1395_v58 = vsel %vm1321_vm10, %v1200_v17, %v4369_v15  ;;  %2204 = vrot.lane.b32.xlu1 %v4303_v25, %s3038_s16 }
 0x272   : > { %1683 = vmatprep.subr.bf16.mxu1 %v1395_v58  ;;  %v1396_v3 = vsel %vm1321_vm10, %v4369_v15, %v4371_v18 }
 0x273   : > { %1754 = vmatpush1.bf16.msra.mxu0 %v1340_v55  ;;  %1684 = vmatpush1.bf16.msra.mxu1 %v1394_v50 }
 0x274   : > { %1755 = vmatprep.subr.bf16.mxu0 %v1348_v42  ;;  %v4385_v26 = vpop.permute.xlu0 %1205 }
 0x275   : > { %v1216_v44 = vpop.permute.xlu1 %1215  ;;  %v1397_v48 = vsel %vm1321_vm10, %v4371_v18, %v4385_v26 }
 0x276   : > { %v1401_v14 = vsel %vm1321_vm10, %v5243_v2, %v1216_v44 }
 0x277   : > { %1756 = vmatpush1.bf16.msra.mxu0 %v1347_v46 }
 0x278   : > { %1757 = vmatprep.subr.bf16.mxu0 %v1355_v52  ;;  %v1218_v9 = vpop.permute.xlu0 %1217 }
 0x279   : > { %v1220_v23 = vpop.permute.xlu1 %1219  ;;  %v1402_v29 = vsel %vm1321_vm10, %v1216_v44, %v1218_v9 }
 0x27a   : > { %1685 = vmatprep.subr.bf16.mxu1 %v1402_v29  ;;  %v1403_v50 = vsel %vm1321_vm10, %v1218_v9, %v1220_v23 }
 0x27b   : > { %1758 = vmatpush1.bf16.msra.mxu0 %v1354_v19  ;;  %1686 = vmatpush1.bf16.msra.mxu1 %v1401_v14 }
 0x27c   : > { %1759 = vmatprep.subr.bf16.mxu0 %v1362_v4  ;;  %v4402_v36 = vpop.permute.xlu0 %1221 }
 0x27d   : > { %v1232_v61 = vpop.permute.xlu1 %1231  ;;  %v1404_v24 = vsel %vm1321_vm10, %v1220_v23, %v4402_v36 }
 0x27e   : > { %v1408_v10 = vsel %vm1321_vm10, %v4198_v56, %v1232_v61 }
 0x27f   : > { %1760 = vmatpush1.bf16.msra.mxu0 %v1361_v45 }
 0x280   : > { %1761 = vmatprep.subr.bf16.mxu0 %v1369_v62  ;;  %v1234_v47 = vpop.permute.xlu0 %1233 }
 0x281   : > { %v1236_v2 = vpop.permute.xlu1 %1235  ;;  %v1409_v38 = vsel %vm1321_vm10, %v1232_v61, %v1234_v47 }
 0x282   : > { %1687 = vmatprep.subr.bf16.mxu1 %v1409_v38  ;;  %v1410_v44 = vsel %vm1321_vm10, %v1234_v47, %v1236_v2 }
 0x283   : > { %1762 = vmatpush1.bf16.msra.mxu0 %v1368_v32  ;;  %1688 = vmatpush1.bf16.msra.mxu1 %v1408_v10 }
 0x284   : > { %1763 = vmatprep.subr.bf16.mxu0 %v1376_v8  ;;  %v4419_v57 = vpop.permute.xlu0 %1237 }
 0x285   : > { %v1248_v30 = vpop.permute.xlu1 %1247  ;;  %v1411_v42 = vsel %vm1321_vm10, %v1236_v2, %v4419_v57 }
 0x286   : > { %v1415_v21 = vsel %vm1321_vm10, %v5247_v34, %v1248_v30 }
 0x287   : > { %1764 = vmatpush1.bf16.msra.mxu0 %v1375_v11 }
 0x288   : > { %1765 = vmatprep.subr.bf16.mxu0 %v1383_v0  ;;  %v1250_v22 = vpop.permute.xlu0 %1249 }
 0x289   : > { %v1252_v56 = vpop.permute.xlu1 %1251  ;;  %v1416_v31 = vsel %vm1321_vm10, %v1248_v30, %v1250_v22 }
 0x28a   : > { %1689 = vmatprep.subr.bf16.mxu1 %v1416_v31  ;;  %v1417_v29 = vsel %vm1321_vm10, %v1250_v22, %v1252_v56 }
 0x28b   : > { %1766 = vmatpush1.bf16.msra.mxu0 %v1382_v51  ;;  %1690 = vmatpush1.bf16.msra.mxu1 %v1415_v21 }
 0x28c   : > { %1767 = vmatprep.subr.bf16.mxu0 %v1390_v53  ;;  %v4436_v20 = vpop.permute.xlu0 %1253 }
 0x28d   : > { %v1264_v17 = vpop.permute.xlu1 %1263  ;;  %v1418_v52 = vsel %vm1321_vm10, %v1252_v56, %v4436_v20 }
 0x28e   : > { %v1422_v58 = vsel %vm1321_vm10, %v4196_v39, %v1264_v17 }
 0x28f   : > { %1768 = vmatpush1.bf16.msra.mxu0 %v1389_v16 }
 0x290   : > { %1769 = vmatprep.subr.bf16.mxu0 %v1397_v48  ;;  %v1266_v34 = vpop.permute.xlu0 %1265 }
 0x291   : > { %v1268_v43 = vpop.permute.xlu1 %1267  ;;  %v1423_v54 = vsel %vm1321_vm10, %v1264_v17, %v1266_v34 }
 0x292   : > { %1691 = vmatprep.subr.bf16.mxu1 %v1423_v54  ;;  %v1424_v61 = vsel %vm1321_vm10, %v1266_v34, %v1268_v43 }
 0x293   : > { %1770 = vmatpush1.bf16.msra.mxu0 %v1396_v3  ;;  %1692 = vmatpush1.bf16.msra.mxu1 %v1422_v58 }
 0x294   : > { %1771 = vmatprep.subr.bf16.mxu0 %v1404_v24  ;;  %v4452_v35 = vpop.permute.xlu0 %1269 }
 0x295   : > { %v1280_v55 = vpop.permute.xlu1 %1279  ;;  %v1425_v19 = vsel %vm1321_vm10, %v1268_v43, %v4452_v35 }
 0x296   : > { %v1429_v46 = vsel %vm1321_vm10, %v5251_v33, %v1280_v55 }
 0x297   : > { %1772 = vmatpush1.bf16.msra.mxu0 %v1403_v50 }
 0x298   : > { %1773 = vmatprep.subr.bf16.mxu0 %v1411_v42  ;;  %v1282_v15 = vpop.permute.xlu0 %1281 }
 0x299   : > { %v1284_v18 = vpop.permute.xlu1 %1283  ;;  %v1430_v39 = vsel %vm1321_vm10, %v1280_v55, %v1282_v15 }
 0x29a   : > { %1693 = vmatprep.subr.bf16.mxu1 %v1430_v39  ;;  %v1431_v32 = vsel %vm1321_vm10, %v1282_v15, %v1284_v18  ;;  %v5261_v39 = vmov 0.0  }
 0x29b   : > { %1774 = vmatpush1.bf16.msra.mxu0 %v1410_v44  ;;  %1694 = vmatpush1.bf16.msra.mxu1 %v1429_v46 }
 0x29c   : > { %1775 = vmatprep.subr.bf16.mxu0 %v1418_v52  ;;  %v4463_v9 = vpop.permute.xlu0 %1285 }
 0x29d   : > { %v1296_v23 = vpop.permute.xlu1 %1295  ;;  %v1432_v62 = vsel %vm1321_vm10, %v1284_v18, %v4463_v9 }
 0x29e   : > { %1696 = vmatmul.mubr.bf16.vlgmr.msra.gmra.mrb[12].mxu1 %v4275_v7  ;;  %v1436_v45 = vsel %vm1321_vm10, %v4210_v41, %v1296_v23 }
 0x29f   : > { %1776 = vmatpush1.bf16.msra.mxu0 %v1417_v29  ;;  %1738 = vmatprep.mubr.bf16.mxu1 %v4303_v25 }
 0x2a0   : > { %1777 = vmatprep.subr.bf16.mxu0 %v1425_v19  ;;  %v1298_v33 = vpop.permute.xlu0 %1297 }
 0x2a1   : > { %v1312_v14 = vpop.permute.xlu1 %1311  ;;  %v1437_v4 = vsel %vm1321_vm10, %v1296_v23, %v1298_v33 }
 0x2a2   : > { %1706 = vmatprep.subr.bf16.mxu1 %v1437_v4  ;;  %v1443_v10 = vsel %vm1321_vm10, %v5254_v59, %v1312_v14 }
 0x2a3   : > { %1778 = vmatpush1.bf16.msra.mxu0 %v1424_v61  ;;  %1707 = vmatpush1.bf16.msra.mxu1 %v1436_v45 }
 0x2a4   : > { %1779 = vmatprep.subr.bf16.mxu0 %v1432_v62  ;;  %v1314_v47 = vpop.permute.xlu0 %1313 }
 0x2a5   : > { %v1300_v2 = vpop.permute.xlu1 %1299  ;;  %v1444_v38 = vsel %vm1321_vm10, %v1312_v14, %v1314_v47 }
 0x2a6   : > { %1708 = vmatprep.subr.bf16.mxu1 %v1444_v38  ;;  %v1438_v59 = vsel %vm1321_vm10, %v1298_v33, %v1300_v2 }
 0x2a7   : > { %1780 = vmatpush1.bf16.msra.mxu0 %v1431_v32  ;;  %1709 = vmatpush1.bf16.msra.mxu1 %v1443_v10 }
 0x2a8   : > { %v4480_v8 = vpop.permute.xlu0 %1301 }
 0x2a9   : > { %v1176_v41 = vpop.permute.xlu1 %1175  ;;  %v1439_v30 = vsel %vm1321_vm10, %v1300_v2, %v4480_v8 }
 0x2aa   : > { %2774 = vmatmul.mubr.msk.bf16.vlgmr.msra.gmra.mrb[12].mxu1 %vm569_vm0, %v4334_v63  ;;  %1782 = vmatmul.mubr.bf16.vlgmr.msra.gmra.mrb[4].mxu0 %v4275_v7  ;;  %v1384_v11 = vsel %vm1321_vm10, %v4325_v28, %v1176_v41 }
 0x2ab   : > { %1792 = vmatprep.subr.bf16.mxu0 %v1439_v30  ;;  %2803 = vmatprep.subr.bf16.mxu1 %v1384_v11 }
 0x2ac   : > { %1793 = vmatpush1.bf16.msra.mxu0 %v1438_v59  ;;  %v1048_v0 = vpop.permute.xlu0 %1047  ;;  %1824 = vmatprep.mubr.bf16.mxu0 %v4303_v25 }
 0x2ad   : > { %v1328_v22 = vsel %vm1321_vm10, %v5257_v37, %v1048_v0  ;;  %v1316_v56 = vpop.permute.xlu1 %1315  ;;  %1867 = vmatprep.mubr.bf16.mxu1 %v3873_v40 }
 0x2ae   : > { %2804 = vmatpush3.bf16.msra.mxu1 %v1328_v22  ;;  %v1445_v53 = vsel %vm1321_vm10, %v1314_v47, %v1316_v56 }
 0x2b0   : > { %v1318_v31 = vpop.permute.xlu0 %1317 }
 0x2b1   : > { %v1192_v51 = vpop.permute.xlu1 %1191  ;;  %v1446_v21 = vsel %vm1321_vm10, %v1316_v56, %v1318_v31 }
 0x2b2   : > { %1794 = vmatprep.subr.bf16.mxu0 %v1446_v21  ;;  %v1391_v28 = vsel %vm1321_vm10, %v4358_v12, %v1192_v51 }
 0x2b3   : > { %2805 = vmatprep.subr.bf16.mxu1 %v1391_v28  ;;  %1795 = vmatpush1.bf16.msra.mxu0 %v1445_v53 }
 0x2b4   : > { %v1064_v25 = vpop.permute.xlu0 %1063 }
 0x2b5   : > { %v1335_v37 = vsel %vm1321_vm10, %v3884_v6, %v1064_v25  ;;  %v1208_v17 = vpop.permute.xlu1 %1207 }
 0x2b6   : > { %2775 = vmatmul.mubr.msk.bf16.vlgmr.msra.gmra.mrb[4].mxu0 %vm569_vm0, %v4334_v63  ;;  %2806 = vmatpush3.bf16.msra.mxu1 %v1335_v37  ;;  %v1398_v40 = vsel %vm1321_vm10, %v4385_v26, %v1208_v17 }
 0x2b7   : > { %2807 = vmatprep.subr.bf16.mxu1 %v1398_v40 }
 0x2b8   : > { %v1080_v16 = vpop.permute.xlu0 %1079 }
 0x2b9   : > { %v1342_v12 = vsel %vm1321_vm10, %v4226_v27, %v1080_v16  ;;  %v1224_v48 = vpop.permute.xlu1 %1223 }
 0x2ba   : > { %2808 = vmatpush3.bf16.msra.mxu1 %v1342_v12  ;;  %v1405_v34 = vsel %vm1321_vm10, %v4402_v36, %v1224_v48 }
 0x2bb   : > { %2809 = vmatprep.subr.bf16.mxu1 %v1405_v34 }
 0x2bc   : > { %v1096_v6 = vpop.permute.xlu0 %1095 }
 0x2bd   : > { %v1349_v43 = vsel %vm1321_vm10, %v3933_v5, %v1096_v6  ;;  %v1240_v54 = vpop.permute.xlu1 %1239 }
 0x2be   : > { %2810 = vmatpush3.bf16.msra.mxu1 %v1349_v43  ;;  %v1412_v26 = vsel %vm1321_vm10, %v4419_v57, %v1240_v54 }
 0x2bf   : > { %2811 = vmatprep.subr.bf16.mxu1 %v1412_v26 }
 0x2c0   : > { %v1112_v3 = vpop.permute.xlu0 %1111 }
 0x2c1   : > { %v1356_v27 = vsel %vm1321_vm10, %v4244_v60, %v1112_v3  ;;  %v1256_v58 = vpop.permute.xlu1 %1255 }
 0x2c2   : > { %2812 = vmatpush3.bf16.msra.mxu1 %v1356_v27  ;;  %v1419_v36 = vsel %vm1321_vm10, %v4436_v20, %v1256_v58 }
 0x2c3   : > { %2813 = vmatprep.subr.bf16.mxu1 %v1419_v36 }
 0x2c4   : > { %v1128_v24 = vpop.permute.xlu0 %1127 }
 0x2c5   : > { %v1363_v5 = vsel %vm1321_vm10, %v4139_v1, %v1128_v24  ;;  %v1272_v55 = vpop.permute.xlu1 %1271 }
 0x2c6   : > { %2814 = vmatpush3.bf16.msra.mxu1 %v1363_v5  ;;  %v1426_v57 = vsel %vm1321_vm10, %v4452_v35, %v1272_v55 }
 0x2c7   : > { %2815 = vmatprep.subr.bf16.mxu1 %v1426_v57 }
 0x2c8   : > { %v1144_v50 = vpop.permute.xlu0 %1143 }
 0x2c9   : > { %v1370_v60 = vsel %vm1321_vm10, %v4260_v13, %v1144_v50  ;;  %v1288_v42 = vpop.permute.xlu1 %1287 }
 0x2ca   : > { %2816 = vmatpush3.bf16.msra.mxu1 %v1370_v60  ;;  %v1433_v20 = vsel %vm1321_vm10, %v4463_v9, %v1288_v42 }
 0x2cb   : > { %2817 = vmatprep.subr.bf16.mxu1 %v1433_v20 }
 0x2cc   : > { %v1160_v15 = vpop.permute.xlu0 %1159 }
 0x2cd   : > { %v1377_v1 = vsel %vm1321_vm10, %v4285_v49, %v1160_v15  ;;  %v1304_v18 = vpop.permute.xlu1 %1303  ;;  %v1933_v49 = vlaneseq }
 0x2ce   : > { %2818 = vmatpush3.bf16.msra.mxu1 %v1377_v1  ;;  %v1440_v35 = vsel %vm1321_vm10, %v4480_v8, %v1304_v18 }
 0x2cf   : > { %2850 = vmatprep.subr.bf16.mxu1 %v5261_v39  ;;  %v4535_v46 = vshrl.u32 %v1933_v49, 7 }
 0x2d0   : > { %v1320_v13 = vpop.permute.xlu0 %1319 }
 0x2d1   : > { %1868 = vmatmul.mubr.bf16.vlgmr.msra.gmra.mrb[16].mxu1 %v4275_v7  ;;  %v1447_v44 = vsel %vm1321_vm10, %v1318_v31, %v1320_v13  ;;  %v1935_v52 = vsub.s32 0, %v4535_v46  ;;  %v4541_v7 = vld [vmem:[%s5146_s3] sm:$0x7f]  ;;  %v1939_v23 = vsub.s32 1, %v4535_v46  ;;  %v1943_v56 = vsub.s32 2, %v4535_v46 }
 0x2d2   : > { %2851 = vmatpush3.bf16.msra.mxu1 %v1440_v35  ;;  %2854 = vmatprep.mubr.msk.bf16.mxu1 %vm3040_vm11, %v5261_v39  ;;  %v1947_v51 = vsub.s32 3, %v4535_v46  ;;  %v1951_v24 = vsub.s32 4, %v4535_v46  ;;  %v1955_v55 = vsub.s32 5, %v4535_v46 }
 0x2d3   : > { %2852 = vmatprep.subr.bf16.mxu1 %v5261_v39  ;;  %v1940_v45 = vrot.slane %v4541_v7, %v1939_v23  ;;  %v1944_v17 = vrot.slane %v4541_v7, %v1943_v56 }
 0x2d4   : > { %v1948_v48 = vrot.slane %v4541_v7, %v1947_v51  ;;  %v1952_v15 = vrot.slane %v4541_v7, %v1951_v24  ;;  %v1956_v35 = vrot.slane %v4541_v7, %v1955_v55 }
 0x2d6   : > { %2853 = vmatpush3.bf16.msra.mxu1 %v1447_v44 }
 0x2d9   : > { %2855 = vmatmul.mubr.msk.bf16.vlgmr.msra.gmra.mrb[20].mxu1 %vm569_vm0, %v4334_v63  ;;  %v1936_v63 = vrot.slane %v4541_v7, %v1935_v52 }
 0x2e0   : > { %v4543_v9 = vpop.permute.xlu1 %1010 }
 0x2e1   : > { %v4546_v19 = vpop.permute.xlu0 %1015 }
 0x33d   : > { %v1654_v29 = vpop.f32.mrb[0].mxu0 }
 0x33e   : > { %v1656_v33 = vpop.f32.mrb[1].mxu0  ;;  %v2890_v14 = vadd.f32 %v1654_v29, %v4543_v9 }
 0x33f   : > { %v1658_v4 = vpop.f32.mrb[2].mxu0  ;;  %v2891_v61 = vadd.f32 %v1656_v33, %v4543_v9 }
 0x340   : > { %v2892_v62 = vadd.f32 %v1658_v4, %v4546_v19  ;;  %v1917_v47 = vmax.f32 %v2890_v14, 0.0  ;;  %v1660_v2 = vpop.f32.mrb[3].mxu0 }
 0x341   : > { %v2893_v38 = vadd.f32 %v1660_v2, %v4546_v19  ;;  %v1918_v32 = vmax.f32 %v2891_v61, 0.0 }
 0x342   : > { %v1924_v10 = vmax.f32 %v2892_v62, 0.0  ;;  %v1968_v8 = vmul.f32 %v1936_v63, %v1917_v47 }
 0x343   : > { %v1925_v41 = vmax.f32 %v2893_v38, 0.0  ;;  %v1969_v30 = vmul.f32 %v1940_v45, %v1918_v32  ;;  %v1959_v32 = vsub.s32 6, %v4535_v46 }
 0x344   : > { %v1975_v11 = vmul.f32 %v1936_v63, %v1924_v10 }
 0x345   : > { %v1976_v59 = vmul.f32 %v1940_v45, %v1925_v41  ;;  %v1960_v56 = vrot.slane %v4541_v7, %v1959_v32 }
 0x346   : > { %v4554_v0 = vpack.c.bf16 %v1975_v11, %v1968_v8 }
 0x347   : > { %v4556_v22 = vpack.c.bf16 %v1976_v59, %v1969_v30 }
 0x348   : > { %2014 = vrot.lane.b32.xlu1 %v4554_v0, %s3032_s9 }
 0x34c   : > { %2101 = vrot.lane.b32.xlu1 %v4554_v0, %s3035_s13 }
 0x37d   : > { %v1740_v31 = vpop.f32.mrb[12].mxu1 }
 0x37e   : > { %v2894_v21 = vadd.f32 %v1740_v31, %v4543_v9  ;;  %v1742_v28 = vpop.f32.mrb[13].mxu1 }
 0x37f   : > { %v2895_v53 = vadd.f32 %v1742_v28, %v4543_v9  ;;  %v1744_v25 = vpop.f32.mrb[14].mxu1 }
 0x380   : > { %v1919_v37 = vmax.f32 %v2894_v21, 0.0  ;;  %v2896_v40 = vadd.f32 %v1744_v25, %v4546_v19  ;;  %v1746_v16 = vpop.f32.mrb[15].mxu1  ;;  %v2013_v21 = vpop.permute.xlu1 %2012 }
 0x381   : > { %v1920_v12 = vmax.f32 %v2895_v53, 0.0  ;;  %v2897_v34 = vadd.f32 %v1746_v16, %v4546_v19 }
 0x382   : > { %v1926_v6 = vmax.f32 %v2896_v40, 0.0  ;;  %v1970_v54 = vmul.f32 %v1944_v17, %v1919_v37 }
 0x383   : > { %v1927_v43 = vmax.f32 %v2897_v34, 0.0  ;;  %v1971_v3 = vmul.f32 %v1948_v48, %v1920_v12 }
 0x384   : > { %v1977_v26 = vmul.f32 %v1944_v17, %v1926_v6  ;;  %v2036_v28 = vpop.permute.xlu1 %2035 }
 0x385   : > { %v1978_v27 = vmul.f32 %v1948_v48, %v1927_v43 }
 0x386   : > { %v4570_v58 = vpack.c.bf16 %v1977_v26, %v1970_v54 }
 0x387   : > { %v4572_v36 = vpack.c.bf16 %v1978_v27, %v1971_v3 }
 0x388   : > { %2018 = vrot.lane.b32.xlu0 %v4570_v58, %s3032_s9  ;;  %2105 = vrot.lane.b32.xlu1 %v4570_v58, %s3035_s13 }
 0x389   : > { %v1826_v5 = vpop.f32.mrb[4].mxu0 }
 0x38a   : > { %v2898_v57 = vadd.f32 %v1826_v5, %v4543_v9  ;;  %v1828_v50 = vpop.f32.mrb[5].mxu0 }
 0x38b   : > { %v2899_v60 = vadd.f32 %v1828_v50, %v4543_v9  ;;  %v1830_v42 = vpop.f32.mrb[6].mxu0 }
 0x38c   : > { %v1921_v20 = vmax.f32 %v2898_v57, 0.0  ;;  %v2900_v1 = vadd.f32 %v1830_v42, %v4546_v19  ;;  %v1832_v18 = vpop.f32.mrb[7].mxu0  ;;  %2037 = vrot.lane.b32.xlu0 %v4554_v0, %s3031_s30  ;;  %2141 = vrot.lane.b32.xlu1 %v4554_v0, %s3037_s15 }
 0x38d   : > { %v1922_v39 = vmax.f32 %v2899_v60, 0.0  ;;  %v2901_v13 = vadd.f32 %v1832_v18, %v4546_v19 }
 0x38e   : > { %v1928_v44 = vmax.f32 %v2900_v1, 0.0  ;;  %v1972_v52 = vmul.f32 %v1952_v15, %v1921_v20 }
 0x38f   : > { %v1929_v49 = vmax.f32 %v2901_v13, 0.0  ;;  %v1973_v29 = vmul.f32 %v1956_v35, %v1922_v39 }
 0x390   : > { %v1979_v23 = vmul.f32 %v1952_v15, %v1928_v44  ;;  %2041 = vrot.lane.b32.xlu0 %v4570_v58, %s3031_s30  ;;  %2145 = vrot.lane.b32.xlu1 %v4570_v58, %s3037_s15 }
 0x391   : > { %v1980_v33 = vmul.f32 %v1956_v35, %v1929_v49 }
 0x392   : > { %v4594_v63 = vpack.c.bf16 %v1979_v23, %v1972_v52 }
 0x393   : > { %v4596_v14 = vpack.c.bf16 %v1980_v33, %v1973_v29 }
 0x394   : > { %2060 = vrot.lane.b32.xlu0 %v4554_v0, %s3033_s11  ;;  %2206 = vrot.lane.b32.xlu1 %v4554_v0, %s3038_s16 }
 0x398   : > { %2064 = vrot.lane.b32.xlu0 %v4570_v58, %s3033_s11  ;;  %2016 = vrot.lane.b32.xlu1 %v4556_v22, %s3032_s9 }
 0x39c   : > { %2081 = vrot.lane.b32.xlu0 %v4554_v0, %s3034_s12  ;;  %2039 = vrot.lane.b32.xlu1 %v4556_v22, %s3031_s30 }
 0x3a0   : > { %2085 = vrot.lane.b32.xlu0 %v4570_v58, %s3034_s12  ;;  %2062 = vrot.lane.b32.xlu1 %v4556_v22, %s3033_s11 }
 0x3a4   : > { %v2819_v4 = vpop.f32.mrb[16].mxu1  ;;  %2121 = vrot.lane.b32.xlu0 %v4554_v0, %s3036_s14  ;;  %2083 = vrot.lane.b32.xlu1 %v4556_v22, %s3034_s12 }
 0x3a5   : > { %v2820_v61 = vpop.f32.mrb[17].mxu1 }
 0x3a6   : > { %v2821_v45 = vadd.f32 %v2820_v61, %v2819_v4  ;;  %v2822_v62 = vpop.f32.mrb[18].mxu1 }
 0x3a7   : > { %v2823_v47 = vpop.f32.mrb[19].mxu1 }
 0x3a8   : > { %v2824_v2 = vadd.f32 %v2823_v47, %v2822_v62  ;;  %2125 = vrot.lane.b32.xlu0 %v4570_v58, %s3036_s14  ;;  %2087 = vrot.lane.b32.xlu1 %v4572_v36, %s3034_s12  ;;  %v1870_v38 = vadd.f32 %v2821_v45, %v4543_v9 }
 0x3aa   : > { %v1873_v30 = vadd.f32 %v2824_v2, %v4546_v19 }
 0x3ac   : > { %v1910_v10 = vpop.f32.mrb[20].mxu1  ;;  %2161 = vrot.lane.b32.xlu0 %v4554_v0, %s3039_s20  ;;  %2123 = vrot.lane.b32.xlu1 %v4556_v22, %s3036_s14 }
 0x3ad   : > { %v1911_v8 = vadd.f32 %v1910_v10, %v1870_v38  ;;  %v2856_v41 = vpop.f32.mrb[21].mxu1 }
 0x3ae   : > { %v1913_v11 = vpop.f32.mrb[22].mxu1 }
 0x3af   : > { %v1923_v59 = vmax.f32 %v1911_v8, 0.0  ;;  %v1914_v31 = vadd.f32 %v1913_v11, %v1873_v30  ;;  %v2857_v51 = vpop.f32.mrb[23].mxu1 }
 0x3b0   : > { %2165 = vrot.lane.b32.xlu0 %v4570_v58, %s3039_s20  ;;  %2127 = vrot.lane.b32.xlu1 %v4572_v36, %s3036_s14 }
 0x3b1   : > { %v1930_v46 = vmax.f32 %v1914_v31, 0.0  ;;  %v1974_v9 = vmul.f32 %v1960_v56, %v1923_v59 }
 0x3b3   : > { %v1981_v0 = vmul.f32 %v1960_v56, %v1930_v46 }
 0x3b4   : > { %2210 = vrot.lane.b32.xlu0 %v4570_v58, %s3038_s16  ;;  %2163 = vrot.lane.b32.xlu1 %v4556_v22, %s3039_s20 }
 0x3b5   : > { %v1988_v19 = vpack.c.bf16 %v1981_v0, %v1974_v9 }
 0x3b7   : > { %1995 = vst.msk [vmem:[#allocation3 + $0x38] sm:$0xff] %vm569_vm0, %v1988_v19 }
 0x3b8   : > { %2020 = vrot.lane.b32.xlu0 %v4572_v36, %s3032_s9  ;;  %2167 = vrot.lane.b32.xlu1 %v4572_v36, %s3039_s20 }
 0x3bc   : > { %2043 = vrot.lane.b32.xlu0 %v4572_v36, %s3031_s30  ;;  %2212 = vrot.lane.b32.xlu1 %v4572_v36, %s3038_s16 }
 0x3be   : > { %v4647_v7 = vld [vmem:[#allocation3 + $0x38] sm:$0xff] }
 0x3c0   : > { %2066 = vrot.lane.b32.xlu0 %v4572_v36, %s3033_s11  ;;  %2153 = vrot.lane.b32.xlu1 %v4647_v7, %s3037_s15 }
 0x3c4   : > { %2103 = vrot.lane.b32.xlu0 %v4556_v22, %s3035_s13  ;;  %2022 = vrot.lane.b32.xlu1 %v4594_v63, %s3032_s9 }
 0x3c8   : > { %2107 = vrot.lane.b32.xlu0 %v4572_v36, %s3035_s13  ;;  %2045 = vrot.lane.b32.xlu1 %v4594_v63, %s3031_s30 }
 0x3cc   : > { %2143 = vrot.lane.b32.xlu0 %v4556_v22, %s3037_s15  ;;  %2068 = vrot.lane.b32.xlu1 %v4594_v63, %s3033_s11 }
 0x3d0   : > { %2147 = vrot.lane.b32.xlu0 %v4572_v36, %s3037_s15  ;;  %2109 = vrot.lane.b32.xlu1 %v4594_v63, %s3035_s13 }
 0x3d4   : > { %2208 = vrot.lane.b32.xlu0 %v4556_v22, %s3038_s16  ;;  %2149 = vrot.lane.b32.xlu1 %v4594_v63, %s3037_s15  ;;  %v2059_v22 = vpop.permute.xlu1 %2058 }
 0x3d8   : > { %2024 = vrot.lane.b32.xlu1 %v4596_v14, %s3032_s9  ;;  %2026 = vrot.lane.b32.xlu0 %v4647_v7, %s3032_s9  ;;  %v4693_v53 = vpop.permute.xlu1 %2204 }
 0x3dc   : > { %2047 = vrot.lane.b32.xlu1 %v4596_v14, %s3031_s30  ;;  %2049 = vrot.lane.b32.xlu0 %v4647_v7, %s3031_s30  ;;  %v2015_v25 = vpop.permute.xlu1 %2014 }
 0x3dd   : > { %v2028_v3 = vsel %vm688_vm2, %v2013_v21, %v2015_v25 }
 0x3e0   : > { %2070 = vrot.lane.b32.xlu1 %v4596_v14, %s3033_s11  ;;  %2072 = vrot.lane.b32.xlu0 %v4647_v7, %s3033_s11  ;;  %v4705_v37 = vpop.permute.xlu1 %2101 }
 0x3e4   : > { %2091 = vrot.lane.b32.xlu1 %v4596_v14, %s3034_s12  ;;  %2093 = vrot.lane.b32.xlu0 %v4647_v7, %s3034_s12 }
 0x3e8   : > { %2111 = vrot.lane.b32.xlu1 %v4596_v14, %s3035_s13  ;;  %2113 = vrot.lane.b32.xlu0 %v4647_v7, %s3035_s13 }
 0x3ec   : > { %2131 = vrot.lane.b32.xlu1 %v4596_v14, %s3036_s14  ;;  %2133 = vrot.lane.b32.xlu0 %v4647_v7, %s3036_s14 }
 0x3f0   : > { %2171 = vrot.lane.b32.xlu1 %v4596_v14, %s3039_s20  ;;  %2173 = vrot.lane.b32.xlu0 %v4647_v7, %s3039_s20 }
 0x3f4   : > { %2089 = vrot.lane.b32.xlu0 %v4594_v63, %s3034_s12 }
 0x3f8   : > { %2129 = vrot.lane.b32.xlu0 %v4594_v63, %s3036_s14 }
 0x3fa   : > { %v2019_v17 = vpop.permute.xlu0 %2018  ;;  %v4709_v40 = vpop.permute.xlu1 %2105 }
 0x3fc   : > { %2169 = vrot.lane.b32.xlu0 %v4594_v63, %s3039_s20  ;;  %s2915_s20 = smul.u32 48, %s5263_s19 }
 0x3fe   : > { %v2038_v16 = vpop.permute.xlu0 %2037  ;;  %v4713_v12 = vpop.permute.xlu1 %2141  ;;  %s5122_s22 = scalar_lea.vmem %s5151_s8, %s2915_s20 }
 0x3ff   : > { %v2051_v35 = vsel %vm735_vm3, %v2036_v28, %v2038_v16 }
 0x400   : > { %2151 = vrot.lane.b32.xlu0 %v4596_v14, %s3037_s15 }
 0x402   : > { %v2042_v48 = vpop.permute.xlu0 %2041  ;;  %v4717_v34 = vpop.permute.xlu1 %2145 }
 0x404   : > { %2284 = vrot.lane.b32.xlu0 %v4705_v37, %s3038_s16 }
 0x406   : > { %v2061_v6 = vpop.permute.xlu0 %2060  ;;  %v4721_v43 = vpop.permute.xlu1 %2206 }
 0x407   : > { %v2074_v36 = vsel %vm782_vm4, %v2059_v22, %v2061_v6 }
 0x408   : > { %2316 = vrot.lane.b32.xlu0 %v4713_v12, %s3038_s16 }
 0x40a   : > { %v2065_v54 = vpop.permute.xlu0 %2064  ;;  %v2017_v26 = vpop.permute.xlu1 %2016 }
 0x40b   : > { %v2029_v55 = vsel %vm688_vm2, %v2015_v25, %v2017_v26  ;;  %v2030_v49 = vsel %vm688_vm2, %v2017_v26, %v2019_v17 }
 0x40c   : > { %2220 = vrot.lane.b32.xlu0 %v2028_v3, %s3038_s16 }
 0x40e   : > { %v2082_v27 = vpop.permute.xlu0 %2081  ;;  %v2040_v58 = vpop.permute.xlu1 %2039 }
 0x40f   : > { %2268 = vrot.lane.b32.xlu1 %v2082_v27, %s3038_s16  ;;  %v2053_v60 = vsel %vm735_vm3, %v2040_v58, %v2042_v48  ;;  %v2052_v45 = vsel %vm735_vm3, %v2038_v16, %v2040_v58 }
 0x410   : > { %2252 = vrot.lane.b32.xlu0 %v2074_v36, %s3038_s16 }
 0x412   : > { %v2086_v24 = vpop.permute.xlu0 %2085  ;;  %v2063_v5 = vpop.permute.xlu1 %2062 }
 0x413   : > { %v2076_v2 = vsel %vm782_vm4, %v2063_v5, %v2065_v54  ;;  %v2075_v38 = vsel %vm782_vm4, %v2061_v6, %v2063_v5  ;;  %v4823_v6 = vld [vmem:[%s5149_s6 + $0x4] ss:$8 sps:$4 sm:$0xff]  }
 0x414   : > { %2222 = vrot.lane.b32.xlu0 %v2029_v55, %s3038_s16  ;;  %2779 = vmatprep.mubr.msk.bf16.mxu1 %vm2474_vm12, %v4823_v6 }
 0x415   : > { %2780 = vmatprep.mubr.msk.bf16.mxu0 %vm2474_vm12, %v4823_v6 }
 0x416   : > { %v2122_v57 = vpop.permute.xlu0 %2121  ;;  %v2084_v50 = vpop.permute.xlu1 %2083 }
 0x417   : > { %2300 = vrot.lane.b32.xlu1 %v2122_v57, %s3038_s16  ;;  %v2096_v8 = vsel %vm825_vm5, %v2084_v50, %v2086_v24  ;;  %v2095_v30 = vsel %vm825_vm5, %v2082_v27, %v2084_v50 }
 0x418   : > { %2240 = vrot.lane.b32.xlu0 %v2053_v60, %s3038_s16 }
 0x41a   : > { %v2126_v42 = vpop.permute.xlu0 %2125  ;;  %v4735_v20 = vpop.permute.xlu1 %2087 }
 0x41b   : > { %v2097_v11 = vsel %vm825_vm5, %v2086_v24, %v4735_v20 }
 0x41e   : > { %v4737_v15 = vpop.permute.xlu0 %2161  ;;  %v2124_v1 = vpop.permute.xlu1 %2123 }
 0x41f   : > { %2332 = vrot.lane.b32.xlu1 %v4737_v15, %s3038_s16  ;;  %v2136_v19 = vsel %vm907_vm7, %v2124_v1, %v2126_v42  ;;  %v2135_v25 = vsel %vm907_vm7, %v2122_v57, %v2124_v1 }
 0x422   : > { %v4741_v18 = vpop.permute.xlu0 %2165  ;;  %v4743_v39 = vpop.permute.xlu1 %2127 }
 0x423   : > { %2236 = vrot.lane.b32.xlu1 %v2051_v35, %s3038_s16 }
 0x426   : > { %v2211_v13 = vpop.permute.xlu0 %2210  ;;  %v4747_v44 = vpop.permute.xlu1 %2163 }
 0x427   : > { %2224 = vrot.lane.b32.xlu1 %v2030_v49, %s3038_s16  ;;  %v2175_v27 = vsel %vm989_vm9, %v4737_v15, %v4747_v44 }
 0x42a   : > { %v4751_v52 = vpop.permute.xlu0 %2020  ;;  %v4753_v23 = vpop.permute.xlu1 %2167 }
 0x42b   : > { %v2031_v29 = vsel %vm688_vm2, %v2019_v17, %v4751_v52  ;;  %v2177_v58 = vsel %vm989_vm9, %v4741_v18, %v4753_v23 }
 0x42c   : > { %2226 = vrot.lane.b32.xlu1 %v2031_v29, %s3038_s16 }
 0x42e   : > { %v4758_v33 = vpop.permute.xlu0 %2043  ;;  %v4760_v4 = vpop.permute.xlu1 %2212 }
 0x42f   : > { %v2054_v61 = vsel %vm735_vm3, %v2042_v48, %v4758_v33  ;;  %v2351_v62 = vsel %vm1321_vm10, %v2211_v13, %v4760_v4 }
 0x430   : > { %2242 = vrot.lane.b32.xlu0 %v2054_v61, %s3038_s16  ;;  %2238 = vrot.lane.b32.xlu1 %v2052_v45, %s3038_s16 }
 0x431   : > { %2521 = vmatprep.subr.bf16.mxu0 %v2351_v62 }
 0x432   : > { %v4769_v47 = vpop.permute.xlu0 %2066  ;;  %v4787_v59 = vpop.permute.xlu1 %2153 }
 0x433   : > { %v2077_v10 = vsel %vm782_vm4, %v2065_v54, %v4769_v47 }
 0x434   : > { %2256 = vrot.lane.b32.xlu1 %v2076_v2, %s3038_s16  ;;  %2254 = vrot.lane.b32.xlu0 %v2075_v38, %s3038_s16 }
 0x436   : > { %v2104_v32 = vpop.permute.xlu0 %2103  ;;  %v4797_v9 = vpop.permute.xlu1 %2022 }
 0x437   : > { %v2116_v31 = vsel %vm866_vm6, %v2104_v32, %v4709_v40  ;;  %v2115_v51 = vsel %vm866_vm6, %v4705_v37, %v2104_v32  ;;  %v2137_v37 = vsel %vm907_vm7, %v2126_v42, %v4743_v39  ;;  %v2032_v24 = vsel %vm688_vm2, %v4751_v52, %v4797_v9 }
 0x438   : > { %2258 = vrot.lane.b32.xlu1 %v2077_v10, %s3038_s16  ;;  %2272 = vrot.lane.b32.xlu0 %v2096_v8, %s3038_s16 }
 0x43a   : > { %v4780_v41 = vpop.permute.xlu0 %2107  ;;  %v4812_v17 = vpop.permute.xlu1 %2045 }
 0x43b   : > { %v2117_v0 = vsel %vm866_vm6, %v4709_v40, %v4780_v41  ;;  %v2348_v40 = vsel %vm1321_vm10, %v4693_v53, %v4721_v43  ;;  %v2055_v55 = vsel %vm735_vm3, %v4758_v33, %v4812_v17 }
 0x43c   : > { %2270 = vrot.lane.b32.xlu1 %v2095_v30, %s3038_s16  ;;  %2274 = vrot.lane.b32.xlu0 %v2097_v11, %s3038_s16 }
 0x43e   : > { %v2144_v56 = vpop.permute.xlu0 %2143 }
 0x43f   : > { %v2156_v48 = vsel %vm948_vm8, %v2144_v56, %v4717_v34  ;;  %v2155_v54 = vsel %vm948_vm8, %v4713_v12, %v2144_v56  ;;  %v2176_v12 = vsel %vm989_vm9, %v4747_v44, %v4741_v18 }
 0x440   : > { %2288 = vrot.lane.b32.xlu1 %v2116_v31, %s3038_s16  ;;  %2286 = vrot.lane.b32.xlu0 %v2115_v51, %s3038_s16 }
 0x442   : > { %v4795_v46 = vpop.permute.xlu0 %2147 }
 0x443   : > { %v2157_v26 = vsel %vm948_vm8, %v4717_v34, %v4795_v46 }
 0x444   : > { %2290 = vrot.lane.b32.xlu1 %v2117_v0, %s3038_s16  ;;  %2304 = vrot.lane.b32.xlu0 %v2136_v19, %s3038_s16 }
 0x446   : > { %v2209_v21 = vpop.permute.xlu0 %2208 }
 0x447   : > { %v2350_v28 = vsel %vm1321_vm10, %v2209_v21, %v2211_v13  ;;  %v2349_v22 = vsel %vm1321_vm10, %v4721_v43, %v2209_v21  ;;  %v4833_v43 = vpop.permute.xlu1 %2068 }
 0x448   : > { %2478 = vmatprep.subr.bf16.mxu1 %v2349_v22  ;;  %2302 = vrot.lane.b32.xlu1 %v2135_v25, %s3038_s16 }
 0x449   : > { %2306 = vrot.lane.b32.xlu0 %v2137_v37, %s3038_s16  ;;  %2522 = vmatpush1.bf16.msra.mxu0 %v2350_v28 }
 0x44a   : > { %2479 = vmatpush1.bf16.msra.mxu1 %v2348_v40  ;;  %v2027_v16 = vpop.permute.xlu0 %2026 }
 0x44b   : > { %v4850_v34 = vpop.permute.xlu1 %2109 }
 0x44c   : > { %2320 = vrot.lane.b32.xlu1 %v2156_v48, %s3038_s16  ;;  %v2118_v18 = vsel %vm866_vm6, %v4780_v41, %v4850_v34  ;;  %v2183_v48 = vld [vmem:[%s5150_s7] sm:$0xff] }
 0x44d   : > { %2318 = vrot.lane.b32.xlu0 %v2155_v54, %s3038_s16 }
 0x44e   : > { %v2050_v53 = vpop.permute.xlu0 %2049 }
 0x44f   : > { %v4862_v57 = vpop.permute.xlu1 %2149 }
 0x450   : > { %2322 = vrot.lane.b32.xlu1 %v2157_v26, %s3038_s16 }
 0x451   : > { %2336 = vrot.lane.b32.xlu0 %v2176_v12, %s3038_s16 }
 0x452   : > { %v2073_v3 = vpop.permute.xlu0 %2072 }
 0x453   : > { %v2025_v60 = vpop.permute.xlu1 %2024 }
 0x454   : > { %2334 = vrot.lane.b32.xlu1 %v2175_v27, %s3038_s16  ;;  %v2034_v33 = vsel %vm688_vm2, %v2025_v60, %v2027_v16  ;;  %v2033_v61 = vsel %vm688_vm2, %v4797_v9, %v2025_v60 }
 0x455   : > { %2338 = vrot.lane.b32.xlu0 %v2177_v58, %s3038_s16 }
 0x456   : > { %v2094_v36 = vpop.permute.xlu0 %2093 }
 0x457   : > { %v2048_v1 = vpop.permute.xlu1 %2047 }
 0x458   : > { %2216 = vrot.lane.b32.xlu1 %v4596_v14, %s3038_s16  ;;  %v2078_v14 = vsel %vm782_vm4, %v4769_v47, %v4833_v43  ;;  %v2057_v47 = vsel %vm735_vm3, %v2048_v1, %v2050_v53 }
 0x459   : > { %2228 = vrot.lane.b32.xlu0 %v2032_v24, %s3038_s16 }
 0x45a   : > { %v2114_v5 = vpop.permute.xlu0 %2113 }
 0x45b   : > { %v2071_v13 = vpop.permute.xlu1 %2070 }
 0x45c   : > { %2244 = vrot.lane.b32.xlu1 %v2055_v55, %s3038_s16  ;;  %v2080_v2 = vsel %vm782_vm4, %v2071_v13, %v2073_v3  ;;  %v2079_v10 = vsel %vm782_vm4, %v4833_v43, %v2071_v13  ;;  %v2184_v43 = vld [vmem:[%s5150_s7 + $0x8] sm:$0xff] }
 0x45d   : > { %2214 = vrot.lane.b32.xlu0 %v4594_v63, %s3038_s16 }
 0x45e   : > { %v4867_v50 = vpop.permute.xlu0 %2133 }
 0x45f   : > { %v2092_v44 = vpop.permute.xlu1 %2091 }
 0x460   : > { %2234 = vrot.lane.b32.xlu1 %v2027_v16, %s3038_s16  ;;  %v2100_v30 = vsel %vm825_vm5, %v2092_v44, %v2094_v36 }
 0x461   : > { %2260 = vrot.lane.b32.xlu0 %v2078_v14, %s3038_s16 }
 0x462   : > { %v4874_v42 = vpop.permute.xlu0 %2173 }
 0x465   : > { %2218 = vrot.lane.b32.xlu0 %v4647_v7, %s3038_s16 }
 0x466   : > { %v2090_v15 = vpop.permute.xlu0 %2089 }
 0x467   : > { %v2098_v63 = vsel %vm825_vm5, %v4735_v20, %v2090_v15  ;;  %v2158_v20 = vsel %vm948_vm8, %v4795_v46, %v4862_v57  ;;  %v2099_v8 = vsel %vm825_vm5, %v2090_v15, %v2092_v44 }
 0x468   : > { %2276 = vrot.lane.b32.xlu1 %v2098_v63, %s3038_s16 }
 0x469   : > { %2292 = vrot.lane.b32.xlu0 %v2118_v18, %s3038_s16 }
 0x46a   : > { %v2130_v35 = vpop.permute.xlu0 %2129 }
 0x46b   : > { %v2138_v7 = vsel %vm907_vm7, %v4743_v39, %v2130_v35  ;;  %v2112_v39 = vpop.permute.xlu1 %2111 }
 0x46c   : > { %2266 = vrot.lane.b32.xlu1 %v2073_v3, %s3038_s16  ;;  %v2120_v11 = vsel %vm866_vm6, %v2112_v39, %v2114_v5  ;;  %v2119_v51 = vsel %vm866_vm6, %v4850_v34, %v2112_v39 }
 0x46d   : > { %2250 = vrot.lane.b32.xlu0 %v2050_v53, %s3038_s16 }
 0x46e   : > { %v2170_v49 = vpop.permute.xlu0 %2169 }
 0x46f   : > { %v2178_v52 = vsel %vm989_vm9, %v4753_v23, %v2170_v49  ;;  %v2132_v45 = vpop.permute.xlu1 %2131  ;;  %v2056_v23 = vsel %vm735_vm3, %v4812_v17, %v2048_v1 }
 0x470   : > { %2308 = vrot.lane.b32.xlu1 %v2138_v7, %s3038_s16  ;;  %v2139_v46 = vsel %vm907_vm7, %v2130_v35, %v2132_v45  ;;  %v2140_v19 = vsel %vm907_vm7, %v2132_v45, %v4867_v50 }
 0x471   : > { %2324 = vrot.lane.b32.xlu0 %v2158_v20, %s3038_s16 }
 0x472   : > { %v2152_v29 = vpop.permute.xlu0 %2151 }
 0x473   : > { %v2172_v38 = vpop.permute.xlu1 %2171  ;;  %v2160_v21 = vsel %vm948_vm8, %v2152_v29, %v4787_v59  ;;  %v2159_v22 = vsel %vm948_vm8, %v4862_v57, %v2152_v29 }
 0x474   : > { %2298 = vrot.lane.b32.xlu1 %v2114_v5, %s3038_s16  ;;  %v2179_v25 = vsel %vm989_vm9, %v2170_v49, %v2172_v38  ;;  %v2180_v40 = vsel %vm989_vm9, %v2172_v38, %v4874_v42 }
 0x475   : > { %2282 = vrot.lane.b32.xlu0 %v2094_v36, %s3038_s16 }
 0x476   : > { %v4909_v62 = vpop.permute.xlu0 %2284 }
 0x478   : > { %2340 = vrot.lane.b32.xlu1 %v2178_v52, %s3038_s16 }
 0x479   : > { %2314 = vrot.lane.b32.xlu0 %v4867_v50, %s3038_s16 }
 0x47a   : > { %v4917_v32 = vpop.permute.xlu0 %2316 }
 0x47c   : > { %2330 = vrot.lane.b32.xlu1 %v4787_v59, %s3038_s16 }
 0x47d   : > { %2232 = vrot.lane.b32.xlu0 %v2034_v33, %s3038_s16 }
 0x47e   : > { %v2221_v56 = vpop.permute.xlu0 %2220 }
 0x480   : > { %2230 = vrot.lane.b32.xlu1 %v2033_v61, %s3038_s16 }
 0x481   : > { %2246 = vrot.lane.b32.xlu0 %v2056_v23, %s3038_s16  ;;  %v2269_v41 = vpop.permute.xlu1 %2268 }
 0x482   : > { %v2253_v0 = vpop.permute.xlu0 %2252 }
 0x484   : > { %2248 = vrot.lane.b32.xlu1 %v2057_v47, %s3038_s16 }
 0x485   : > { %2264 = vrot.lane.b32.xlu0 %v2080_v2, %s3038_s16  ;;  %v5007_v2 = vld [vmem:[%s5149_s6] ss:$8 sps:$4 sm:$0xff]  }
 0x486   : > { %v2223_v37 = vpop.permute.xlu0 %2222 }
 0x487   : > { %v2355_v16 = vsel %vm1321_vm10, %v2221_v56, %v2223_v37 }
 0x488   : > { %2262 = vrot.lane.b32.xlu1 %v2079_v10, %s3038_s16 }
 0x489   : > { %2278 = vrot.lane.b32.xlu0 %v2099_v8, %s3038_s16  ;;  %v4927_v31 = vpop.permute.xlu1 %2300 }
 0x48a   : > { %v4961_v54 = vpop.permute.xlu0 %2240 }
 0x48c   : > { %2280 = vrot.lane.b32.xlu1 %v2100_v30, %s3038_s16 }
 0x48d   : > { %2296 = vrot.lane.b32.xlu0 %v2120_v11, %s3038_s16 }
 0x490   : > { %2294 = vrot.lane.b32.xlu1 %v2119_v51, %s3038_s16 }
 0x491   : > { %2310 = vrot.lane.b32.xlu0 %v2139_v46, %s3038_s16  ;;  %v4935_v9 = vpop.permute.xlu1 %2332 }
 0x494   : > { %2312 = vrot.lane.b32.xlu1 %v2140_v19, %s3038_s16 }
 0x495   : > { %2328 = vrot.lane.b32.xlu0 %v2160_v21, %s3038_s16  ;;  %v2237_v28 = vpop.permute.xlu1 %2236 }
 0x498   : > { %2326 = vrot.lane.b32.xlu1 %v2159_v22, %s3038_s16 }
 0x499   : > { %2342 = vrot.lane.b32.xlu0 %v2179_v25, %s3038_s16  ;;  %v4948_v17 = vpop.permute.xlu1 %2224 }
 0x49a   : > { %v2356_v59 = vsel %vm1321_vm10, %v2223_v37, %v4948_v17 }
 0x49b   : > { %2480 = vmatprep.subr.bf16.mxu1 %v2356_v59 }
 0x49c   : > { %2344 = vrot.lane.b32.xlu1 %v2180_v40, %s3038_s16  ;;  %2481 = vmatpush1.bf16.msra.mxu1 %v2355_v16 }
 0x49d   : > { %2346 = vrot.lane.b32.xlu0 %v4874_v42, %s3038_s16 }
 0x49e   : > { %v2227_v53 = vpop.permute.xlu1 %2226 }
 0x49f   : > { %v2357_v8 = vsel %vm1321_vm10, %v4948_v17, %v2227_v53 }
 0x4a0   : > { %2187 = vperm.xlu1 %3001, %v2183_v48  }
 0x4a1   : > { %2192 = vperm.xlu0 %3002, %v2184_v43  }
 0x4a2   : > { %v4966_v26 = vpop.permute.xlu0 %2242  ;;  %v2239_v12 = vpop.permute.xlu1 %2238 }
 0x4a3   : > { %v2362_v3 = vsel %vm1321_vm10, %v2237_v28, %v2239_v12  ;;  %v2363_v27 = vsel %vm1321_vm10, %v2239_v12, %v4961_v54  ;;  %v2364_v51 = vsel %vm1321_vm10, %v4961_v54, %v4966_v26 }
 0x4a4   : > { %2482 = vmatprep.subr.bf16.mxu1 %v2363_v27 }
 0x4a5   : > { %2483 = vmatpush1.bf16.msra.mxu1 %v2362_v3 }
 0x4a6   : > { %v2255_v58 = vpop.permute.xlu0 %2254  ;;  %v4971_v34 = vpop.permute.xlu1 %2256 }
 0x4a7   : > { %v2369_v36 = vsel %vm1321_vm10, %v2253_v0, %v2255_v58  ;;  %v2370_v24 = vsel %vm1321_vm10, %v2255_v58, %v4971_v34 }
 0x4a8   : > { %2484 = vmatprep.subr.bf16.mxu1 %v2370_v24 }
 0x4a9   : > { %2485 = vmatpush1.bf16.msra.mxu1 %v2369_v36 }
 0x4aa   : > { %v4976_v5 = vpop.permute.xlu0 %2272  ;;  %v2259_v55 = vpop.permute.xlu1 %2258 }
 0x4ab   : > { %v2371_v0 = vsel %vm1321_vm10, %v4971_v34, %v2259_v55 }
 0x4ae   : > { %v4978_v57 = vpop.permute.xlu0 %2274  ;;  %v2271_v50 = vpop.permute.xlu1 %2270 }
 0x4af   : > { %v2376_v14 = vsel %vm1321_vm10, %v2269_v41, %v2271_v50  ;;  %v2377_v60 = vsel %vm1321_vm10, %v2271_v50, %v4976_v5  ;;  %v2378_v25 = vsel %vm1321_vm10, %v4976_v5, %v4978_v57  ;;  %v5068_v5 = vld [vmem:[#allocation2] sm:$0xff] }
 0x4b0   : > { %2486 = vmatprep.subr.bf16.mxu1 %v2377_v60 }
 0x4b1   : > { %2487 = vmatpush1.bf16.msra.mxu1 %v2376_v14 }
 0x4b2   : > { %v2287_v42 = vpop.permute.xlu0 %2286  ;;  %v4983_v15 = vpop.permute.xlu1 %2288 }
 0x4b3   : > { %v2383_v1 = vsel %vm1321_vm10, %v4909_v62, %v2287_v42  ;;  %v2384_v63 = vsel %vm1321_vm10, %v2287_v42, %v4983_v15 }
 0x4b4   : > { %2488 = vmatprep.subr.bf16.mxu1 %v2384_v63 }
 0x4b5   : > { %2489 = vmatpush1.bf16.msra.mxu1 %v2383_v1 }
 0x4b6   : > { %v4989_v18 = vpop.permute.xlu0 %2304  ;;  %v2291_v35 = vpop.permute.xlu1 %2290 }
 0x4b7   : > { %v2385_v40 = vsel %vm1321_vm10, %v4983_v15, %v2291_v35 }
 0x4ba   : > { %v2303_v13 = vpop.permute.xlu1 %2302 }
 0x4bb   : > { %v2307_v7 = vpop.permute.xlu0 %2306  ;;  %v2390_v20 = vsel %vm1321_vm10, %v4927_v31, %v2303_v13  ;;  %v2391_v44 = vsel %vm1321_vm10, %v2303_v13, %v4989_v18 }
 0x4bc   : > { %2490 = vmatprep.subr.bf16.mxu1 %v2391_v44 }
 0x4bd   : > { %2491 = vmatpush1.bf16.msra.mxu1 %v2390_v20 }
 0x4be   : > { %v4995_v49 = vpop.permute.xlu1 %2320 }
 0x4bf   : > { %v2319_v52 = vpop.permute.xlu0 %2318 }
 0x4c0   : > { %v2397_v39 = vsel %vm1321_vm10, %v4917_v32, %v2319_v52  ;;  %v2398_v29 = vsel %vm1321_vm10, %v2319_v52, %v4995_v49 }
 0x4c1   : > { %2492 = vmatprep.subr.bf16.mxu1 %v2398_v29 }
 0x4c2   : > { %2493 = vmatpush1.bf16.msra.mxu1 %v2397_v39  ;;  %v2323_v33 = vpop.permute.xlu1 %2322 }
 0x4c3   : > { %v2337_v61 = vpop.permute.xlu0 %2336  ;;  %v2399_v3 = vsel %vm1321_vm10, %v4995_v49, %v2323_v33 }
 0x4c6   : > { %v2335_v45 = vpop.permute.xlu1 %2334 }
 0x4c7   : > { %v2339_v23 = vpop.permute.xlu0 %2338  ;;  %v2404_v62 = vsel %vm1321_vm10, %v4935_v9, %v2335_v45  ;;  %v2405_v47 = vsel %vm1321_vm10, %v2335_v45, %v2337_v61 }
 0x4c8   : > { %2494 = vmatprep.subr.bf16.mxu1 %v2405_v47  ;;  %v2406_v36 = vsel %vm1321_vm10, %v2337_v61, %v2339_v23 }
 0x4c9   : > { %2495 = vmatpush1.bf16.msra.mxu1 %v2404_v62 }
 0x4ca   : > { %v2217_v38 = vpop.permute.xlu1 %2216 }
 0x4cb   : > { %v5009_v32 = vpop.permute.xlu0 %2228 }
 0x4cc   : > { %2511 = vmatmul.mubr.bf16.vlgmr.msra.gmra.mrb[24].mxu1 %v5007_v2  ;;  %v2358_v10 = vsel %vm1321_vm10, %v2227_v53, %v5009_v32  ;;  %v2392_v53 = vsel %vm1321_vm10, %v4989_v18, %v2307_v7 }
 0x4cd   : > { %2523 = vmatprep.subr.bf16.mxu0 %v2358_v10  ;;  %2781 = vmatprep.mubr.msk.bf16.mxu1 %vm2474_vm12, %v4823_v6 }
 0x4ce   : > { %2524 = vmatpush1.bf16.msra.mxu0 %v2357_v8  ;;  %v5018_v41 = vpop.permute.xlu1 %2244 }
 0x4cf   : > { %v2215_v30 = vpop.permute.xlu0 %2214  ;;  %v2365_v11 = vsel %vm1321_vm10, %v4966_v26, %v5018_v41 }
 0x4d0   : > { %v2352_v56 = vsel %vm1321_vm10, %v4760_v4, %v2215_v30  ;;  %2525 = vmatprep.subr.bf16.mxu0 %v2365_v11  ;;  %v2353_v31 = vsel %vm1321_vm10, %v2215_v30, %v2217_v38 }
 0x4d1   : > { %2562 = vmatprep.subr.bf16.mxu1 %v2353_v31 }
 0x4d2   : > { %2526 = vmatpush1.bf16.msra.mxu0 %v2364_v51  ;;  %2563 = vmatpush1.bf16.msra.mxu1 %v2352_v56  ;;  %v2235_v4 = vpop.permute.xlu1 %2234 }
 0x4d3   : > { %v5029_v46 = vpop.permute.xlu0 %2260 }
 0x4d4   : > { %v2372_v9 = vsel %vm1321_vm10, %v2259_v55, %v5029_v46 }
 0x4d5   : > { %2527 = vmatprep.subr.bf16.mxu0 %v2372_v9 }
 0x4d6   : > { %2528 = vmatpush1.bf16.msra.mxu0 %v2371_v0 }
 0x4d7   : > { %v2219_v19 = vpop.permute.xlu0 %2218 }
 0x4da   : > { %v5035_v21 = vpop.permute.xlu1 %2276 }
 0x4db   : > { %v5037_v28 = vpop.permute.xlu0 %2292  ;;  %v2379_v22 = vsel %vm1321_vm10, %v4978_v57, %v5035_v21  ;;  %v2354_v57 = vsel %vm1321_vm10, %v2217_v38, %v2219_v19 }
 0x4dc   : > { %2529 = vmatprep.subr.bf16.mxu0 %v2379_v22  ;;  %v2386_v37 = vsel %vm1321_vm10, %v2291_v35, %v5037_v28 }
 0x4dd   : > { %2530 = vmatpush1.bf16.msra.mxu0 %v2378_v25 }
 0x4de   : > { %2531 = vmatprep.subr.bf16.mxu0 %v2386_v37  ;;  %v2267_v17 = vpop.permute.xlu1 %2266 }
 0x4df   : > { %v2251_v59 = vpop.permute.xlu0 %2250 }
 0x4e1   : > { %2532 = vmatpush1.bf16.msra.mxu0 %v2385_v40 }
 0x4e2   : > { %v5049_v16 = vpop.permute.xlu1 %2308 }
 0x4e3   : > { %v5051_v48 = vpop.permute.xlu0 %2324  ;;  %v2393_v54 = vsel %vm1321_vm10, %v2307_v7, %v5049_v16 }
 0x4e4   : > { %2533 = vmatprep.subr.bf16.mxu0 %v2393_v54  ;;  %v2400_v43 = vsel %vm1321_vm10, %v2323_v33, %v5051_v48 }
 0x4e5   : > { %2534 = vmatpush1.bf16.msra.mxu0 %v2392_v53 }
 0x4e6   : > { %2535 = vmatprep.subr.bf16.mxu0 %v2400_v43  ;;  %v2299_v26 = vpop.permute.xlu1 %2298 }
 0x4e7   : > { %v2283_v12 = vpop.permute.xlu0 %2282 }
 0x4e9   : > { %2536 = vmatpush1.bf16.msra.mxu0 %v2399_v3 }
 0x4ea   : > { %v5061_v27 = vpop.permute.xlu1 %2340 }
 0x4eb   : > { %v2315_v58 = vpop.permute.xlu0 %2314  ;;  %v2407_v34 = vsel %vm1321_vm10, %v2339_v23, %v5061_v27 }
 0x4ec   : > { %2537 = vmatprep.subr.bf16.mxu0 %v2407_v34 }
 0x4ed   : > { %2538 = vmatpush1.bf16.msra.mxu0 %v2406_v36 }
 0x4ee   : > { %v5066_v24 = vpop.permute.xlu1 %2330  ;;  %2605 = vmatprep.subr.bf16.mxu0 %v5068_v5 }
 0x4ef   : > { %v2233_v55 = vpop.permute.xlu0 %2232 }
 0x4f0   : > { %2554 = vmatmul.mubr.bf16.vlgmr.msra.gmra.mrb[8].mxu0 %v5007_v2  ;;  %v2361_v15 = vsel %vm1321_vm10, %v2233_v55, %v2235_v4 }
 0x4f1   : > { %2606 = vmatpush1.bf16.msra.mxu0 %v2354_v57  ;;  %2782 = vmatprep.mubr.msk.bf16.mxu0 %vm2474_vm12, %v4823_v6 }
 0x4f2   : > { %v2231_v50 = vpop.permute.xlu1 %2230  ;;  %2607 = vmatprep.subr.bf16.mxu0 %v5068_v5 }
 0x4f3   : > { %v2247_v14 = vpop.permute.xlu0 %2246  ;;  %v2359_v60 = vsel %vm1321_vm10, %v5009_v32, %v2231_v50  ;;  %v2360_v42 = vsel %vm1321_vm10, %v2231_v50, %v2233_v55 }
 0x4f4   : > { %2564 = vmatprep.subr.bf16.mxu1 %v2360_v42  ;;  %v2366_v35 = vsel %vm1321_vm10, %v5018_v41, %v2247_v14 }
 0x4f5   : > { %2565 = vmatpush1.bf16.msra.mxu1 %v2359_v60  ;;  %2608 = vmatpush1.bf16.msra.mxu0 %v2361_v15 }
 0x4f6   : > { %v2249_v1 = vpop.permute.xlu1 %2248  ;;  %2609 = vmatprep.subr.bf16.mxu0 %v5068_v5 }
 0x4f7   : > { %v2265_v63 = vpop.permute.xlu0 %2264  ;;  %v2368_v6 = vsel %vm1321_vm10, %v2249_v1, %v2251_v59  ;;  %v2367_v18 = vsel %vm1321_vm10, %v2247_v14, %v2249_v1 }
 0x4f8   : > { %2566 = vmatprep.subr.bf16.mxu1 %v2367_v18  ;;  %v2375_v49 = vsel %vm1321_vm10, %v2265_v63, %v2267_v17 }
 0x4f9   : > { %2567 = vmatpush1.bf16.msra.mxu1 %v2366_v35  ;;  %2610 = vmatpush1.bf16.msra.mxu0 %v2368_v6 }
 0x4fa   : > { %v2263_v13 = vpop.permute.xlu1 %2262  ;;  %2611 = vmatprep.subr.bf16.mxu0 %v5068_v5 }
 0x4fb   : > { %v2279_v7 = vpop.permute.xlu0 %2278  ;;  %v2373_v20 = vsel %vm1321_vm10, %v5029_v46, %v2263_v13  ;;  %v2374_v44 = vsel %vm1321_vm10, %v2263_v13, %v2265_v63 }
 0x4fc   : > { %2568 = vmatprep.subr.bf16.mxu1 %v2374_v44  ;;  %v2380_v61 = vsel %vm1321_vm10, %v5035_v21, %v2279_v7 }
 0x4fd   : > { %2569 = vmatpush1.bf16.msra.mxu1 %v2373_v20  ;;  %2612 = vmatpush1.bf16.msra.mxu0 %v2375_v49 }
 0x4fe   : > { %v2281_v52 = vpop.permute.xlu1 %2280  ;;  %2613 = vmatprep.subr.bf16.mxu0 %v5068_v5 }
 0x4ff   : > { %v2297_v39 = vpop.permute.xlu0 %2296  ;;  %v2382_v29 = vsel %vm1321_vm10, %v2281_v52, %v2283_v12  ;;  %v2381_v33 = vsel %vm1321_vm10, %v2279_v7, %v2281_v52 }
 0x500   : > { %2570 = vmatprep.subr.bf16.mxu1 %v2381_v33  ;;  %v2389_v38 = vsel %vm1321_vm10, %v2297_v39, %v2299_v26 }
 0x501   : > { %2571 = vmatpush1.bf16.msra.mxu1 %v2380_v61  ;;  %2614 = vmatpush1.bf16.msra.mxu0 %v2382_v29 }
 0x502   : > { %v2295_v45 = vpop.permute.xlu1 %2294  ;;  %2615 = vmatprep.subr.bf16.mxu0 %v5068_v5 }
 0x503   : > { %v2311_v23 = vpop.permute.xlu0 %2310  ;;  %v2387_v62 = vsel %vm1321_vm10, %v5037_v28, %v2295_v45  ;;  %v2388_v47 = vsel %vm1321_vm10, %v2295_v45, %v2297_v39 }
 0x504   : > { %2572 = vmatprep.subr.bf16.mxu1 %v2388_v47  ;;  %v2394_v30 = vsel %vm1321_vm10, %v5049_v16, %v2311_v23 }
 0x505   : > { %2573 = vmatpush1.bf16.msra.mxu1 %v2387_v62  ;;  %2616 = vmatpush1.bf16.msra.mxu0 %v2389_v38 }
 0x506   : > { %v2313_v32 = vpop.permute.xlu1 %2312  ;;  %2617 = vmatprep.subr.bf16.mxu0 %v5068_v5 }
 0x507   : > { %v2329_v10 = vpop.permute.xlu0 %2328  ;;  %v2396_v8 = vsel %vm1321_vm10, %v2313_v32, %v2315_v58  ;;  %v2395_v41 = vsel %vm1321_vm10, %v2311_v23, %v2313_v32 }
 0x508   : > { %2574 = vmatprep.subr.bf16.mxu1 %v2395_v41  ;;  %v2403_v46 = vsel %vm1321_vm10, %v2329_v10, %v5066_v24 }
 0x509   : > { %2575 = vmatpush1.bf16.msra.mxu1 %v2394_v30  ;;  %2618 = vmatpush1.bf16.msra.mxu0 %v2396_v8 }
 0x50a   : > { %v2327_v11 = vpop.permute.xlu1 %2326  ;;  %2619 = vmatprep.subr.bf16.mxu0 %v5068_v5 }
 0x50b   : > { %v2343_v56 = vpop.permute.xlu0 %2342  ;;  %v2401_v31 = vsel %vm1321_vm10, %v5051_v48, %v2327_v11  ;;  %v2402_v51 = vsel %vm1321_vm10, %v2327_v11, %v2329_v10 }
 0x50c   : > { %2576 = vmatprep.subr.bf16.mxu1 %v2402_v51  ;;  %v2408_v19 = vsel %vm1321_vm10, %v5061_v27, %v2343_v56 }
 0x50d   : > { %2577 = vmatpush1.bf16.msra.mxu1 %v2401_v31  ;;  %2620 = vmatpush1.bf16.msra.mxu0 %v2403_v46 }
 0x50e   : > { %v2345_v9 = vpop.permute.xlu1 %2344  ;;  %2621 = vmatprep.subr.bf16.mxu0 %v5068_v5 }
 0x50f   : > { %v2347_v0 = vpop.permute.xlu0 %2346  ;;  %v2409_v4 = vsel %vm1321_vm10, %v2343_v56, %v2345_v9 }
 0x510   : > { %v2410_v21 = vsel %vm1321_vm10, %v2345_v9, %v2347_v0  ;;  %2578 = vmatprep.subr.bf16.mxu1 %v2409_v4 }
 0x511   : > { %2579 = vmatpush1.bf16.msra.mxu1 %v2408_v19  ;;  %2622 = vmatpush1.bf16.msra.mxu0 %v2410_v21 }
 0x514   : > { %2595 = vmatmul.mubr.bf16.vlgmr.msra.gmra.mrb[28].mxu1 %v5007_v2  ;;  %2638 = vmatmul.mubr.bf16.vlgmr.msra.gmra.mrb[12].mxu0 %v5007_v2 }
 0x51f   : > { %v2188_v28 = vpop.permute.xlu1 %2187 }
 0x520   : > { %v2193_v17 = vpop.permute.xlu0 %2192 }
 0x59f   : > { %v2512_v22 = vpop.f32.mrb[24].mxu1 }
 0x5a0   : > { %v2513_v25 = vadd.f32 %v2512_v22, %v2188_v28  ;;  %v2514_v37 = vpop.f32.mrb[25].mxu1 }
 0x5a1   : > { %v2515_v59 = vadd.f32 %v2514_v37, %v2188_v28  ;;  %v2516_v40 = vpop.f32.mrb[26].mxu1 }
 0x5a2   : > { %v2646_v16 = vmax.f32 %v2513_v25, 0.0  ;;  %v2517_v48 = vadd.f32 %v2516_v40, %v2193_v17  ;;  %v2518_v2 = vpop.f32.mrb[27].mxu1 }
 0x5a3   : > { %v2647_v54 = vmax.f32 %v2515_v59, 0.0  ;;  %v2519_v53 = vadd.f32 %v2518_v2, %v2193_v17 }
 0x5a4   : > { %2658 = vst [vmem:[%s5122_s22] sm:$0xff] %v2646_v16  ;;  %v2652_v43 = vmax.f32 %v2517_v48, 0.0 }
 0x5a5   : > { %2659 = vst [vmem:[%s5122_s22 + $0x8] sm:$0xff] %v2647_v54  ;;  %v2653_v26 = vmax.f32 %v2519_v53, 0.0 }
 0x5a6   : > { %2661 = vst [vmem:[%s5122_s22 + $0x18] sm:$0xff] %v2652_v43 }
 0x5a7   : > { %2662 = vst [vmem:[%s5122_s22 + $0x20] sm:$0xff] %v2653_v26 }
 0x5c3   : > { %v2555_v12 = vpop.f32.mrb[8].mxu0 }
 0x5c4   : > { %v2556_v3 = vadd.f32 %v2555_v12, %v2188_v28  ;;  %v2557_v27 = vpop.f32.mrb[9].mxu0 }
 0x5c5   : > { %v2558_v58 = vpop.f32.mrb[10].mxu0 }
 0x5c6   : > { %v2648_v34 = vmax.f32 %v2556_v3, 0.0  ;;  %v2559_v36 = vadd.f32 %v2558_v58, %v2193_v17  ;;  %v2560_v24 = vpop.f32.mrb[11].mxu0 }
 0x5c8   : > { %2660 = vst.msk [vmem:[%s5122_s22 + $0x10] sm:$0xff] %vm569_vm0, %v2648_v34  ;;  %v2654_v5 = vmax.f32 %v2559_v36, 0.0 }
 0x5ca   : > { %2663 = vst.msk [vmem:[%s5122_s22 + $0x28] sm:$0xff] %vm569_vm0, %v2654_v5 }
 0x5e7   : > { %v2596_v55 = vpop.f32.mrb[28].mxu1  ;;  %v2639_v57 = vpop.f32.mrb[12].mxu0 }
 0x5e8   : > { %v2597_v50 = vadd.f32 %v2596_v55, %v2188_v28  ;;  %v2640_v14 = vadd.f32 %v2639_v57, %v2188_v28  ;;  %v2598_v60 = vpop.f32.mrb[29].mxu1  ;;  %v2641_v42 = vpop.f32.mrb[13].mxu0 }
 0x5e9   : > { %v2599_v15 = vadd.f32 %v2598_v60, %v2188_v28  ;;  %v2600_v1 = vpop.f32.mrb[30].mxu1  ;;  %v2642_v63 = vpop.f32.mrb[14].mxu0 }
 0x5ea   : > { %v2649_v6 = vmax.f32 %v2597_v50, 0.0  ;;  %v2651_v18 = vmax.f32 %v2640_v14, 0.0  ;;  %v2601_v35 = vadd.f32 %v2600_v1, %v2193_v17  ;;  %v2643_v13 = vadd.f32 %v2642_v63, %v2193_v17  ;;  %v2602_v7 = vpop.f32.mrb[31].mxu1  ;;  %v2644_v20 = vpop.f32.mrb[15].mxu0 }
 0x5eb   : > { %v2650_v44 = vmax.f32 %v2599_v15, 0.0  ;;  %v2603_v49 = vadd.f32 %v2602_v7, %v2193_v17 }
 0x5ec   : > { %2783 = vst [vmem:[%s5122_s22 + $0x30] sm:$0xff] %v2649_v6  ;;  %2785 = vst.msk [vmem:[%s5122_s22 + $0x40] sm:$0xff] %vm569_vm0, %v2651_v18  ;;  %v2655_v52 = vmax.f32 %v2601_v35, 0.0  ;;  %v2657_v39 = vmax.f32 %v2643_v13, 0.0 }
 0x5ed   : > { %2784 = vst [vmem:[%s5122_s22 + $0x38] sm:$0xff] %v2650_v44  ;;  %v2656_v29 = vmax.f32 %v2603_v49, 0.0 }
 0x5ee   : > { %2786 = vst [vmem:[%s5122_s22 + $0x48] sm:$0xff] %v2655_v52  ;;  %2788 = vst.msk [vmem:[%s5122_s22 + $0x58] sm:$0xff] %vm569_vm0, %v2657_v39 }
 0x5ef   : > { %2787 = vst [vmem:[%s5122_s22 + $0x50] sm:$0xff] %v2656_v29 }
 0x5f0 PF: > { %s18_s27 = sadd.s32 1, %s3027_s27  }
 0x5f1   : > { %p15_p5 = scmp.ge.s32.totalorder %s18_s27, 4  }
 0x5f3   :  { %17 = sbr.rel (!%p15_p5) target bundleno = 1 (0x1), region = 87 }

</bundles_post_ra>
